<compile_context>
chip_gen: v7x
topology: tpu7x:2x2x1
jax: 0.10.0
libtpu: 0.0.40
codegen_flags: <defaults>
</compile_context>

<pallas_src>
import functools

import jax
import jax.numpy as jnp
import numpy as np
from jax import lax
from jax.experimental import pallas as pl
from jax.experimental.pallas import tpu as pltpu

# (kernel_size, stride, dilation) for the four Conv1d layers
LAYER_CFG = ((3, 2, 2), (3, 2, 2), (3, 2, 1), (2, 2, 1))
C_MID = 256    # conv1/conv2/conv3 output channels
C_OUT4 = 64    # conv4 output channels
NC_PAD = 128   # lane-padded class dim for the log_softmax output


def _conv_len(L, k, s, d):
    return (L - d * (k - 1) - 1) // s + 1


def _round_up(x, m):
    return ((x + m - 1) // m) * m


def _softmax1d_kernel(x_ref, w1_ref, b1_ref, w2_ref, b2_ref, w3_ref, b3_ref,
                      w4_ref, b4_ref, wfc_ref, bfc_ref, out_ref, *, L1):
    # ---- conv1 + ReLU: one bf16 MXU matmul against the position-expanded
    # weight.  x_ref: (TILE_N, l_even*C_in) bf16; w1_ref: (l_even*C_in, L1*256)
    # bf16; accumulation in f32.
    y1 = jnp.dot(x_ref[...], w1_ref[...], preferred_element_type=jnp.float32)
    b1 = b1_ref[...]                                         # (1, 256) f32
    # Output position l lives in the vreg-aligned lane block [l*256,(l+1)*256).
    # Bias+ReLU in f32, then cast once to bf16 for the next layer's MXU input.
    slabs = [jnp.maximum(y1[:, l * C_MID:(l + 1) * C_MID] + b1, 0.0)
             .astype(jnp.bfloat16) for l in range(L1)]
    # BatchNorm1d (eval) is folded into conv2's weights/bias in the wrapper.

    def conv_relu(slabs_in, w_ref, b_ref, k, s, d, out_dtype):
        # Position-outer accumulation: for each output position, chain the
        # per-tap matmul accumulates (v7x MRB can accumulate in place; only one
        # live f32 accumulator at a time -> less spill pressure on v5e).
        Lo = _conv_len(len(slabs_in), k, s, d)
        b = b_ref[...]                                       # (1, C_out) f32
        out = []
        for l in range(Lo):
            acc = jnp.dot(slabs_in[l * s], w_ref[0],
                          preferred_element_type=jnp.float32)
            for j in range(1, k):
                acc = acc + jnp.dot(slabs_in[l * s + j * d], w_ref[j],
                                    preferred_element_type=jnp.float32)
            out.append(jnp.maximum(acc + b, 0.0).astype(out_dtype))
        return out

    slabs = conv_relu(slabs, w2_ref, b2_ref, *LAYER_CFG[1], jnp.bfloat16)  # 13->5
    slabs = conv_relu(slabs, w3_ref, b3_ref, *LAYER_CFG[2], jnp.bfloat16)  # 5 ->2
    # Dropout(0.2): identity in eval mode (no RNG applied).
    slabs = conv_relu(slabs, w4_ref, b4_ref, *LAYER_CFG[3], jnp.float32)   # 2 ->1
    assert len(slabs) == 1, "final spatial length must be 1 for squeeze(dim=2)"
    feat = slabs[0]                                          # (TILE_N, 64) f32

    # ---- fc (kept f32; tiny) + log_softmax over the lane-padded class dim.
    # Padded classes carry zero weight columns and a -1e9 bias so exp() -> 0.
    logits = jnp.dot(feat, wfc_ref[...],
                     preferred_element_type=jnp.float32) + bfc_ref[...]
    m = jnp.max(logits, axis=-1, keepdims=True)
    z = logits - m
    lse = jnp.log(jnp.sum(jnp.exp(z), axis=-1, keepdims=True))
    out_ref[...] = (z - lse).astype(out_ref.dtype)


def prepare_params(params, c_in, l_in, num_classes):
    """One-time weight preprocessing in numpy (hoisted out of the call path)."""
    assert num_classes <= NC_PAD, "NC_PAD=128 assumes num_classes <= 128"
    ls = [l_in]
    for (k, s, d) in LAYER_CFG:
        ls.append(_conv_len(ls[-1], k, s, d))
    L1, L2, L3, L4 = ls[1:]
    assert L4 == 1, f"input length {l_in} does not reduce to 1 (got {L4})"

    p = {k: np.asarray(v, np.float32) for k, v in params.items()}
    eps = 1e-5
    bn_scale = p["gamma"] / np.sqrt(p["rvar"] + eps)          # (256,)
    bn_shift = p["beta"] - p["rmean"] * bn_scale              # (256,)

    # conv1 as one big matmul.  With s1 = d1 = 2 every tap index p = 2l + 2j is
    # even, so only even input positions are packed (halves K and w1_big size).
    k1, s1, d1 = LAYER_CFG[0]
    assert s1 % 2 == 0 and d1 % 2 == 0
    l_used = (L1 - 1) * s1 + (k1 - 1) * d1 + 1
    l_even = (l_used + 1) // 2
    w1_t = np.transpose(p["w1"], (2, 1, 0))                   # (k, C_in, 256)
    w1_big = np.zeros((l_even * c_in, L1 * C_MID), np.float32)
    for l in range(L1):
        for j in range(k1):
            pe = (l * s1 + j * d1) // 2                       # even-position idx
            w1_big[pe * c_in:(pe + 1) * c_in,
                   l * C_MID:(l + 1) * C_MID] = w1_t[j]

    # Fold eval-mode BatchNorm (sits after ReLU, i.e. on conv2's input) into
    # conv2: W2'[j] = diag(scale) @ W2[j],  b2' = b2 + shift @ sum_j W2[j].
    w2_t = np.transpose(p["w2"], (2, 1, 0))                   # (3, 256, 256)
    w2_fold = w2_t * bn_scale[None, :, None]
    b2_fold = p["b2"] + np.einsum("c,kcd->d", bn_shift, w2_t)

    w3_t = np.transpose(p["w3"], (2, 1, 0))                   # (3, 256, 256)
    w4_t = np.transpose(p["w4"], (2, 1, 0))                   # (2, 256, 64)

    # fc padded to a lane-dense 128-class output; padded classes get -1e9 bias.
    wfc_pad = np.zeros((C_OUT4, NC_PAD), np.float32)
    wfc_pad[:, :num_classes] = p["wfc"].T
    bfc_pad = np.full((1, NC_PAD), -1e9, np.float32)
    bfc_pad[0, :num_classes] = p["bfc"]

    bf16 = jnp.bfloat16
    return dict(
        L1=L1, lens=(L1, L2, L3, L4), l_even=l_even,
        w1=jnp.asarray(w1_big, bf16),
        b1=jnp.asarray(p["b1"].reshape(1, C_MID)),
        w2=jnp.asarray(w2_fold, bf16),
        b2=jnp.asarray(b2_fold.reshape(1, C_MID)),
        w3=jnp.asarray(w3_t, bf16),
        b3=jnp.asarray(p["b3"].reshape(1, C_MID)),
        w4=jnp.asarray(w4_t, bf16),
        b4=jnp.asarray(p["b4"].reshape(1, C_OUT4)),
        wfc=jnp.asarray(wfc_pad),
        bfc=jnp.asarray(bfc_pad),
    )


def softmax_1d_forward(x_ncl, prep, num_classes, *, tile_n=512,
                       vmem_limit_bytes=48 * 1024 * 1024):
    """x_ncl: (N, C_in, L) float32, as the PyTorch module expects."""
    n, c_in, l_in = x_ncl.shape
    L1 = prep["L1"]
    L2, L3, L4 = prep["lens"][1:]
    l_even = prep["l_even"]

    # ---- batch tiling.  Default 512 rows (amortizes ~0.35 us/step overhead);
    # when N > tile_n cap the tile so the grid has >= 2 steps (the "parallel"
    # batch axis then actually feeds both v7x TensorCores).
    if n <= tile_n:
        TILE_N = max(8, _round_up(n, 8))
    else:
        TILE_N = min(tile_n, _round_up(pl.cdiv(n, 2), 8))
    n_pad = _round_up(n, TILE_N)

    # Lane-dense input slab from EVEN positions only (conv1 never reads odd
    # positions): (N, l_even*C_in) bf16; zero-pad the batch (sliced later).
    x_even = x_ncl[:, :, 0:2 * l_even:2]                      # (N, C_in, l_even)
    x_flat = jnp.transpose(x_even, (0, 2, 1)).reshape(n, l_even * c_in)
    x_flat = x_flat.astype(jnp.bfloat16)
    if n_pad != n:
        x_flat = jnp.pad(x_flat, ((0, n_pad - n), (0, 0)))

    args = (x_flat, prep["w1"], prep["b1"], prep["w2"], prep["b2"],
            prep["w3"], prep["b3"], prep["w4"], prep["b4"],
            prep["wfc"], prep["bfc"])

    def full_spec(a):
        nd = a.ndim
        return pl.BlockSpec(a.shape, lambda i, _nd=nd: (0,) * _nd)

    in_specs = [pl.BlockSpec((TILE_N, l_even * c_in), lambda i: (i, 0))]
    in_specs += [full_spec(a) for a in args[1:]]              # VMEM-resident
    out_spec = pl.BlockSpec((TILE_N, NC_PAD), lambda i: (i, 0))

    # Advisory cost estimate for the XLA scheduler.
    flops_row = 2 * (l_even * c_in * L1 * C_MID
                     + 3 * L2 * C_MID * C_MID
                     + 3 * L3 * C_MID * C_MID
                     + 2 * L4 * C_MID * C_OUT4
                     + C_OUT4 * NC_PAD)
    bytes_accessed = (sum(int(np.prod(a.shape)) * a.dtype.itemsize for a in args)
                      + n_pad * NC_PAD * 4)
    cost = pl.CostEstimate(flops=int(flops_row * n_pad),
                           transcendentals=int(n_pad * NC_PAD),
                           bytes_accessed=int(bytes_accessed))

    kernel = functools.partial(_softmax1d_kernel, L1=L1)
    out = pl.pallas_call(
        kernel,
        out_shape=jax.ShapeDtypeStruct((n_pad, NC_PAD), jnp.float32),
        grid=(n_pad // TILE_N,),
        in_specs=in_specs,
        out_specs=out_spec,
        compiler_params=pltpu.CompilerParams(
            dimension_semantics=("parallel",),
            vmem_limit_bytes=vmem_limit_bytes),
        cost_estimate=cost,
    )(*args)
    return out[:n, :num_classes]


def reference_forward(x_ncl, params, num_classes):
    """Pure-JAX f32 reference matching PyTorch eval-mode semantics."""
    def conv1d(x, w, b, s, d):
        y = lax.conv_general_dilated(
            x, w, window_strides=(s,), padding="VALID", rhs_dilation=(d,),
            dimension_numbers=("NCH", "OIH", "NCH"))
        return y + b[None, :, None]

    eps = 1e-5
    h = jax.nn.relu(conv1d(x_ncl, params["w1"], params["b1"], 2, 2))
    scale = params["gamma"] / jnp.sqrt(params["rvar"] + eps)
    shift = params["beta"] - params["rmean"] * scale
    h = h * scale[None, :, None] + shift[None, :, None]
    h = jax.nn.relu(conv1d(h, params["w2"], params["b2"], 2, 2))
    h = jax.nn.relu(conv1d(h, params["w3"], params["b3"], 2, 1))
    h = jax.nn.relu(conv1d(h, params["w4"], params["b4"], 2, 1))
    feat = h[:, :, 0]  # squeeze(dim=2)
    logits = feat @ params["wfc"].T + params["bfc"]
    return jax.nn.log_softmax(logits, axis=1)


def make_params(key, c_in, num_classes):
    ks = jax.random.split(key, 16)

    def winit(k, shape, fan_in):
        return (jax.random.normal(k, shape, jnp.float32) /
                jnp.sqrt(jnp.float32(fan_in)))

    p = {}
    p["w1"] = winit(ks[0], (256, c_in, 3), c_in * 3)
    p["b1"] = 0.1 * jax.random.normal(ks[1], (256,), jnp.float32)
    p["gamma"] = 1.0 + 0.1 * jax.random.normal(ks[2], (256,), jnp.float32)
    p["beta"] = 0.1 * jax.random.normal(ks[3], (256,), jnp.float32)
    p["rmean"] = 0.1 * jax.random.normal(ks[4], (256,), jnp.float32)
    p["rvar"] = jax.random.uniform(ks[5], (256,), jnp.float32, 0.5, 1.5)
    p["w2"] = winit(ks[6], (256, 256, 3), 256 * 3)
    p["b2"] = 0.1 * jax.random.normal(ks[7], (256,), jnp.float32)
    p["w3"] = winit(ks[8], (256, 256, 3), 256 * 3)
    p["b3"] = 0.1 * jax.random.normal(ks[9], (256,), jnp.float32)
    p["w4"] = winit(ks[10], (64, 256, 2), 256 * 2)
    p["b4"] = 0.1 * jax.random.normal(ks[11], (64,), jnp.float32)
    p["wfc"] = winit(ks[12], (num_classes, 64), 64)
    p["bfc"] = 0.1 * jax.random.normal(ks[13], (num_classes,), jnp.float32)
    # self.fc1 = nn.Linear(64, 64) exists in __init__ but is never used in
    # forward(); intentionally not instantiated here.
    return p


if __name__ == "__main__":
    key = jax.random.PRNGKey(0)
    kx, kp = jax.random.split(key)

    # Length 29 is the smallest-ish length for which the conv chain collapses
    # to spatial length 1 (required by squeeze(dim=2)).
    N, C_IN, L, NUM_CLASSES = 2, 4, 29, 10

    x = jax.random.normal(kx, (N, C_IN, L), jnp.float32)  # PyTorch NCL input
    params = make_params(kp, C_IN, NUM_CLASSES)

    prep = prepare_params(params, C_IN, L, NUM_CLASSES)   # one-time weight prep
    out = softmax_1d_forward(x, prep, NUM_CLASSES)
    out = jax.block_until_ready(out)
    assert out.shape == (N, NUM_CLASSES)

    ref = reference_forward(x, params, NUM_CLASSES)
    # bf16 MXU operands (with f32 accumulation) drift ~1e-2 vs the pure-f32
    # reference across the 4 stacked conv layers, so the tolerance is 5e-2.
    np.testing.assert_allclose(np.asarray(out), np.asarray(ref),
                               rtol=5e-2, atol=5e-2)
    print("KERNEL_OK")
</pallas_src>

<mosaic_0001>
module attributes {stable_mosaic.version = 11 : i64} {
  func.func @_softmax1d_kernel(%arg0: i32, %arg1: memref<8x60xbf16, #tpu.memory_space<vmem>>, %arg2: memref<60x3328xbf16, #tpu.memory_space<vmem>>, %arg3: memref<1x256xf32, #tpu.memory_space<vmem>>, %arg4: memref<3x256x256xbf16, #tpu.memory_space<vmem>>, %arg5: memref<1x256xf32, #tpu.memory_space<vmem>>, %arg6: memref<3x256x256xbf16, #tpu.memory_space<vmem>>, %arg7: memref<1x256xf32, #tpu.memory_space<vmem>>, %arg8: memref<2x256x64xbf16, #tpu.memory_space<vmem>>, %arg9: memref<1x64xf32, #tpu.memory_space<vmem>>, %arg10: memref<64x128xf32, #tpu.memory_space<vmem>>, %arg11: memref<1x128xf32, #tpu.memory_space<vmem>>, %arg12: memref<8x128xf32, #tpu.memory_space<vmem>>) attributes {dimension_semantics = [#tpu.dimension_semantics<parallel>], iteration_bounds = array<i64: 1>, scalar_prefetch = 0 : i64, scratch_operands = 0 : i64, tpu.core_type = #tpu.core_type<tc>, window_params = [{transform_indices = @transform_0, window_bounds = array<i64: 8, 60>}, {pipeline_mode = #tpu.pipeline_mode<synchronous>, transform_indices = @transform_1, window_bounds = array<i64: 60, 3328>}, {pipeline_mode = #tpu.pipeline_mode<synchronous>, transform_indices = @transform_2, window_bounds = array<i64: 1, 256>}, {pipeline_mode = #tpu.pipeline_mode<synchronous>, transform_indices = @transform_3, window_bounds = array<i64: 3, 256, 256>}, {pipeline_mode = #tpu.pipeline_mode<synchronous>, transform_indices = @transform_4, window_bounds = array<i64: 1, 256>}, {pipeline_mode = #tpu.pipeline_mode<synchronous>, transform_indices = @transform_5, window_bounds = array<i64: 3, 256, 256>}, {pipeline_mode = #tpu.pipeline_mode<synchronous>, transform_indices = @transform_6, window_bounds = array<i64: 1, 256>}, {pipeline_mode = #tpu.pipeline_mode<synchronous>, transform_indices = @transform_7, window_bounds = array<i64: 2, 256, 64>}, {pipeline_mode = #tpu.pipeline_mode<synchronous>, transform_indices = @transform_8, window_bounds = array<i64: 1, 64>}, {pipeline_mode = #tpu.pipeline_mode<synchronous>, transform_indices = @transform_9, window_bounds = array<i64: 64, 128>}, {pipeline_mode = #tpu.pipeline_mode<synchronous>, transform_indices = @transform_10, window_bounds = array<i64: 1, 128>}, {transform_indices = @transform_11, window_bounds = array<i64: 8, 128>}]} {
    %c0 = arith.constant 0 : index
    %c0_0 = arith.constant 0 : index
    %0 = vector.load %arg1[%c0, %c0_0] : memref<8x60xbf16, #tpu.memory_space<vmem>>, vector<8x60xbf16>
    %c0_1 = arith.constant 0 : index
    %c0_2 = arith.constant 0 : index
    %1 = vector.load %arg2[%c0_1, %c0_2] : memref<60x3328xbf16, #tpu.memory_space<vmem>>, vector<60x3328xbf16>
    %cst = arith.constant dense<0.000000e+00> : vector<8x3328xf32>
    %2 = tpu.matmul %0, %1, %cst {dimension_numbers = #tpu.dot_dimension_numbers<[1], [0], [0], [1], [0, 0, 1, 1], [], []>} : vector<8x60xbf16>, vector<60x3328xbf16>, vector<8x3328xf32> -> vector<8x3328xf32>
    %c0_3 = arith.constant 0 : index
    %c0_4 = arith.constant 0 : index
    %3 = vector.load %arg3[%c0_3, %c0_4] : memref<1x256xf32, #tpu.memory_space<vmem>>, vector<1x256xf32>
    %4 = vector.extract_strided_slice %2 {offsets = [0, 0], sizes = [8, 256], strides = [1, 1]} : vector<8x3328xf32> to vector<8x256xf32>
    %5 = vector.broadcast %3 : vector<1x256xf32> to vector<8x256xf32>
    %6 = arith.addf %4, %5 : vector<8x256xf32>
    %cst_5 = arith.constant 0.000000e+00 : f32
    %7 = vector.broadcast %cst_5 : f32 to vector<8x256xf32>
    %8 = arith.maximumf %6, %7 : vector<8x256xf32>
    %9 = arith.truncf %8 : vector<8x256xf32> to vector<8x256xbf16>
    %10 = vector.extract_strided_slice %2 {offsets = [0, 512], sizes = [8, 256], strides = [1, 1]} : vector<8x3328xf32> to vector<8x256xf32>
    %11 = vector.broadcast %3 : vector<1x256xf32> to vector<8x256xf32>
    %12 = arith.addf %10, %11 : vector<8x256xf32>
    %cst_6 = arith.constant 0.000000e+00 : f32
    %13 = vector.broadcast %cst_6 : f32 to vector<8x256xf32>
    %14 = arith.maximumf %12, %13 : vector<8x256xf32>
    %15 = arith.truncf %14 : vector<8x256xf32> to vector<8x256xbf16>
    %16 = vector.extract_strided_slice %2 {offsets = [0, 1024], sizes = [8, 256], strides = [1, 1]} : vector<8x3328xf32> to vector<8x256xf32>
    %17 = vector.broadcast %3 : vector<1x256xf32> to vector<8x256xf32>
    %18 = arith.addf %16, %17 : vector<8x256xf32>
    %cst_7 = arith.constant 0.000000e+00 : f32
    %19 = vector.broadcast %cst_7 : f32 to vector<8x256xf32>
    %20 = arith.maximumf %18, %19 : vector<8x256xf32>
    %21 = arith.truncf %20 : vector<8x256xf32> to vector<8x256xbf16>
    %22 = vector.extract_strided_slice %2 {offsets = [0, 1536], sizes = [8, 256], strides = [1, 1]} : vector<8x3328xf32> to vector<8x256xf32>
    %23 = vector.broadcast %3 : vector<1x256xf32> to vector<8x256xf32>
    %24 = arith.addf %22, %23 : vector<8x256xf32>
    %cst_8 = arith.constant 0.000000e+00 : f32
    %25 = vector.broadcast %cst_8 : f32 to vector<8x256xf32>
    %26 = arith.maximumf %24, %25 : vector<8x256xf32>
    %27 = arith.truncf %26 : vector<8x256xf32> to vector<8x256xbf16>
    %28 = vector.extract_strided_slice %2 {offsets = [0, 2048], sizes = [8, 256], strides = [1, 1]} : vector<8x3328xf32> to vector<8x256xf32>
    %29 = vector.broadcast %3 : vector<1x256xf32> to vector<8x256xf32>
    %30 = arith.addf %28, %29 : vector<8x256xf32>
    %cst_9 = arith.constant 0.000000e+00 : f32
    %31 = vector.broadcast %cst_9 : f32 to vector<8x256xf32>
    %32 = arith.maximumf %30, %31 : vector<8x256xf32>
    %33 = arith.truncf %32 : vector<8x256xf32> to vector<8x256xbf16>
    %34 = vector.extract_strided_slice %2 {offsets = [0, 2560], sizes = [8, 256], strides = [1, 1]} : vector<8x3328xf32> to vector<8x256xf32>
    %35 = vector.broadcast %3 : vector<1x256xf32> to vector<8x256xf32>
    %36 = arith.addf %34, %35 : vector<8x256xf32>
    %cst_10 = arith.constant 0.000000e+00 : f32
    %37 = vector.broadcast %cst_10 : f32 to vector<8x256xf32>
    %38 = arith.maximumf %36, %37 : vector<8x256xf32>
    %39 = arith.truncf %38 : vector<8x256xf32> to vector<8x256xbf16>
    %40 = vector.extract_strided_slice %2 {offsets = [0, 3072], sizes = [8, 256], strides = [1, 1]} : vector<8x3328xf32> to vector<8x256xf32>
    %41 = vector.broadcast %3 : vector<1x256xf32> to vector<8x256xf32>
    %42 = arith.addf %40, %41 : vector<8x256xf32>
    %cst_11 = arith.constant 0.000000e+00 : f32
    %43 = vector.broadcast %cst_11 : f32 to vector<8x256xf32>
    %44 = arith.maximumf %42, %43 : vector<8x256xf32>
    %45 = arith.truncf %44 : vector<8x256xf32> to vector<8x256xbf16>
    %c0_12 = arith.constant 0 : index
    %c0_13 = arith.constant 0 : index
    %46 = vector.load %arg5[%c0_12, %c0_13] : memref<1x256xf32, #tpu.memory_space<vmem>>, vector<1x256xf32>
    %c0_14 = arith.constant 0 : index
    %c0_15 = arith.constant 0 : index
    %c0_16 = arith.constant 0 : index
    %47 = vector.load %arg4[%c0_14, %c0_15, %c0_16] : memref<3x256x256xbf16, #tpu.memory_space<vmem>>, vector<1x256x256xbf16>
    %48 = vector.shape_cast %47 : vector<1x256x256xbf16> to vector<256x256xbf16>
    %cst_17 = arith.constant dense<0.000000e+00> : vector<8x256xf32>
    %49 = tpu.matmul %9, %48, %cst_17 {dimension_numbers = #tpu.dot_dimension_numbers<[1], [0], [0], [1], [0, 0, 1, 1], [], []>} : vector<8x256xbf16>, vector<256x256xbf16>, vector<8x256xf32> -> vector<8x256xf32>
    %c1 = arith.constant 1 : index
    %c0_18 = arith.constant 0 : index
    %c0_19 = arith.constant 0 : index
    %50 = vector.load %arg4[%c1, %c0_18, %c0_19] : memref<3x256x256xbf16, #tpu.memory_space<vmem>>, vector<1x256x256xbf16>
    %51 = vector.shape_cast %50 : vector<1x256x256xbf16> to vector<256x256xbf16>
    %cst_20 = arith.constant dense<0.000000e+00> : vector<8x256xf32>
    %52 = tpu.matmul %15, %51, %cst_20 {dimension_numbers = #tpu.dot_dimension_numbers<[1], [0], [0], [1], [0, 0, 1, 1], [], []>} : vector<8x256xbf16>, vector<256x256xbf16>, vector<8x256xf32> -> vector<8x256xf32>
    %53 = arith.addf %49, %52 : vector<8x256xf32>
    %c2 = arith.constant 2 : index
    %c0_21 = arith.constant 0 : index
    %c0_22 = arith.constant 0 : index
    %54 = vector.load %arg4[%c2, %c0_21, %c0_22] : memref<3x256x256xbf16, #tpu.memory_space<vmem>>, vector<1x256x256xbf16>
    %55 = vector.shape_cast %54 : vector<1x256x256xbf16> to vector<256x256xbf16>
    %cst_23 = arith.constant dense<0.000000e+00> : vector<8x256xf32>
    %56 = tpu.matmul %21, %55, %cst_23 {dimension_numbers = #tpu.dot_dimension_numbers<[1], [0], [0], [1], [0, 0, 1, 1], [], []>} : vector<8x256xbf16>, vector<256x256xbf16>, vector<8x256xf32> -> vector<8x256xf32>
    %57 = arith.addf %53, %56 : vector<8x256xf32>
    %58 = vector.broadcast %46 : vector<1x256xf32> to vector<8x256xf32>
    %59 = arith.addf %57, %58 : vector<8x256xf32>
    %cst_24 = arith.constant 0.000000e+00 : f32
    %60 = vector.broadcast %cst_24 : f32 to vector<8x256xf32>
    %61 = arith.maximumf %59, %60 : vector<8x256xf32>
    %62 = arith.truncf %61 : vector<8x256xf32> to vector<8x256xbf16>
    %c0_25 = arith.constant 0 : index
    %c0_26 = arith.constant 0 : index
    %c0_27 = arith.constant 0 : index
    %63 = vector.load %arg4[%c0_25, %c0_26, %c0_27] : memref<3x256x256xbf16, #tpu.memory_space<vmem>>, vector<1x256x256xbf16>
    %64 = vector.shape_cast %63 : vector<1x256x256xbf16> to vector<256x256xbf16>
    %cst_28 = arith.constant dense<0.000000e+00> : vector<8x256xf32>
    %65 = tpu.matmul %15, %64, %cst_28 {dimension_numbers = #tpu.dot_dimension_numbers<[1], [0], [0], [1], [0, 0, 1, 1], [], []>} : vector<8x256xbf16>, vector<256x256xbf16>, vector<8x256xf32> -> vector<8x256xf32>
    %c1_29 = arith.constant 1 : index
    %c0_30 = arith.constant 0 : index
    %c0_31 = arith.constant 0 : index
    %66 = vector.load %arg4[%c1_29, %c0_30, %c0_31] : memref<3x256x256xbf16, #tpu.memory_space<vmem>>, vector<1x256x256xbf16>
    %67 = vector.shape_cast %66 : vector<1x256x256xbf16> to vector<256x256xbf16>
    %cst_32 = arith.constant dense<0.000000e+00> : vector<8x256xf32>
    %68 = tpu.matmul %21, %67, %cst_32 {dimension_numbers = #tpu.dot_dimension_numbers<[1], [0], [0], [1], [0, 0, 1, 1], [], []>} : vector<8x256xbf16>, vector<256x256xbf16>, vector<8x256xf32> -> vector<8x256xf32>
    %69 = arith.addf %65, %68 : vector<8x256xf32>
    %c2_33 = arith.constant 2 : index
    %c0_34 = arith.constant 0 : index
    %c0_35 = arith.constant 0 : index
    %70 = vector.load %arg4[%c2_33, %c0_34, %c0_35] : memref<3x256x256xbf16, #tpu.memory_space<vmem>>, vector<1x256x256xbf16>
    %71 = vector.shape_cast %70 : vector<1x256x256xbf16> to vector<256x256xbf16>
    %cst_36 = arith.constant dense<0.000000e+00> : vector<8x256xf32>
    %72 = tpu.matmul %27, %71, %cst_36 {dimension_numbers = #tpu.dot_dimension_numbers<[1], [0], [0], [1], [0, 0, 1, 1], [], []>} : vector<8x256xbf16>, vector<256x256xbf16>, vector<8x256xf32> -> vector<8x256xf32>
    %73 = arith.addf %69, %72 : vector<8x256xf32>
    %74 = vector.broadcast %46 : vector<1x256xf32> to vector<8x256xf32>
    %75 = arith.addf %73, %74 : vector<8x256xf32>
    %cst_37 = arith.constant 0.000000e+00 : f32
    %76 = vector.broadcast %cst_37 : f32 to vector<8x256xf32>
    %77 = arith.maximumf %75, %76 : vector<8x256xf32>
    %78 = arith.truncf %77 : vector<8x256xf32> to vector<8x256xbf16>
    %c0_38 = arith.constant 0 : index
    %c0_39 = arith.constant 0 : index
    %c0_40 = arith.constant 0 : index
    %79 = vector.load %arg4[%c0_38, %c0_39, %c0_40] : memref<3x256x256xbf16, #tpu.memory_space<vmem>>, vector<1x256x256xbf16>
    %80 = vector.shape_cast %79 : vector<1x256x256xbf16> to vector<256x256xbf16>
    %cst_41 = arith.constant dense<0.000000e+00> : vector<8x256xf32>
    %81 = tpu.matmul %21, %80, %cst_41 {dimension_numbers = #tpu.dot_dimension_numbers<[1], [0], [0], [1], [0, 0, 1, 1], [], []>} : vector<8x256xbf16>, vector<256x256xbf16>, vector<8x256xf32> -> vector<8x256xf32>
    %c1_42 = arith.constant 1 : index
    %c0_43 = arith.constant 0 : index
    %c0_44 = arith.constant 0 : index
    %82 = vector.load %arg4[%c1_42, %c0_43, %c0_44] : memref<3x256x256xbf16, #tpu.memory_space<vmem>>, vector<1x256x256xbf16>
    %83 = vector.shape_cast %82 : vector<1x256x256xbf16> to vector<256x256xbf16>
    %cst_45 = arith.constant dense<0.000000e+00> : vector<8x256xf32>
    %84 = tpu.matmul %27, %83, %cst_45 {dimension_numbers = #tpu.dot_dimension_numbers<[1], [0], [0], [1], [0, 0, 1, 1], [], []>} : vector<8x256xbf16>, vector<256x256xbf16>, vector<8x256xf32> -> vector<8x256xf32>
    %85 = arith.addf %81, %84 : vector<8x256xf32>
    %c2_46 = arith.constant 2 : index
    %c0_47 = arith.constant 0 : index
    %c0_48 = arith.constant 0 : index
    %86 = vector.load %arg4[%c2_46, %c0_47, %c0_48] : memref<3x256x256xbf16, #tpu.memory_space<vmem>>, vector<1x256x256xbf16>
    %87 = vector.shape_cast %86 : vector<1x256x256xbf16> to vector<256x256xbf16>
    %cst_49 = arith.constant dense<0.000000e+00> : vector<8x256xf32>
    %88 = tpu.matmul %33, %87, %cst_49 {dimension_numbers = #tpu.dot_dimension_numbers<[1], [0], [0], [1], [0, 0, 1, 1], [], []>} : vector<8x256xbf16>, vector<256x256xbf16>, vector<8x256xf32> -> vector<8x256xf32>
    %89 = arith.addf %85, %88 : vector<8x256xf32>
    %90 = vector.broadcast %46 : vector<1x256xf32> to vector<8x256xf32>
    %91 = arith.addf %89, %90 : vector<8x256xf32>
    %cst_50 = arith.constant 0.000000e+00 : f32
    %92 = vector.broadcast %cst_50 : f32 to vector<8x256xf32>
    %93 = arith.maximumf %91, %92 : vector<8x256xf32>
    %94 = arith.truncf %93 : vector<8x256xf32> to vector<8x256xbf16>
    %c0_51 = arith.constant 0 : index
    %c0_52 = arith.constant 0 : index
    %c0_53 = arith.constant 0 : index
    %95 = vector.load %arg4[%c0_51, %c0_52, %c0_53] : memref<3x256x256xbf16, #tpu.memory_space<vmem>>, vector<1x256x256xbf16>
    %96 = vector.shape_cast %95 : vector<1x256x256xbf16> to vector<256x256xbf16>
    %cst_54 = arith.constant dense<0.000000e+00> : vector<8x256xf32>
    %97 = tpu.matmul %27, %96, %cst_54 {dimension_numbers = #tpu.dot_dimension_numbers<[1], [0], [0], [1], [0, 0, 1, 1], [], []>} : vector<8x256xbf16>, vector<256x256xbf16>, vector<8x256xf32> -> vector<8x256xf32>
    %c1_55 = arith.constant 1 : index
    %c0_56 = arith.constant 0 : index
    %c0_57 = arith.constant 0 : index
    %98 = vector.load %arg4[%c1_55, %c0_56, %c0_57] : memref<3x256x256xbf16, #tpu.memory_space<vmem>>, vector<1x256x256xbf16>
    %99 = vector.shape_cast %98 : vector<1x256x256xbf16> to vector<256x256xbf16>
    %cst_58 = arith.constant dense<0.000000e+00> : vector<8x256xf32>
    %100 = tpu.matmul %33, %99, %cst_58 {dimension_numbers = #tpu.dot_dimension_numbers<[1], [0], [0], [1], [0, 0, 1, 1], [], []>} : vector<8x256xbf16>, vector<256x256xbf16>, vector<8x256xf32> -> vector<8x256xf32>
    %101 = arith.addf %97, %100 : vector<8x256xf32>
    %c2_59 = arith.constant 2 : index
    %c0_60 = arith.constant 0 : index
    %c0_61 = arith.constant 0 : index
    %102 = vector.load %arg4[%c2_59, %c0_60, %c0_61] : memref<3x256x256xbf16, #tpu.memory_space<vmem>>, vector<1x256x256xbf16>
    %103 = vector.shape_cast %102 : vector<1x256x256xbf16> to vector<256x256xbf16>
    %cst_62 = arith.constant dense<0.000000e+00> : vector<8x256xf32>
    %104 = tpu.matmul %39, %103, %cst_62 {dimension_numbers = #tpu.dot_dimension_numbers<[1], [0], [0], [1], [0, 0, 1, 1], [], []>} : vector<8x256xbf16>, vector<256x256xbf16>, vector<8x256xf32> -> vector<8x256xf32>
    %105 = arith.addf %101, %104 : vector<8x256xf32>
    %106 = vector.broadcast %46 : vector<1x256xf32> to vector<8x256xf32>
    %107 = arith.addf %105, %106 : vector<8x256xf32>
    %cst_63 = arith.constant 0.000000e+00 : f32
    %108 = vector.broadcast %cst_63 : f32 to vector<8x256xf32>
    %109 = arith.maximumf %107, %108 : vector<8x256xf32>
    %110 = arith.truncf %109 : vector<8x256xf32> to vector<8x256xbf16>
    %c0_64 = arith.constant 0 : index
    %c0_65 = arith.constant 0 : index
    %c0_66 = arith.constant 0 : index
    %111 = vector.load %arg4[%c0_64, %c0_65, %c0_66] : memref<3x256x256xbf16, #tpu.memory_space<vmem>>, vector<1x256x256xbf16>
    %112 = vector.shape_cast %111 : vector<1x256x256xbf16> to vector<256x256xbf16>
    %cst_67 = arith.constant dense<0.000000e+00> : vector<8x256xf32>
    %113 = tpu.matmul %33, %112, %cst_67 {dimension_numbers = #tpu.dot_dimension_numbers<[1], [0], [0], [1], [0, 0, 1, 1], [], []>} : vector<8x256xbf16>, vector<256x256xbf16>, vector<8x256xf32> -> vector<8x256xf32>
    %c1_68 = arith.constant 1 : index
    %c0_69 = arith.constant 0 : index
    %c0_70 = arith.constant 0 : index
    %114 = vector.load %arg4[%c1_68, %c0_69, %c0_70] : memref<3x256x256xbf16, #tpu.memory_space<vmem>>, vector<1x256x256xbf16>
    %115 = vector.shape_cast %114 : vector<1x256x256xbf16> to vector<256x256xbf16>
    %cst_71 = arith.constant dense<0.000000e+00> : vector<8x256xf32>
    %116 = tpu.matmul %39, %115, %cst_71 {dimension_numbers = #tpu.dot_dimension_numbers<[1], [0], [0], [1], [0, 0, 1, 1], [], []>} : vector<8x256xbf16>, vector<256x256xbf16>, vector<8x256xf32> -> vector<8x256xf32>
    %117 = arith.addf %113, %116 : vector<8x256xf32>
    %c2_72 = arith.constant 2 : index
    %c0_73 = arith.constant 0 : index
    %c0_74 = arith.constant 0 : index
    %118 = vector.load %arg4[%c2_72, %c0_73, %c0_74] : memref<3x256x256xbf16, #tpu.memory_space<vmem>>, vector<1x256x256xbf16>
    %119 = vector.shape_cast %118 : vector<1x256x256xbf16> to vector<256x256xbf16>
    %cst_75 = arith.constant dense<0.000000e+00> : vector<8x256xf32>
    %120 = tpu.matmul %45, %119, %cst_75 {dimension_numbers = #tpu.dot_dimension_numbers<[1], [0], [0], [1], [0, 0, 1, 1], [], []>} : vector<8x256xbf16>, vector<256x256xbf16>, vector<8x256xf32> -> vector<8x256xf32>
    %121 = arith.addf %117, %120 : vector<8x256xf32>
    %122 = vector.broadcast %46 : vector<1x256xf32> to vector<8x256xf32>
    %123 = arith.addf %121, %122 : vector<8x256xf32>
    %cst_76 = arith.constant 0.000000e+00 : f32
    %124 = vector.broadcast %cst_76 : f32 to vector<8x256xf32>
    %125 = arith.maximumf %123, %124 : vector<8x256xf32>
    %126 = arith.truncf %125 : vector<8x256xf32> to vector<8x256xbf16>
    %c0_77 = arith.constant 0 : index
    %c0_78 = arith.constant 0 : index
    %127 = vector.load %arg7[%c0_77, %c0_78] : memref<1x256xf32, #tpu.memory_space<vmem>>, vector<1x256xf32>
    %c0_79 = arith.constant 0 : index
    %c0_80 = arith.constant 0 : index
    %c0_81 = arith.constant 0 : index
    %128 = vector.load %arg6[%c0_79, %c0_80, %c0_81] : memref<3x256x256xbf16, #tpu.memory_space<vmem>>, vector<1x256x256xbf16>
    %129 = vector.shape_cast %128 : vector<1x256x256xbf16> to vector<256x256xbf16>
    %cst_82 = arith.constant dense<0.000000e+00> : vector<8x256xf32>
    %130 = tpu.matmul %62, %129, %cst_82 {dimension_numbers = #tpu.dot_dimension_numbers<[1], [0], [0], [1], [0, 0, 1, 1], [], []>} : vector<8x256xbf16>, vector<256x256xbf16>, vector<8x256xf32> -> vector<8x256xf32>
    %c1_83 = arith.constant 1 : index
    %c0_84 = arith.constant 0 : index
    %c0_85 = arith.constant 0 : index
    %131 = vector.load %arg6[%c1_83, %c0_84, %c0_85] : memref<3x256x256xbf16, #tpu.memory_space<vmem>>, vector<1x256x256xbf16>
    %132 = vector.shape_cast %131 : vector<1x256x256xbf16> to vector<256x256xbf16>
    %cst_86 = arith.constant dense<0.000000e+00> : vector<8x256xf32>
    %133 = tpu.matmul %78, %132, %cst_86 {dimension_numbers = #tpu.dot_dimension_numbers<[1], [0], [0], [1], [0, 0, 1, 1], [], []>} : vector<8x256xbf16>, vector<256x256xbf16>, vector<8x256xf32> -> vector<8x256xf32>
    %134 = arith.addf %130, %133 : vector<8x256xf32>
    %c2_87 = arith.constant 2 : index
    %c0_88 = arith.constant 0 : index
    %c0_89 = arith.constant 0 : index
    %135 = vector.load %arg6[%c2_87, %c0_88, %c0_89] : memref<3x256x256xbf16, #tpu.memory_space<vmem>>, vector<1x256x256xbf16>
    %136 = vector.shape_cast %135 : vector<1x256x256xbf16> to vector<256x256xbf16>
    %cst_90 = arith.constant dense<0.000000e+00> : vector<8x256xf32>
    %137 = tpu.matmul %94, %136, %cst_90 {dimension_numbers = #tpu.dot_dimension_numbers<[1], [0], [0], [1], [0, 0, 1, 1], [], []>} : vector<8x256xbf16>, vector<256x256xbf16>, vector<8x256xf32> -> vector<8x256xf32>
    %138 = arith.addf %134, %137 : vector<8x256xf32>
    %139 = vector.broadcast %127 : vector<1x256xf32> to vector<8x256xf32>
    %140 = arith.addf %138, %139 : vector<8x256xf32>
    %cst_91 = arith.constant 0.000000e+00 : f32
    %141 = vector.broadcast %cst_91 : f32 to vector<8x256xf32>
    %142 = arith.maximumf %140, %141 : vector<8x256xf32>
    %143 = arith.truncf %142 : vector<8x256xf32> to vector<8x256xbf16>
    %c0_92 = arith.constant 0 : index
    %c0_93 = arith.constant 0 : index
    %c0_94 = arith.constant 0 : index
    %144 = vector.load %arg6[%c0_92, %c0_93, %c0_94] : memref<3x256x256xbf16, #tpu.memory_space<vmem>>, vector<1x256x256xbf16>
    %145 = vector.shape_cast %144 : vector<1x256x256xbf16> to vector<256x256xbf16>
    %cst_95 = arith.constant dense<0.000000e+00> : vector<8x256xf32>
    %146 = tpu.matmul %94, %145, %cst_95 {dimension_numbers = #tpu.dot_dimension_numbers<[1], [0], [0], [1], [0, 0, 1, 1], [], []>} : vector<8x256xbf16>, vector<256x256xbf16>, vector<8x256xf32> -> vector<8x256xf32>
    %c1_96 = arith.constant 1 : index
    %c0_97 = arith.constant 0 : index
    %c0_98 = arith.constant 0 : index
    %147 = vector.load %arg6[%c1_96, %c0_97, %c0_98] : memref<3x256x256xbf16, #tpu.memory_space<vmem>>, vector<1x256x256xbf16>
    %148 = vector.shape_cast %147 : vector<1x256x256xbf16> to vector<256x256xbf16>
    %cst_99 = arith.constant dense<0.000000e+00> : vector<8x256xf32>
    %149 = tpu.matmul %110, %148, %cst_99 {dimension_numbers = #tpu.dot_dimension_numbers<[1], [0], [0], [1], [0, 0, 1, 1], [], []>} : vector<8x256xbf16>, vector<256x256xbf16>, vector<8x256xf32> -> vector<8x256xf32>
    %150 = arith.addf %146, %149 : vector<8x256xf32>
    %c2_100 = arith.constant 2 : index
    %c0_101 = arith.constant 0 : index
    %c0_102 = arith.constant 0 : index
    %151 = vector.load %arg6[%c2_100, %c0_101, %c0_102] : memref<3x256x256xbf16, #tpu.memory_space<vmem>>, vector<1x256x256xbf16>
    %152 = vector.shape_cast %151 : vector<1x256x256xbf16> to vector<256x256xbf16>
    %cst_103 = arith.constant dense<0.000000e+00> : vector<8x256xf32>
    %153 = tpu.matmul %126, %152, %cst_103 {dimension_numbers = #tpu.dot_dimension_numbers<[1], [0], [0], [1], [0, 0, 1, 1], [], []>} : vector<8x256xbf16>, vector<256x256xbf16>, vector<8x256xf32> -> vector<8x256xf32>
    %154 = arith.addf %150, %153 : vector<8x256xf32>
    %155 = vector.broadcast %127 : vector<1x256xf32> to vector<8x256xf32>
    %156 = arith.addf %154, %155 : vector<8x256xf32>
    %cst_104 = arith.constant 0.000000e+00 : f32
    %157 = vector.broadcast %cst_104 : f32 to vector<8x256xf32>
    %158 = arith.maximumf %156, %157 : vector<8x256xf32>
    %159 = arith.truncf %158 : vector<8x256xf32> to vector<8x256xbf16>
    %c0_105 = arith.constant 0 : index
    %c0_106 = arith.constant 0 : index
    %160 = vector.load %arg9[%c0_105, %c0_106] : memref<1x64xf32, #tpu.memory_space<vmem>>, vector<1x64xf32>
    %c0_107 = arith.constant 0 : index
    %c0_108 = arith.constant 0 : index
    %c0_109 = arith.constant 0 : index
    %161 = vector.load %arg8[%c0_107, %c0_108, %c0_109] : memref<2x256x64xbf16, #tpu.memory_space<vmem>>, vector<1x256x64xbf16>
    %162 = vector.shape_cast %161 : vector<1x256x64xbf16> to vector<256x64xbf16>
    %cst_110 = arith.constant dense<0.000000e+00> : vector<8x64xf32>
    %163 = tpu.matmul %143, %162, %cst_110 {dimension_numbers = #tpu.dot_dimension_numbers<[1], [0], [0], [1], [0, 0, 1, 1], [], []>} : vector<8x256xbf16>, vector<256x64xbf16>, vector<8x64xf32> -> vector<8x64xf32>
    %c1_111 = arith.constant 1 : index
    %c0_112 = arith.constant 0 : index
    %c0_113 = arith.constant 0 : index
    %164 = vector.load %arg8[%c1_111, %c0_112, %c0_113] : memref<2x256x64xbf16, #tpu.memory_space<vmem>>, vector<1x256x64xbf16>
    %165 = vector.shape_cast %164 : vector<1x256x64xbf16> to vector<256x64xbf16>
    %cst_114 = arith.constant dense<0.000000e+00> : vector<8x64xf32>
    %166 = tpu.matmul %159, %165, %cst_114 {dimension_numbers = #tpu.dot_dimension_numbers<[1], [0], [0], [1], [0, 0, 1, 1], [], []>} : vector<8x256xbf16>, vector<256x64xbf16>, vector<8x64xf32> -> vector<8x64xf32>
    %167 = arith.addf %163, %166 : vector<8x64xf32>
    %168 = vector.broadcast %160 : vector<1x64xf32> to vector<8x64xf32>
    %169 = arith.addf %167, %168 : vector<8x64xf32>
    %cst_115 = arith.constant 0.000000e+00 : f32
    %170 = vector.broadcast %cst_115 : f32 to vector<8x64xf32>
    %171 = arith.maximumf %169, %170 : vector<8x64xf32>
    %c0_116 = arith.constant 0 : index
    %c0_117 = arith.constant 0 : index
    %172 = vector.load %arg10[%c0_116, %c0_117] : memref<64x128xf32, #tpu.memory_space<vmem>>, vector<64x128xf32>
    %cst_118 = arith.constant dense<0.000000e+00> : vector<8x128xf32>
    %173 = tpu.matmul %171, %172, %cst_118 {dimension_numbers = #tpu.dot_dimension_numbers<[1], [0], [0], [1], [0, 0, 1, 1], [], []>} : vector<8x64xf32>, vector<64x128xf32>, vector<8x128xf32> -> vector<8x128xf32>
    %c0_119 = arith.constant 0 : index
    %c0_120 = arith.constant 0 : index
    %174 = vector.load %arg11[%c0_119, %c0_120] : memref<1x128xf32, #tpu.memory_space<vmem>>, vector<1x128xf32>
    %175 = vector.broadcast %174 : vector<1x128xf32> to vector<8x128xf32>
    %176 = arith.addf %173, %175 : vector<8x128xf32>
    %cst_121 = arith.constant dense<0xFF800000> : vector<8xf32>
    %177 = vector.multi_reduction <maximumf>, %176, %cst_121 [1] : vector<8x128xf32> to vector<8xf32>
    %178 = vector.shape_cast %177 : vector<8xf32> to vector<8x1xf32>
    %179 = vector.broadcast %178 : vector<8x1xf32> to vector<8x128xf32>
    %180 = arith.subf %176, %179 : vector<8x128xf32>
    %181 = math.exp %180 : vector<8x128xf32>
    %cst_122 = arith.constant dense<0.000000e+00> : vector<8xf32>
    %182 = vector.multi_reduction <add>, %181, %cst_122 [1] : vector<8x128xf32> to vector<8xf32>
    %183 = vector.shape_cast %182 : vector<8xf32> to vector<8x1xf32>
    %184 = math.log %183 : vector<8x1xf32>
    %185 = vector.broadcast %184 : vector<8x1xf32> to vector<8x128xf32>
    %186 = arith.subf %180, %185 : vector<8x128xf32>
    %c0_123 = arith.constant 0 : index
    %c0_124 = arith.constant 0 : index
    %187 = vector.load %arg12[%c0_123, %c0_124] : memref<8x128xf32, #tpu.memory_space<vmem>>, vector<8x128xf32>
    tpu.vector_store %arg12[%c0_123, %c0_124], %186 {strides = array<i32>} : memref<8x128xf32, #tpu.memory_space<vmem>>, vector<8x128xf32>,
    return
  }
  func.func @transform_0(%arg0: i32) -> (i32, i32) {
    %c0_i32 = arith.constant 0 : i32
    %c0_i32_0 = arith.constant 0 : i32
    return %arg0, %c0_i32 : i32, i32
  }
  func.func @transform_1(%arg0: i32) -> (i32, i32) {
    %c0_i32 = arith.constant 0 : i32
    %c0_i32_0 = arith.constant 0 : i32
    %c0_i32_1 = arith.constant 0 : i32
    return %c0_i32, %c0_i32_0 : i32, i32
  }
  func.func @transform_2(%arg0: i32) -> (i32, i32) {
    %c0_i32 = arith.constant 0 : i32
    %c0_i32_0 = arith.constant 0 : i32
    %c0_i32_1 = arith.constant 0 : i32
    return %c0_i32, %c0_i32_0 : i32, i32
  }
  func.func @transform_3(%arg0: i32) -> (i32, i32, i32) {
    %c0_i32 = arith.constant 0 : i32
    %c0_i32_0 = arith.constant 0 : i32
    %c0_i32_1 = arith.constant 0 : i32
    %c0_i32_2 = arith.constant 0 : i32
    return %c0_i32, %c0_i32_0, %c0_i32_1 : i32, i32, i32
  }
  func.func @transform_4(%arg0: i32) -> (i32, i32) {
    %c0_i32 = arith.constant 0 : i32
    %c0_i32_0 = arith.constant 0 : i32
    %c0_i32_1 = arith.constant 0 : i32
    return %c0_i32, %c0_i32_0 : i32, i32
  }
  func.func @transform_5(%arg0: i32) -> (i32, i32, i32) {
    %c0_i32 = arith.constant 0 : i32
    %c0_i32_0 = arith.constant 0 : i32
    %c0_i32_1 = arith.constant 0 : i32
    %c0_i32_2 = arith.constant 0 : i32
    return %c0_i32, %c0_i32_0, %c0_i32_1 : i32, i32, i32
  }
  func.func @transform_6(%arg0: i32) -> (i32, i32) {
    %c0_i32 = arith.constant 0 : i32
    %c0_i32_0 = arith.constant 0 : i32
    %c0_i32_1 = arith.constant 0 : i32
    return %c0_i32, %c0_i32_0 : i32, i32
  }
  func.func @transform_7(%arg0: i32) -> (i32, i32, i32) {
    %c0_i32 = arith.constant 0 : i32
    %c0_i32_0 = arith.constant 0 : i32
    %c0_i32_1 = arith.constant 0 : i32
    %c0_i32_2 = arith.constant 0 : i32
    return %c0_i32, %c0_i32_0, %c0_i32_1 : i32, i32, i32
  }
  func.func @transform_8(%arg0: i32) -> (i32, i32) {
    %c0_i32 = arith.constant 0 : i32
    %c0_i32_0 = arith.constant 0 : i32
    %c0_i32_1 = arith.constant 0 : i32
    return %c0_i32, %c0_i32_0 : i32, i32
  }
  func.func @transform_9(%arg0: i32) -> (i32, i32) {
    %c0_i32 = arith.constant 0 : i32
    %c0_i32_0 = arith.constant 0 : i32
    %c0_i32_1 = arith.constant 0 : i32
    return %c0_i32, %c0_i32_0 : i32, i32
  }
  func.func @transform_10(%arg0: i32) -> (i32, i32) {
    %c0_i32 = arith.constant 0 : i32
    %c0_i32_0 = arith.constant 0 : i32
    %c0_i32_1 = arith.constant 0 : i32
    return %c0_i32, %c0_i32_0 : i32, i32
  }
  func.func @transform_11(%arg0: i32) -> (i32, i32) {
    %c0_i32 = arith.constant 0 : i32
    %c0_i32_0 = arith.constant 0 : i32
    return %arg0, %c0_i32 : i32, i32
  }
}

</mosaic_0001>

<bundles_post_ra>
// kernel: tpu_custom_call.1
= control target key start
LH: loop header
LB: loop body
LE: loop exit
PB: predicated region body
PF: predicated region fallthrough
CT: control target
= control target key end

     0   :  { %16 = vsyncpa [#allocation3], 0  ;;  %s5996_s0 = inlined_call_operand.vmem [shape: bf16[8,60], index: 0, kind: input, shape index: {}]   ;;  %s5997_s1 = inlined_call_operand.hbm [shape: bf16[60,3328], index: 1, kind: input, shape index: {}]   ;;  %s5998_s2 = inlined_call_operand.vmem [shape: f32[1,256], index: 2, kind: input, shape index: {}]   ;;  %s5999_s3 = inlined_call_operand.hbm [shape: bf16[3,256,256], index: 3, kind: input, shape index: {}]   ;;  %s6000_s4 = inlined_call_operand.vmem [shape: f32[1,256], index: 4, kind: input, shape index: {}]   ;;  %s6001_s5 = inlined_call_operand.hbm [shape: bf16[3,256,256], index: 5, kind: input, shape index: {}]   ;;  %s6002_s6 = inlined_call_operand.vmem [shape: f32[1,256], index: 6, kind: input, shape index: {}]   ;;  %s6003_s7 = inlined_call_operand.vmem [shape: bf16[2,256,64], index: 7, kind: input, shape index: {}]   ;;  %s6004_s8 = inlined_call_operand.vmem [shape: f32[1,64], index: 8, kind: input, shape index: {}]   ;;  %s6005_s9 = inlined_call_operand.vmem [shape: f32[64,128], index: 9, kind: input, shape index: {}]   ;;  %s6006_s10 = inlined_call_operand.vmem [shape: f32[1,128], index: 10, kind: input, shape index: {}]   ;;  %s6007_s11 = inlined_call_operand.hbm [shape: f32[8,128], index: 11, kind: output, shape index: {}]  }
   0x1   :  { %17 = vsyncpa [#allocation6], 0 }
   0x2   :  { %18 = vsyncpa [#allocation4], 0  ;;  %s4374_s17 = smov [#allocation5]   ;;  %s4280_s21 = scalar_lea.hbm %s5999_s3, 12288 }
   0x3   :  { %s40_s18 = sshll.u32 %s4374_s17, 4  ;;  %p4281_p0 = scmp.ne.s32.totalorder %s5999_s3, %s4280_s21  ;;  %s41_s18 = int_to_ptr.vmem [resolvable:$true] %s40_s18 }
   0x4   :  { %p4284_p1 = scmp.lt.u32.totalorder %s4280_s21, %s5999_s3 }
   0x6   :  { %p4286_p2 = pnand %p4284_p1, %p4281_p0 }
   0x8   :  { %4289 = shalt.err (!%p4286_p2)
}
   0x9   :  { %s4290_s26 = scalar_lea.vmem %s41_s18, 12288  ;;  %p4295_p4 = scmp.lt.s32.totalorder %s41_s18, %s41_s18 }
   0xa   :  { %p4291_p3 = scmp.ne.s32.totalorder %s41_s18, %s4290_s26  ;;  %p4296_p5 = scmp.lt.s32.totalorder %s4290_s26, %s4290_s26 }
   0xc   :  { %p4297_p6 = por %p4296_p5, %p4295_p4 }
   0xe   :  { %p4298_p7 = pnand %p4297_p6, %p4291_p3 }
  0x10   :  { %4301 = shalt.err (!%p4298_p7)
}
  0x11   :  { %s4375_s27 = smov 128   ;;  %s4376_s28 = smov 8  }
  0x12   :  { %46 = dma.hbm_to_vmem [thread:$0]  %s5999_s3, 12288, %s41_s18, [#allocation6], %s4375_s27, %s4375_s27, %s4376_s28  }
  0x13   :  { %s4377_s12 = smov [#allocation2]   ;;  %s4302_s16 = scalar_lea.hbm %s5997_s1, 13312 }
  0x14   :  { %s26_s13 = sshll.u32 %s4377_s12, 4  ;;  %p4303_p8 = scmp.ne.s32.totalorder %s5997_s1, %s4302_s16  ;;  %s27_s13 = int_to_ptr.vmem [resolvable:$true] %s26_s13 }
  0x15   :  { %p4306_p9 = scmp.lt.u32.totalorder %s4302_s16, %s5997_s1 }
  0x17   :  { %p4308_p10 = pnand %p4306_p9, %p4303_p8 }
  0x19   :  { %4311 = shalt.err (!%p4308_p10)
}
  0x1a   :  { %s4312_s22 = scalar_lea.vmem %s27_s13, 13312  ;;  %p4317_p12 = scmp.lt.s32.totalorder %s27_s13, %s27_s13 }
  0x1b   :  { %p4313_p11 = scmp.ne.s32.totalorder %s27_s13, %s4312_s22  ;;  %p4318_p13 = scmp.lt.s32.totalorder %s4312_s22, %s4312_s22 }
  0x1d   :  { %p4319_p0 = por %p4318_p13, %p4317_p12 }
  0x1f   :  { %p4320_p1 = pnand %p4319_p0, %p4313_p11 }
  0x21   :  { %4323 = shalt.err (!%p4320_p1)
}
  0x22   :  { %s4378_s3 = smov 1664   ;;  %s4379_s18 = smov 104  }
  0x23   :  { %32 = dma.hbm_to_vmem [thread:$0]  %s5997_s1, 13312, %s27_s13, [#allocation3], %s4378_s3, %s4378_s3, %s4379_s18  }
  0x24   :  { %s4380_s25 = smov [#allocation7]   ;;  %s4324_s12 = scalar_lea.hbm %s6001_s5, 12288 }
  0x25   :  { %s54_s26 = sshll.u32 %s4380_s25, 4  ;;  %p4325_p2 = scmp.ne.s32.totalorder %s6001_s5, %s4324_s12  ;;  %s55_s26 = int_to_ptr.vmem [resolvable:$true] %s54_s26 }
  0x26   :  { %p4328_p3 = scmp.lt.u32.totalorder %s4324_s12, %s6001_s5 }
  0x28   :  { %p4330_p4 = pnand %p4328_p3, %p4325_p2 }
  0x2a   :  { %4333 = shalt.err (!%p4330_p4)
}
  0x2b   :  { %s4334_s19 = scalar_lea.vmem %s55_s26, 12288  ;;  %p4339_p6 = scmp.lt.s32.totalorder %s55_s26, %s55_s26 }
  0x2c   :  { %p4335_p5 = scmp.ne.s32.totalorder %s55_s26, %s4334_s19  ;;  %p4340_p7 = scmp.lt.s32.totalorder %s4334_s19, %s4334_s19 }
  0x2e   :  { %p4341_p8 = por %p4340_p7, %p4339_p6 }
  0x30   :  { %p4342_p9 = pnand %p4341_p8, %p4335_p5 }
  0x32   :  { %4345 = shalt.err (!%p4342_p9)
}
  0x33   :  { %60 = dma.hbm_to_vmem [thread:$0]  %s6001_s5, 12288, %s55_s26, [#allocation6], %s4375_s27, %s4375_s27, %s4376_s28  }
  0x34   :  { %4368 = dma.done.wait [#allocation3], 13312  }
  0x35   :  { %4369 = vsyncadd [#allocation3], 4294953984 }
  0x36   :  { %4370 = dma.done.wait [#allocation6], 24576  }
  0x37   :  { %4371 = vsyncadd [#allocation6], 4294942720  ;;  %v4381_v0 = vmov 0   ;;  %v3776_v1 = vld [vmem:[#allocation2 + $0x4] ss:$104 sps:$4 sm:$0xff]   ;;  %vm408_vm0 = vcmask 1045504  }
  0x38   :  { %483 = vmatprep.mubr.bf16.mxu0 %v4381_v0  ;;  %524 = vmatprep.mubr.bf16.mxu1 %v4381_v0  ;;  %v3778_v2 = vld [vmem:[#allocation2 + $0x14] ss:$104 sps:$4 sm:$0xff]   ;;  %v3780_v3 = vld [vmem:[#allocation2] ss:$104 sps:$4 sm:$0xff]   ;;  %v3781_v4 = vld [vmem:[#allocation2 + $0x10] ss:$104 sps:$4 sm:$0xff]  }
  0x39   :  { %451 = vmatprep.subr.bf16.mxu0 %v3776_v1  ;;  %492 = vmatprep.subr.bf16.mxu1 %v3778_v2  ;;  %v3782_v5 = vld [vmem:[#allocation2 + $0xd4] ss:$104 sps:$4 sm:$0xff]   ;;  %v3784_v6 = vld [vmem:[#allocation2 + $0xe4] ss:$104 sps:$4 sm:$0xff]   ;;  %v3786_v7 = vld [vmem:[#allocation2 + $0xd0] ss:$104 sps:$4 sm:$0xff]  }
  0x3a   :  { %452 = vmatpush1.bf16.msra.mxu0 %v3780_v3  ;;  %493 = vmatpush1.bf16.msra.mxu1 %v3781_v4  ;;  %v3787_v8 = vld [vmem:[#allocation2 + $0xe0] ss:$104 sps:$4 sm:$0xff]   ;;  %v3788_v9 = vld [vmem:[#allocation2 + $0x1a4] ss:$104 sps:$4 sm:$0xff]   ;;  %v3790_v10 = vld [vmem:[#allocation2 + $0x1b4] ss:$104 sps:$4 sm:$0xff]  }
  0x3b   :  { %453 = vmatprep.subr.bf16.mxu0 %v3782_v5  ;;  %494 = vmatprep.subr.bf16.mxu1 %v3784_v6  ;;  %v3792_v11 = vld [vmem:[#allocation2 + $0x1a0] ss:$104 sps:$4 sm:$0xff]   ;;  %v3793_v12 = vld [vmem:[#allocation2 + $0x1b0] ss:$104 sps:$4 sm:$0xff]   ;;  %v3802_v19 = vld [vmem:[#allocation2 + $0x24] ss:$104 sps:$4 sm:$0xff]  }
  0x3c   :  { %v3794_v13 = vld [vmem:[#allocation2 + $0x274] ss:$104 sps:$4 sm:$0x3f]   ;;  %v3796_v14 = vld [vmem:[#allocation2 + $0x284] ss:$104 sps:$4 sm:$0x3f]  }
  0x3d   :  { %v3798_v15 = vld [vmem:[#allocation2 + $0x270] ss:$104 sps:$4 sm:$0x3f]   ;;  %v3799_v16 = vld [vmem:[#allocation2 + $0x280] ss:$104 sps:$4 sm:$0x3f]  }
  0x3e   :  { %454 = vmatpush1.bf16.msra.mxu0 %v3786_v7  ;;  %495 = vmatpush1.bf16.msra.mxu1 %v3787_v8  ;;  %v410_v17 = vsel %vm408_vm0, %v3798_v15, 0  ;;  %v416_v18 = vsel %vm408_vm0, %v3799_v16, 0  ;;  %v4497_v20 = vld [vmem:[%s5996_s0] sm:$0xf]  ;;  %vm404_vm1 = vcmask 490496   ;;  %vm4383_vm2 = vmmov 0  }
  0x3f   :  { %455 = vmatprep.subr.bf16.mxu0 %v3788_v9  ;;  %496 = vmatprep.subr.bf16.mxu1 %v3790_v10  ;;  %v3800_v21 = vld [vmem:[#allocation2 + $0x20] ss:$104 sps:$4 sm:$0xff]   ;;  %v3805_v22 = vld [vmem:[#allocation2 + $0xf4] ss:$104 sps:$4 sm:$0xff]   ;;  %v3812_v23 = vld [vmem:[#allocation2 + $0x30] ss:$104 sps:$4 sm:$0xff]  }
  0x40   :  { %v3814_v24 = vld [vmem:[#allocation2 + $0x34] ss:$104 sps:$4 sm:$0xff]   ;;  %v3817_v25 = vld [vmem:[#allocation2 + $0x104] ss:$104 sps:$4 sm:$0xff]   ;;  %v3803_v26 = vld [vmem:[#allocation2 + $0xf0] ss:$104 sps:$4 sm:$0xff]  }
  0x41   :  { %v3808_v27 = vld [vmem:[#allocation2 + $0x1c4] ss:$104 sps:$4 sm:$0xff]   ;;  %v3815_v28 = vld [vmem:[#allocation2 + $0x100] ss:$104 sps:$4 sm:$0xff]   ;;  %v3820_v29 = vld [vmem:[#allocation2 + $0x1d4] ss:$104 sps:$4 sm:$0xff]  }
  0x42   :  { %456 = vmatpush1.bf16.msra.mxu0 %v3792_v11  ;;  %497 = vmatpush1.bf16.msra.mxu1 %v3793_v12  ;;  %v3806_v30 = vld [vmem:[#allocation2 + $0x1c0] ss:$104 sps:$4 sm:$0xff]   ;;  %v3809_v31 = vld [vmem:[#allocation2 + $0x294] ss:$104 sps:$4 sm:$0x3f]   ;;  %vm3250_vm3 = vcmask 523264  }
  0x43   :  { %3407 = vmatprep.subr.msk.bf16.mxu0 %vm408_vm0, %v3794_v13  ;;  %3409 = vmatprep.subr.msk.bf16.mxu1 %vm408_vm0, %v3796_v14  ;;  %v3811_v32 = vld [vmem:[#allocation2 + $0x290] ss:$104 sps:$4 sm:$0x3f]   ;;  %v3821_v34 = vld [vmem:[#allocation2 + $0x2a4] ss:$104 sps:$4 sm:$0x3f]  }
  0x44   :  { %v3818_v33 = vld [vmem:[#allocation2 + $0x1d0] ss:$104 sps:$4 sm:$0xff]   ;;  %v3826_v35 = vld [vmem:[#allocation2 + $0x2a0] ss:$104 sps:$4 sm:$0x3f]   ;;  %v422_v36 = vsel %vm408_vm0, %v3811_v32, 0 }
  0x45   :  { %v3825_v37 = vld [vmem:[#allocation2 + $0x44] ss:$104 sps:$4 sm:$0xff]   ;;  %v428_v38 = vsel %vm408_vm0, %v3826_v35, 0  ;;  %v3838_v39 = vld [vmem:[#allocation2 + $0x54] ss:$104 sps:$4 sm:$0xff]  }
  0x46   :  { %458 = vmatpush1.bf16.msra.mxu0 %v410_v17  ;;  %499 = vmatpush1.bf16.msra.mxu1 %v416_v18  ;;  %v3823_v40 = vld [vmem:[#allocation2 + $0x40] ss:$104 sps:$4 sm:$0xff]   ;;  %v3829_v41 = vld [vmem:[#allocation2 + $0x114] ss:$104 sps:$4 sm:$0xff]   ;;  %v3836_v42 = vld [vmem:[#allocation2 + $0x50] ss:$104 sps:$4 sm:$0xff]  }
  0x47   :  { %533 = vmatprep.subr.bf16.mxu0 %v3802_v19  ;;  %574 = vmatprep.subr.bf16.mxu1 %v3814_v24  ;;  %v3844_v43 = vld [vmem:[#allocation2 + $0x124] ss:$104 sps:$4 sm:$0xff]   ;;  %v3827_v44 = vld [vmem:[#allocation2 + $0x110] ss:$104 sps:$4 sm:$0xff]   ;;  %v3830_v46 = vld [vmem:[#allocation2 + $0x1e0] ss:$104 sps:$4 sm:$0xff]  }
  0x48   :  { %v3832_v45 = vld [vmem:[#allocation2 + $0x1e4] ss:$104 sps:$4 sm:$0xff]   ;;  %v3842_v47 = vld [vmem:[#allocation2 + $0x120] ss:$104 sps:$4 sm:$0xff]   ;;  %v3850_v48 = vld [vmem:[#allocation2 + $0x1f4] ss:$104 sps:$4 sm:$0xff]  }
  0x49   :  { %3408 = vmatmul.mubr.msk.bf16.vlgmr.msra.gmra.mrb[0].mxu0 %vm404_vm1, %v4497_v20  ;;  %3410 = vmatmul.mubr.msk.bf16.vlgmr.msra.gmra.mrb[0].mxu1 %vm404_vm1, %v4497_v20  ;;  %v3833_v49 = vld [vmem:[#allocation2 + $0x2b4] ss:$104 sps:$4 sm:$0x3f]   ;;  %v3835_v50 = vld [vmem:[#allocation2 + $0x2b0] ss:$104 sps:$4 sm:$0x3f]  }
  0x4a   :  { %534 = vmatpush1.bf16.msra.mxu0 %v3800_v21  ;;  %565 = vmatprep.mubr.bf16.mxu0 %v4381_v0  ;;  %v3848_v51 = vld [vmem:[#allocation2 + $0x1f0] ss:$104 sps:$4 sm:$0xff]   ;;  %v3854_v52 = vld [vmem:[#allocation2 + $0x2c4] ss:$104 sps:$4 sm:$0x3f]   ;;  %v434_v54 = vsel %vm408_vm0, %v3835_v50, 0 }
  0x4b   :  { %535 = vmatprep.subr.bf16.mxu0 %v3805_v22  ;;  %575 = vmatpush1.bf16.msra.mxu1 %v3812_v23  ;;  %v3856_v53 = vld [vmem:[#allocation2 + $0x2c0] ss:$104 sps:$4 sm:$0x3f]   ;;  %v3841_v55 = vld [vmem:[#allocation2 + $0x64] ss:$104 sps:$4 sm:$0xff]  }
  0x4c   :  { %606 = vmatprep.mubr.bf16.mxu1 %v4381_v0  ;;  %576 = vmatprep.subr.bf16.mxu1 %v3817_v25  ;;  %v440_v56 = vsel %vm408_vm0, %v3856_v53, 0  ;;  %v4519_v57 = vld [vmem:[#allocation5 + $0x104] ss:$8 sps:$4 sm:$0xff]   ;;  %v3839_v58 = vld [vmem:[#allocation2 + $0x60] ss:$104 sps:$4 sm:$0xff]  }
  0x4d   :  { %v3847_v59 = vld [vmem:[#allocation2 + $0x134] ss:$104 sps:$4 sm:$0xff]   ;;  %v4521_v60 = vld [vmem:[#allocation5 + $0x100] ss:$8 sps:$4 sm:$0xff]   ;;  %v3845_v62 = vld [vmem:[#allocation2 + $0x130] ss:$104 sps:$4 sm:$0xff]  }
  0x4e   :  { %536 = vmatpush1.bf16.msra.mxu0 %v3803_v26  ;;  %v4526_v61 = vld [vmem:[#allocation5 + $0x114] ss:$8 sps:$4 sm:$0xff]   ;;  %v3853_v63 = vld [vmem:[#allocation2 + $0x204] ss:$104 sps:$4 sm:$0xff]   ;;  %v3851_v1 = vld [vmem:[#allocation2 + $0x200] ss:$104 sps:$4 sm:$0xff]  }
  0x4f   :  { %537 = vmatprep.subr.bf16.mxu0 %v3808_v27  ;;  %577 = vmatpush1.bf16.msra.mxu1 %v3815_v28  ;;  %v4532_v2 = vld [vmem:[#allocation5 + $0x110] ss:$8 sps:$4 sm:$0xff]   ;;  %v4535_v3 = vld [vmem:[#allocation5 + $0x124] ss:$8 sps:$4 sm:$0xff]   ;;  %v4541_v6 = vld [vmem:[#allocation5 + $0x134] ss:$8 sps:$4 sm:$0xff]  }
  0x50   :  { %578 = vmatprep.subr.bf16.mxu1 %v3820_v29  ;;  %v3857_v4 = vld [vmem:[#allocation2 + $0x2d4] ss:$104 sps:$4 sm:$0x3f]   ;;  %v3859_v5 = vld [vmem:[#allocation2 + $0x2d0] ss:$104 sps:$4 sm:$0x3f]  }
  0x51   :  { %v446_v7 = vsel %vm408_vm0, %v3859_v5, 0  ;;  %v4545_v8 = vld [vmem:[#allocation5 + $0x4] ss:$8 sps:$4 sm:$0xff]   ;;  %v4548_v9 = vld [vmem:[#allocation5 + $0x130] ss:$8 sps:$4 sm:$0xff]  }
  0x52   :  { %538 = vmatpush1.bf16.msra.mxu0 %v3806_v30  ;;  %v4551_v10 = vld [vmem:[#allocation5 + $0x144] ss:$8 sps:$4 sm:$0xff]   ;;  %v4553_v11 = vld [vmem:[#allocation5] ss:$8 sps:$4 sm:$0xff]   ;;  %v4556_v12 = vld [vmem:[#allocation5 + $0x14] ss:$8 sps:$4 sm:$0xff]  }
  0x53   :  { %3411 = vmatprep.subr.msk.bf16.mxu0 %vm408_vm0, %v3809_v31  ;;  %579 = vmatpush1.bf16.msra.mxu1 %v3818_v33  ;;  %v4559_v13 = vld [vmem:[#allocation5 + $0x140] ss:$8 sps:$4 sm:$0xff]   ;;  %v4564_v14 = vld [vmem:[#allocation5 + $0x154] ss:$8 sps:$4 sm:$0xff]   ;;  %v4567_v15 = vld [vmem:[#allocation5 + $0x10] ss:$8 sps:$4 sm:$0xff]  }
  0x54   :  { %3413 = vmatprep.subr.msk.bf16.mxu1 %vm408_vm0, %v3821_v34  ;;  %v4570_v16 = vld [vmem:[#allocation5 + $0x24] ss:$8 sps:$4 sm:$0xff]   ;;  %v4573_v17 = vld [vmem:[#allocation5 + $0x150] ss:$8 sps:$4 sm:$0xff]   ;;  %v4579_v19 = vld [vmem:[#allocation5 + $0x20] ss:$8 sps:$4 sm:$0xff]  }
  0x55   :  { %v4576_v18 = vld [vmem:[#allocation5 + $0x164] ss:$8 sps:$4 sm:$0xff]   ;;  %v4584_v21 = vld [vmem:[#allocation5 + $0x30] ss:$8 sps:$4 sm:$0xff]   ;;  %v4587_v22 = vld [vmem:[#allocation5 + $0x160] ss:$8 sps:$4 sm:$0xff]  }
  0x56   :  { %540 = vmatpush1.bf16.msra.mxu0 %v422_v36  ;;  %v4589_v23 = vld [vmem:[#allocation5 + $0x44] ss:$8 sps:$4 sm:$0xff]   ;;  %v4592_v24 = vld [vmem:[#allocation5 + $0x174] ss:$8 sps:$4 sm:$0xff]   ;;  %v4595_v25 = vld [vmem:[#allocation5 + $0x170] ss:$8 sps:$4 sm:$0xff]  }
  0x57   :  { %615 = vmatprep.subr.bf16.mxu0 %v3825_v37  ;;  %581 = vmatpush1.bf16.msra.mxu1 %v428_v38  ;;  %v4598_v26 = vld [vmem:[#allocation5 + $0x184] ss:$8 sps:$4 sm:$0xff]   ;;  %v4600_v27 = vld [vmem:[#allocation5 + $0x40] ss:$8 sps:$4 sm:$0xff]   ;;  %v4603_v28 = vld [vmem:[#allocation5 + $0x54] ss:$8 sps:$4 sm:$0xff]  }
  0x58   :  { %656 = vmatprep.subr.bf16.mxu1 %v3838_v39  ;;  %6184 = vst [vmem:[#allocation12_spill] sm:$0xff] %v4603_v28  ;;  %v4607_v29 = vld [vmem:[#allocation5 + $0x180] ss:$8 sps:$4 sm:$0xff]   ;;  %v4610_v30 = vld [vmem:[#allocation5 + $0x194] ss:$8 sps:$4 sm:$0xff]  }
  0x59   :  { %3412 = vmatmul.mubr.msk.bf16.vlgmr.msra.gmra.mrb[4].mxu0 %vm404_vm1, %v4497_v20  ;;  %v4612_v31 = vld [vmem:[#allocation5 + $0x50] ss:$8 sps:$4 sm:$0xff]   ;;  %v4615_v32 = vld [vmem:[#allocation5 + $0x64] ss:$8 sps:$4 sm:$0xff]   ;;  %v4624_v35 = vld [vmem:[#allocation5 + $0x60] ss:$8 sps:$4 sm:$0xff]  }
  0x5a   :  { %616 = vmatpush1.bf16.msra.mxu0 %v3823_v40  ;;  %647 = vmatprep.mubr.bf16.mxu0 %v4381_v0  ;;  %6185 = vst [vmem:[#allocation13_spill] sm:$0xff] %v4612_v31  ;;  %6186 = vst [vmem:[#allocation14_spill] sm:$0xff] %v4615_v32  ;;  %v4619_v33 = vld [vmem:[#allocation5 + $0x190] ss:$8 sps:$4 sm:$0xff]   ;;  %v4622_v34 = vld [vmem:[#allocation5 + $0x1a4] ss:$8 sps:$4 sm:$0xff]  }
  0x5b   :  { %3414 = vmatmul.mubr.msk.bf16.vlgmr.msra.gmra.mrb[4].mxu1 %vm404_vm1, %v4497_v20  ;;  %617 = vmatprep.subr.bf16.mxu0 %v3829_v41  ;;  %6187 = vst [vmem:[#allocation15_spill] sm:$0xff] %v4624_v35  ;;  %v4627_v36 = vld [vmem:[#allocation5 + $0x74] ss:$8 sps:$4 sm:$0xff]   ;;  %v4631_v37 = vld [vmem:[#allocation5 + $0x1a0] ss:$8 sps:$4 sm:$0xff]  }
  0x5c   :  { %657 = vmatpush1.bf16.msra.mxu1 %v3836_v42  ;;  %688 = vmatprep.mubr.bf16.mxu1 %v4381_v0  ;;  %6188 = vst [vmem:[#allocation16_spill] sm:$0xff] %v4627_v36  ;;  %v4634_v38 = vld [vmem:[#allocation5 + $0x1b4] ss:$8 sps:$4 sm:$0xff]   ;;  %v4636_v39 = vld [vmem:[#allocation5 + $0x70] ss:$8 sps:$4 sm:$0xff]  }
  0x5d   :  { %658 = vmatprep.subr.bf16.mxu1 %v3844_v43  ;;  %6189 = vst [vmem:[#allocation17_spill] sm:$0xff] %v4636_v39  ;;  %v4639_v40 = vld [vmem:[#allocation5 + $0x84] ss:$8 sps:$4 sm:$0xff]   ;;  %v4643_v41 = vld [vmem:[#allocation5 + $0x1b0] ss:$8 sps:$4 sm:$0xff]  }
  0x5e   :  { %618 = vmatpush1.bf16.msra.mxu0 %v3827_v44  ;;  %6190 = vst [vmem:[#allocation18_spill] sm:$0xff] %v4639_v40  ;;  %v4646_v42 = vld [vmem:[#allocation5 + $0x1c4] ss:$8 sps:$4 sm:$0xff]   ;;  %v4648_v43 = vld [vmem:[#allocation5 + $0x80] ss:$8 sps:$4 sm:$0xff]  }
  0x5f   :  { %619 = vmatprep.subr.bf16.mxu0 %v3832_v45  ;;  %6191 = vst [vmem:[#allocation19_spill] sm:$0xff] %v4648_v43  ;;  %v4651_v44 = vld [vmem:[#allocation5 + $0x94] ss:$8 sps:$4 sm:$0xff]   ;;  %v4655_v45 = vld [vmem:[#allocation5 + $0x1c0] ss:$8 sps:$4 sm:$0xff]  }
  0x60   :  { %659 = vmatpush1.bf16.msra.mxu1 %v3842_v47  ;;  %6192 = vst [vmem:[#allocation20_spill] sm:$0xff] %v4651_v44  ;;  %v4663_v47 = vld [vmem:[#allocation5 + $0x90] ss:$8 sps:$4 sm:$0xff]   ;;  %v4670_v50 = vld [vmem:[#allocation5 + $0x1e4] ss:$8 sps:$4 sm:$0xff]  }
  0x61   :  { %660 = vmatprep.subr.bf16.mxu1 %v3850_v48  ;;  %6193 = vst [vmem:[#allocation21_spill] sm:$0xff] %v4663_v47  ;;  %v4665_v48 = vld [vmem:[#allocation5 + $0xa4] ss:$8 sps:$4 sm:$0xff]   ;;  %v4680_v53 = vld [vmem:[#allocation5 + $0x1e0] ss:$8 sps:$4 sm:$0xff]  }
  0x62   :  { %620 = vmatpush1.bf16.msra.mxu0 %v3830_v46  ;;  %v4658_v46 = vld [vmem:[#allocation5 + $0x1d4] ss:$8 sps:$4 sm:$0xff]   ;;  %6194 = vst [vmem:[#allocation22_spill] sm:$0xff] %v4665_v48  ;;  %6198 = vst [vmem:[#allocation26_spill] sm:$0xff] %v4680_v53  ;;  %v4713_v5 = vld [vmem:[#allocation5 + $0xe0] ss:$8 sps:$4 sm:$0xff]  }
  0x63   :  { %3415 = vmatprep.subr.msk.bf16.mxu0 %vm408_vm0, %v3833_v49  ;;  %v4668_v49 = vld [vmem:[#allocation5 + $0x1d0] ss:$8 sps:$4 sm:$0xff]   ;;  %6205 = vst [vmem:[#allocation33_spill] sm:$0xff] %v4713_v5 }
  0x64   :  { %661 = vmatpush1.bf16.msra.mxu1 %v3848_v51  ;;  %6195 = vst [vmem:[#allocation23_spill] sm:$0xff] %v4668_v49  ;;  %v4675_v51 = vld [vmem:[#allocation5 + $0xa0] ss:$8 sps:$4 sm:$0xff]  }
  0x65   :  { %3417 = vmatprep.subr.msk.bf16.mxu1 %vm408_vm0, %v3854_v52  ;;  %6196 = vst [vmem:[#allocation24_spill] sm:$0xff] %v4675_v51  ;;  %v4677_v52 = vld [vmem:[#allocation5 + $0xb4] ss:$8 sps:$4 sm:$0xff]  }
  0x66   :  { %622 = vmatpush1.bf16.msra.mxu0 %v434_v54  ;;  %6197 = vst [vmem:[#allocation25_spill] sm:$0xff] %v4677_v52  ;;  %v4682_v54 = vld [vmem:[#allocation5 + $0x1f4] ss:$8 sps:$4 sm:$0xff]  }
  0x67   :  { %697 = vmatprep.subr.bf16.mxu0 %v3841_v55  ;;  %v4684_v55 = vld [vmem:[#allocation5 + $0xb0] ss:$8 sps:$4 sm:$0xff]  }
  0x68   :  { %663 = vmatpush1.bf16.msra.mxu1 %v440_v56  ;;  %6199 = vst [vmem:[#allocation27_spill] sm:$0xff] %v4684_v55  ;;  %v4687_v56 = vld [vmem:[#allocation5 + $0xc4] ss:$8 sps:$4 sm:$0xff]  }
  0x69   :  { %3416 = vmatmul.mubr.msk.bf16.vlgmr.msra.gmra.mrb[8].mxu0 %vm404_vm1, %v4497_v20  ;;  %1018 = vmatprep.subr.bf16.mxu1 %v4519_v57  ;;  %6200 = vst [vmem:[#allocation28_spill] sm:$0xff] %v4687_v56 }
  0x6a   :  { %698 = vmatpush1.bf16.msra.mxu0 %v3839_v58  ;;  %729 = vmatprep.mubr.bf16.mxu0 %v4381_v0  ;;  %v4538_v0 = vld [vmem:[#allocation5 + $0x120] ss:$8 sps:$4 sm:$0xff]   ;;  %v4691_v58 = vld [vmem:[#allocation5 + $0x1f0] ss:$8 sps:$4 sm:$0xff]  }
  0x6b   :  { %699 = vmatprep.subr.bf16.mxu0 %v3847_v59  ;;  %3418 = vmatmul.mubr.msk.bf16.vlgmr.msra.gmra.mrb[8].mxu1 %vm404_vm1, %v4497_v20  ;;  %v4694_v59 = vld [vmem:[#allocation5 + $0x204] ss:$8 sps:$4 sm:$0xff]  }
  0x6c   :  { %1019 = vmatpush1.bf16.msra.mxu1 %v4521_v60 }
  0x6d   :  { %1020 = vmatprep.subr.bf16.mxu1 %v4526_v61 }
  0x6e   :  { %700 = vmatpush1.bf16.msra.mxu0 %v3845_v62  ;;  %v4699_v62 = vld [vmem:[#allocation5 + $0xc0] ss:$8 sps:$4 sm:$0xff]  }
  0x6f   :  { %701 = vmatprep.subr.bf16.mxu0 %v3853_v63  ;;  %6201 = vst [vmem:[#allocation29_spill] sm:$0xff] %v4699_v62  ;;  %v4702_v63 = vld [vmem:[#allocation5 + $0xd4] ss:$8 sps:$4 sm:$0xff]  }
  0x70   :  { %1021 = vmatpush1.bf16.msra.mxu1 %v4532_v2  ;;  %6202 = vst [vmem:[#allocation30_spill] sm:$0xff] %v4702_v63 }
  0x71   :  { %1022 = vmatprep.subr.bf16.mxu1 %v4535_v3 }
  0x72   :  { %702 = vmatpush1.bf16.msra.mxu0 %v3851_v1  ;;  %v4707_v1 = vld [vmem:[#allocation5 + $0xd0] ss:$8 sps:$4 sm:$0xff]  }
  0x73   :  { %3419 = vmatprep.subr.msk.bf16.mxu0 %vm408_vm0, %v3857_v4  ;;  %6203 = vst [vmem:[#allocation31_spill] sm:$0xff] %v4707_v1  ;;  %v4710_v4 = vld [vmem:[#allocation5 + $0xe4] ss:$8 sps:$4 sm:$0xff]  }
  0x74   :  { %1023 = vmatpush1.bf16.msra.mxu1 %v4538_v0  ;;  %6204 = vst [vmem:[#allocation32_spill] sm:$0xff] %v4710_v4 }
  0x75   :  { %1024 = vmatprep.subr.bf16.mxu1 %v4541_v6 }
  0x76   :  { %704 = vmatpush1.bf16.msra.mxu0 %v446_v7  ;;  %v4716_v7 = vld [vmem:[#allocation5 + $0xf4] ss:$8 sps:$4 sm:$0xff]  }
  0x77   :  { %1219 = vmatprep.subr.bf16.mxu0 %v4545_v8  ;;  %6206 = vst [vmem:[#allocation34_spill] sm:$0xff] %v4716_v7 }
  0x78   :  { %1025 = vmatpush1.bf16.msra.mxu1 %v4548_v9 }
  0x79   :  { %3420 = vmatmul.mubr.msk.bf16.vlgmr.msra.gmra.mrb[12].mxu0 %vm404_vm1, %v4497_v20  ;;  %1026 = vmatprep.subr.bf16.mxu1 %v4551_v10  ;;  %v4582_v20 = vld [vmem:[#allocation5 + $0x34] ss:$8 sps:$4 sm:$0xff]  }
  0x7a   :  { %1220 = vmatpush1.bf16.msra.mxu0 %v4553_v11 }
  0x7b   :  { %1221 = vmatprep.subr.bf16.mxu0 %v4556_v12 }
  0x7c   :  { %1027 = vmatpush1.bf16.msra.mxu1 %v4559_v13 }
  0x7d   :  { %1028 = vmatprep.subr.bf16.mxu1 %v4564_v14 }
  0x7e   :  { %1222 = vmatpush1.bf16.msra.mxu0 %v4567_v15 }
  0x7f   :  { %1223 = vmatprep.subr.bf16.mxu0 %v4570_v16 }
  0x80   :  { %1029 = vmatpush1.bf16.msra.mxu1 %v4573_v17 }
  0x81   :  { %1030 = vmatprep.subr.bf16.mxu1 %v4576_v18 }
  0x82   :  { %1224 = vmatpush1.bf16.msra.mxu0 %v4579_v19 }
  0x83   :  { %1225 = vmatprep.subr.bf16.mxu0 %v4582_v20 }
  0x84   :  { %1031 = vmatpush1.bf16.msra.mxu1 %v4587_v22 }
  0x85   :  { %1032 = vmatprep.subr.bf16.mxu1 %v4592_v24 }
  0x86   :  { %1226 = vmatpush1.bf16.msra.mxu0 %v4584_v21 }
  0x87   :  { %1227 = vmatprep.subr.bf16.mxu0 %v4589_v23 }
  0x88   :  { %1033 = vmatpush1.bf16.msra.mxu1 %v4595_v25 }
  0x89   :  { %1034 = vmatprep.subr.bf16.mxu1 %v4598_v26 }
  0x8a   :  { %1228 = vmatpush1.bf16.msra.mxu0 %v4600_v27 }
  0x8b   :  { %1229 = vmatprep.subr.bf16.mxu0 %v4603_v28  ;;  %v4747_v28 = vld [vmem:[#allocation5 + $0x214] ss:$8 sps:$4 sm:$0xff]  }
  0x8c   :  { %1035 = vmatpush1.bf16.msra.mxu1 %v4607_v29 }
  0x8d   :  { %1036 = vmatprep.subr.bf16.mxu1 %v4610_v30 }
  0x8e   :  { %1230 = vmatpush1.bf16.msra.mxu0 %v4612_v31 }
  0x8f   :  { %1231 = vmatprep.subr.bf16.mxu0 %v4615_v32 }
  0x90   :  { %1037 = vmatpush1.bf16.msra.mxu1 %v4619_v33 }
  0x91   :  { %1038 = vmatprep.subr.bf16.mxu1 %v4622_v34 }
  0x92   :  { %1232 = vmatpush1.bf16.msra.mxu0 %v4624_v35 }
  0x93   :  { %1233 = vmatprep.subr.bf16.mxu0 %v4627_v36 }
  0x94   :  { %1039 = vmatpush1.bf16.msra.mxu1 %v4631_v37 }
  0x95   :  { %1040 = vmatprep.subr.bf16.mxu1 %v4634_v38 }
  0x96   :  { %1234 = vmatpush1.bf16.msra.mxu0 %v4636_v39 }
  0x97   :  { %1235 = vmatprep.subr.bf16.mxu0 %v4639_v40 }
  0x98   :  { %1041 = vmatpush1.bf16.msra.mxu1 %v4643_v41 }
  0x99   :  { %1042 = vmatprep.subr.bf16.mxu1 %v4646_v42 }
  0x9a   :  { %1236 = vmatpush1.bf16.msra.mxu0 %v4648_v43 }
  0x9b   :  { %1237 = vmatprep.subr.bf16.mxu0 %v4651_v44 }
  0x9c   :  { %1043 = vmatpush1.bf16.msra.mxu1 %v4655_v45 }
  0x9d   :  { %1044 = vmatprep.subr.bf16.mxu1 %v4658_v46 }
  0x9e   :  { %1238 = vmatpush1.bf16.msra.mxu0 %v4663_v47 }
  0x9f   :  { %1239 = vmatprep.subr.bf16.mxu0 %v4665_v48 }
  0xa0   :  { %1045 = vmatpush1.bf16.msra.mxu1 %v4668_v49 }
  0xa1   :  { %1046 = vmatprep.subr.bf16.mxu1 %v4670_v50 }
  0xa2   :  { %1240 = vmatpush1.bf16.msra.mxu0 %v4675_v51 }
  0xa3   :  { %1241 = vmatprep.subr.bf16.mxu0 %v4677_v52 }
  0xa4   :  { %1047 = vmatpush1.bf16.msra.mxu1 %v4680_v53 }
  0xa5   :  { %1048 = vmatprep.subr.bf16.mxu1 %v4682_v54 }
  0xa6   :  { %1242 = vmatpush1.bf16.msra.mxu0 %v4684_v55 }
  0xa7   :  { %1243 = vmatprep.subr.bf16.mxu0 %v4687_v56  ;;  %v4719_v56 = vld [vmem:[#allocation5 + $0xf0] ss:$8 sps:$4 sm:$0xff]  }
  0xa8   :  { %1049 = vmatpush1.bf16.msra.mxu1 %v4691_v58  ;;  %6207 = vst [vmem:[#allocation35_spill] sm:$0xff] %v4719_v56 }
  0xa9   :  { %1453 = vmatprep.subr.bf16.mxu1 %v4694_v59 }
  0xaa   :  { %1244 = vmatpush1.bf16.msra.mxu0 %v4699_v62 }
  0xab   :  { %1245 = vmatprep.subr.bf16.mxu0 %v4702_v63  ;;  %v740_v63 = vlaneseq }
  0xad   :  { %v741_v62 = vshrl.u32 %v740_v63, 7 }
  0xae   :  { %1246 = vmatpush1.bf16.msra.mxu0 %v4707_v1 }
  0xaf   :  { %1247 = vmatprep.subr.bf16.mxu0 %v4710_v4  ;;  %v4724_v55 = vsub.s32 0, %v741_v62  ;;  %v738_v4 = vld [vmem:[%s5998_s2] sm:$0x3]  ;;  %v4729_v1 = vsub.s32 1, %v741_v62 }
  0xb1   :  { %6208 = vst [vmem:[#allocation36_spill] sm:$0xff] %v4724_v55  ;;  %6209 = vst [vmem:[#allocation37_spill] sm:$0xff] %v4729_v1  ;;  %v4735_v52 = vrot.slane %v738_v4, %v4729_v1 }
  0xb2   :  { %1248 = vmatpush1.bf16.msra.mxu0 %v4713_v5  ;;  %v4732_v5 = vrot.slane %v738_v4, %v4724_v55 }
  0xb3   :  { %1249 = vmatprep.subr.bf16.mxu0 %v4716_v7  ;;  %6211 = vst [vmem:[#allocation39_spill] sm:$0xff] %v4735_v52 }
  0xb4   :  { %6210 = vst [vmem:[#allocation38_spill] sm:$0xff] %v4732_v5 }
  0xb6   :  { %1250 = vmatpush1.bf16.msra.mxu0 %v4719_v56 }
  0xb7   :  { %1513 = vmatprep.subr.bf16.mxu0 %v4519_v57 }
 0x11c   :  { %v485_v7 = vpop.f32.mrb[0].mxu0  ;;  %v526_v56 = vpop.f32.mrb[0].mxu1 }
 0x11d   :  { %v750_v57 = vadd.f32 %v4732_v5, %v485_v7  ;;  %v756_v63 = vadd.f32 %v4732_v5, %v526_v56  ;;  %v487_v51 = vpop.f32.mrb[1].mxu0  ;;  %v528_v48 = vpop.f32.mrb[1].mxu1  ;;  %v4743_v7 = vld [vmem:[#allocation5 + $0x200] ss:$8 sps:$4 sm:$0xff]  }
 0x11e   :  { %v751_v47 = vadd.f32 %v4735_v52, %v487_v51  ;;  %v757_v44 = vadd.f32 %v4735_v52, %v528_v48  ;;  %v530_v62 = vpop.f32.mrb[2].mxu1  ;;  %v489_v43 = vpop.f32.mrb[2].mxu0 }
 0x11f   :  { %v752_v40 = vmax.f32 %v750_v57, 0.0  ;;  %v758_v55 = vmax.f32 %v756_v63, 0.0  ;;  %v531_v39 = vpop.f32.mrb[3].mxu1  ;;  %v490_v36 = vpop.f32.mrb[3].mxu0  ;;  %v4796_v63 = vld [vmem:[#allocation5 + $0x250] ss:$8 sps:$4 sm:$0xff]  }
 0x120   :  { %v753_v4 = vmax.f32 %v751_v47, 0.0  ;;  %v759_v1 = vmax.f32 %v757_v44, 0.0  ;;  %v4753_v36 = vld [vmem:[#allocation5 + $0x210] ss:$8 sps:$4 sm:$0xff]   ;;  %v4757_v39 = vld [vmem:[#allocation5 + $0x224] ss:$8 sps:$4 sm:$0xff]  }
 0x121   :  { %v754_v35 = vpack.c.bf16 %v752_v40, %v752_v40  ;;  %v4745_v56 = vpack.c.bf16 %v758_v55, %v758_v55  ;;  %v4808_v62 = vld [vmem:[#allocation5 + $0x274] ss:$8 sps:$4 sm:$0xff]  }
 0x122   :  { %v755_v32 = vpack.c.bf16 %v753_v4, %v753_v4  ;;  %v4741_v31 = vpack.c.bf16 %v759_v1, %v759_v1  ;;  %6212 = vst [vmem:[#allocation40_spill] sm:$0xff] %v4808_v62 }
 0x124   :  { %1050 = vmatprep.mubr.bf16.mxu1 %v4741_v31  ;;  %1251 = vmatprep.mubr.bf16.mxu0 %v755_v32  ;;  %v4761_v32 = vld [vmem:[#allocation5 + $0x220] ss:$8 sps:$4 sm:$0xff]  }
 0x125   :  { %1051 = vmatmul.mubr.bf16.vlgmr.msra.gmra.mrb[12].mxu1 %v4745_v56  ;;  %1252 = vmatmul.mubr.bf16.vlgmr.msra.gmra.mrb[16].mxu0 %v754_v35  ;;  %v4765_v35 = vld [vmem:[#allocation5 + $0x234] ss:$8 sps:$4 sm:$0xff]  }
 0x126   :  { %1454 = vmatpush1.bf16.msra.mxu1 %v4743_v7  ;;  %1514 = vmatpush1.bf16.msra.mxu0 %v4521_v60 }
 0x127   :  { %1455 = vmatprep.subr.bf16.mxu1 %v4747_v28  ;;  %1515 = vmatprep.subr.bf16.mxu0 %v4526_v61  ;;  %v4771_v61 = vld [vmem:[#allocation5 + $0x230] ss:$8 sps:$4 sm:$0xff]  }
 0x12a   :  { %1456 = vmatpush1.bf16.msra.mxu1 %v4753_v36  ;;  %1516 = vmatpush1.bf16.msra.mxu0 %v4532_v2 }
 0x12b   :  { %1457 = vmatprep.subr.bf16.mxu1 %v4757_v39  ;;  %1517 = vmatprep.subr.bf16.mxu0 %v4535_v3  ;;  %v4778_v3 = vld [vmem:[#allocation5 + $0x244] ss:$8 sps:$4 sm:$0xff]  }
 0x12c   :  { %v4767_v60 = vpop.f32.mrb[4].mxu0 }
 0x12d   :  { %v569_v40 = vpop.f32.mrb[5].mxu0 }
 0x12e   :  { %1458 = vmatpush1.bf16.msra.mxu1 %v4761_v32  ;;  %1518 = vmatpush1.bf16.msra.mxu0 %v4538_v0  ;;  %v763_v43 = vadd.f32 %v4735_v52, %v569_v40  ;;  %v571_v2 = vpop.f32.mrb[6].mxu0  ;;  %v4774_v44 = vpop.f32.mrb[4].mxu1  ;;  %v4784_v0 = vld [vmem:[#allocation5 + $0x240] ss:$8 sps:$4 sm:$0xff]  }
 0x12f   :  { %1459 = vmatprep.subr.bf16.mxu1 %v4765_v35  ;;  %1519 = vmatprep.subr.bf16.mxu0 %v4541_v6  ;;  %v572_v47 = vpop.f32.mrb[7].mxu0  ;;  %v4780_v48 = vpop.f32.mrb[5].mxu1  ;;  %v4790_v6 = vld [vmem:[#allocation5 + $0x254] ss:$8 sps:$4 sm:$0xff]   ;;  %v4836_v2 = vld [vmem:[#allocation5 + $0x2a4] ss:$8 sps:$4 sm:$0xff]  }
 0x130   :  { %v765_v51 = vmax.f32 %v763_v43, 0.0  ;;  %v612_v55 = vpop.f32.mrb[6].mxu1  ;;  %v4824_v43 = vld [vmem:[#allocation5 + $0x280] ss:$8 sps:$4 sm:$0xff]   ;;  %6220 = vst [vmem:[#allocation48_spill] sm:$0xff] %v4836_v2 }
 0x131   :  { %v613_v1 = vpop.f32.mrb[7].mxu1  ;;  %6217 = vst [vmem:[#allocation45_spill] sm:$0xff] %v4824_v43  ;;  %v4864_v47 = vld [vmem:[#allocation5 + $0x2d0] ss:$8 sps:$4 sm:$0xff]   ;;  %v762_v55 = vadd.f32 %v4732_v5, %v4767_v60 }
 0x132   :  { %1460 = vmatpush1.bf16.msra.mxu1 %v4771_v61  ;;  %1520 = vmatpush1.bf16.msra.mxu0 %v4548_v9  ;;  %v4786_v57 = vpack.c.bf16 %v765_v51, %v765_v51  ;;  %v4800_v9 = vld [vmem:[#allocation5 + $0x264] ss:$8 sps:$4 sm:$0xff]   ;;  %6227 = vst [vmem:[#allocation55_spill] sm:$0xff] %v4864_v47  ;;  %v4874_v1 = vld [vmem:[#allocation5 + $0x2e0] ss:$8 sps:$4 sm:$0xff]  }
 0x133   :  { %1461 = vmatprep.subr.bf16.mxu1 %v4778_v3  ;;  %1521 = vmatprep.subr.bf16.mxu0 %v4551_v10  ;;  %v4804_v10 = vld [vmem:[#allocation5 + $0x260] ss:$8 sps:$4 sm:$0xff]   ;;  %v4868_v51 = vld [vmem:[#allocation5 + $0x2e4] ss:$8 sps:$4 sm:$0xff]   ;;  %6229 = vst [vmem:[#allocation57_spill] sm:$0xff] %v4874_v1 }
 0x134   :  { %1485 = vmatprep.mubr.bf16.mxu1 %v4786_v57  ;;  %1545 = vmatprep.mubr.bf16.mxu0 %v4786_v57  ;;  %6228 = vst [vmem:[#allocation56_spill] sm:$0xff] %v4868_v51  ;;  %v4884_v60 = vld [vmem:[#allocation5 + $0x2f0] ss:$8 sps:$4 sm:$0xff]  }
 0x135   :  { %6231 = vst [vmem:[#allocation59_spill] sm:$0xff] %v4884_v60 }
 0x136   :  { %1462 = vmatpush1.bf16.msra.mxu1 %v4784_v0  ;;  %1522 = vmatpush1.bf16.msra.mxu0 %v4559_v13  ;;  %v4812_v13 = vld [vmem:[#allocation5 + $0x270] ss:$8 sps:$4 sm:$0xff]  }
 0x137   :  { %1463 = vmatprep.subr.bf16.mxu1 %v4790_v6  ;;  %1523 = vmatprep.subr.bf16.mxu0 %v4564_v14  ;;  %6213 = vst [vmem:[#allocation41_spill] sm:$0xff] %v4812_v13 }
 0x13a   :  { %1464 = vmatpush1.bf16.msra.mxu1 %v4796_v63  ;;  %1524 = vmatpush1.bf16.msra.mxu0 %v4573_v17  ;;  %v4818_v17 = vld [vmem:[#allocation5 + $0x284] ss:$8 sps:$4 sm:$0xff]  }
 0x13b   :  { %1465 = vmatprep.subr.bf16.mxu1 %v4800_v9  ;;  %1525 = vmatprep.subr.bf16.mxu0 %v4576_v18  ;;  %6215 = vst [vmem:[#allocation43_spill] sm:$0xff] %v4818_v17 }
 0x13e   :  { %1466 = vmatpush1.bf16.msra.mxu1 %v4804_v10  ;;  %1526 = vmatpush1.bf16.msra.mxu0 %v4587_v22  ;;  %v4814_v14 = vpop.f32.mrb[8].mxu1  ;;  %v4828_v22 = vld [vmem:[#allocation5 + $0x294] ss:$8 sps:$4 sm:$0xff]  }
 0x13f   :  { %6214 = vst [vmem:[#allocation42_spill] sm:$0xff] %v4814_v14  ;;  %1467 = vmatprep.subr.bf16.mxu1 %v4808_v62  ;;  %1527 = vmatprep.subr.bf16.mxu0 %v4592_v24  ;;  %v4820_v4 = vpop.f32.mrb[9].mxu1  ;;  %6218 = vst [vmem:[#allocation46_spill] sm:$0xff] %v4828_v22  ;;  %v4832_v24 = vld [vmem:[#allocation5 + $0x290] ss:$8 sps:$4 sm:$0xff]   ;;  %v764_v14 = vmax.f32 %v762_v55, 0.0 }
 0x140   :  { %6216 = vst [vmem:[#allocation44_spill] sm:$0xff] %v4820_v4  ;;  %v694_v40 = vpop.f32.mrb[10].mxu1  ;;  %6219 = vst [vmem:[#allocation47_spill] sm:$0xff] %v4832_v24 }
 0x141   :  { %v695_v18 = vpop.f32.mrb[11].mxu1  ;;  %v4878_v40 = vld [vmem:[#allocation5 + $0x2f4] ss:$8 sps:$4 sm:$0xff]  }
 0x142   :  { %1468 = vmatpush1.bf16.msra.mxu1 %v4812_v13  ;;  %1528 = vmatpush1.bf16.msra.mxu0 %v4595_v25  ;;  %v4840_v25 = vld [vmem:[#allocation5 + $0x2a0] ss:$8 sps:$4 sm:$0xff]   ;;  %6230 = vst [vmem:[#allocation58_spill] sm:$0xff] %v4878_v40  ;;  %v769_v18 = vadd.f32 %v4735_v52, %v4780_v48  ;;  %v4894_v48 = vpop.f32.mrb[8].mxu0 }
 0x143   :  { %1469 = vmatprep.subr.bf16.mxu1 %v4818_v17  ;;  %1529 = vmatprep.subr.bf16.mxu0 %v4598_v26  ;;  %6221 = vst [vmem:[#allocation49_spill] sm:$0xff] %v4840_v25  ;;  %v4844_v26 = vld [vmem:[#allocation5 + $0x2b4] ss:$8 sps:$4 sm:$0xff]   ;;  %6232 = vst [vmem:[#allocation60_spill] sm:$0xff] %v4894_v48 }
 0x144   :  { %6222 = vst [vmem:[#allocation50_spill] sm:$0xff] %v4844_v26  ;;  %v771_v4 = vmax.f32 %v769_v18, 0.0  ;;  %v6252_v48 = vld [vmem:[#allocation30_spill] sm:$0xff] }
 0x146   :  { %1470 = vmatpush1.bf16.msra.mxu1 %v4824_v43  ;;  %1530 = vmatpush1.bf16.msra.mxu0 %v4607_v29  ;;  %v4848_v29 = vld [vmem:[#allocation5 + $0x2b0] ss:$8 sps:$4 sm:$0xff]   ;;  %v4896_v55 = vpack.c.bf16 %v771_v4, %v771_v4  ;;  %v6243_v4 = vld [vmem:[#allocation19_spill] sm:$0xff] }
 0x147   :  { %1471 = vmatprep.subr.bf16.mxu1 %v4828_v22  ;;  %1531 = vmatprep.subr.bf16.mxu0 %v4610_v30  ;;  %6223 = vst [vmem:[#allocation51_spill] sm:$0xff] %v4848_v29  ;;  %v4852_v30 = vld [vmem:[#allocation5 + $0x2c4] ss:$8 sps:$4 sm:$0xff]  }
 0x148   :  { %6224 = vst [vmem:[#allocation52_spill] sm:$0xff] %v4852_v30  ;;  %6233 = vst [vmem:[#allocation61_spill] sm:$0xff] %v4896_v55 }
 0x14a   :  { %1472 = vmatpush1.bf16.msra.mxu1 %v4832_v24  ;;  %1532 = vmatpush1.bf16.msra.mxu0 %v4619_v33  ;;  %v4856_v33 = vld [vmem:[#allocation5 + $0x2c0] ss:$8 sps:$4 sm:$0xff]  }
 0x14b   :  { %1473 = vmatprep.subr.bf16.mxu1 %v4836_v2  ;;  %1533 = vmatprep.subr.bf16.mxu0 %v4622_v34  ;;  %6225 = vst [vmem:[#allocation53_spill] sm:$0xff] %v4856_v33  ;;  %v4860_v34 = vld [vmem:[#allocation5 + $0x2d4] ss:$8 sps:$4 sm:$0xff]  }
 0x14c   :  { %6226 = vst [vmem:[#allocation54_spill] sm:$0xff] %v4860_v34 }
 0x14e   :  { %1474 = vmatpush1.bf16.msra.mxu1 %v4840_v25  ;;  %1534 = vmatpush1.bf16.msra.mxu0 %v4631_v37 }
 0x14f   :  { %1475 = vmatprep.subr.bf16.mxu1 %v4844_v26  ;;  %1535 = vmatprep.subr.bf16.mxu0 %v4634_v38 }
 0x152   :  { %1476 = vmatpush1.bf16.msra.mxu1 %v4848_v29  ;;  %1536 = vmatpush1.bf16.msra.mxu0 %v4643_v41 }
 0x153   :  { %1477 = vmatprep.subr.bf16.mxu1 %v4852_v30  ;;  %1537 = vmatprep.subr.bf16.mxu0 %v4646_v42 }
 0x156   :  { %1478 = vmatpush1.bf16.msra.mxu1 %v4856_v33  ;;  %1538 = vmatpush1.bf16.msra.mxu0 %v4655_v45 }
 0x157   :  { %1479 = vmatprep.subr.bf16.mxu1 %v4860_v34  ;;  %1539 = vmatprep.subr.bf16.mxu0 %v4658_v46 }
 0x15a   :  { %1480 = vmatpush1.bf16.msra.mxu1 %v4864_v47  ;;  %1540 = vmatpush1.bf16.msra.mxu0 %v4668_v49  ;;  %v4888_v49 = vpack.c.bf16 %v764_v14, %v764_v14 }
 0x15b   :  { %1481 = vmatprep.subr.bf16.mxu1 %v4868_v51  ;;  %1541 = vmatprep.subr.bf16.mxu0 %v4670_v50 }
 0x15e   :  { %1482 = vmatpush1.bf16.msra.mxu1 %v4874_v1  ;;  %1542 = vmatpush1.bf16.msra.mxu0 %v4680_v53  ;;  %v4898_v53 = vpop.f32.mrb[9].mxu0 }
 0x15f   :  { %1483 = vmatprep.subr.bf16.mxu1 %v4878_v40  ;;  %1543 = vmatprep.subr.bf16.mxu0 %v4682_v54  ;;  %v653_v14 = vpop.f32.mrb[10].mxu0 }
 0x160   :  { %v654_v18 = vpop.f32.mrb[11].mxu0  ;;  %v6244_v14 = vld [vmem:[#allocation20_spill] sm:$0xff] }
 0x161   :  { %v6245_v18 = vld [vmem:[#allocation21_spill] sm:$0xff] }
 0x162   :  { %1484 = vmatpush1.bf16.msra.mxu1 %v4884_v60  ;;  %1544 = vmatpush1.bf16.msra.mxu0 %v4691_v58 }
 0x163   :  { %1554 = vmatprep.subr.bf16.mxu1 %v4545_v8  ;;  %1595 = vmatprep.subr.bf16.mxu0 %v4694_v59  ;;  %v4919_v8 = vpop.f32.mrb[12].mxu0 }
 0x164   :  { %6234 = vst [vmem:[#allocation62_spill] sm:$0xff] %v4919_v8  ;;  %v6250_v8 = vld [vmem:[#allocation28_spill] sm:$0xff] }
 0x165   :  { %1486 = vmatmul.mubr.bf16.vlgmr.msra.gmra.mrb[16].mxu1 %v4888_v49  ;;  %1546 = vmatmul.mubr.bf16.vlgmr.msra.gmra.mrb[20].mxu0 %v4888_v49 }
 0x166   :  { %1555 = vmatpush1.bf16.msra.mxu1 %v4553_v11  ;;  %1586 = vmatprep.mubr.bf16.mxu1 %v4741_v31  ;;  %v4922_v11 = vpop.f32.mrb[13].mxu0  ;;  %v6242_v31 = vld [vmem:[#allocation18_spill] sm:$0xff] }
 0x167   :  { %1596 = vmatpush1.bf16.msra.mxu0 %v4743_v7  ;;  %1556 = vmatprep.subr.bf16.mxu1 %v4556_v12  ;;  %6235 = vst [vmem:[#allocation63_spill] sm:$0xff] %v4922_v11  ;;  %v735_v12 = vpop.f32.mrb[14].mxu0  ;;  %v6251_v11 = vld [vmem:[#allocation29_spill] sm:$0xff] }
 0x168   :  { %1597 = vmatprep.subr.bf16.mxu0 %v4747_v28  ;;  %1627 = vmatprep.mubr.bf16.mxu0 %v4896_v55  ;;  %v6246_v12 = vld [vmem:[#allocation22_spill] sm:$0xff] }
 0x16a   :  { %1557 = vmatpush1.bf16.msra.mxu1 %v4567_v15  ;;  %v736_v15 = vpop.f32.mrb[15].mxu0 }
 0x16b   :  { %1598 = vmatpush1.bf16.msra.mxu0 %v4753_v36  ;;  %1558 = vmatprep.subr.bf16.mxu1 %v4570_v16  ;;  %v6236_v16 = vld [vmem:[#allocation12_spill] sm:$0xff] }
 0x16c   :  { %1599 = vmatprep.subr.bf16.mxu0 %v4757_v39  ;;  %v6247_v15 = vld [vmem:[#allocation24_spill] sm:$0xff] }
 0x16e   :  { %1559 = vmatpush1.bf16.msra.mxu1 %v4579_v19  ;;  %v6237_v19 = vld [vmem:[#allocation13_spill] sm:$0xff] }
 0x16f   :  { %1600 = vmatpush1.bf16.msra.mxu0 %v4761_v32  ;;  %1560 = vmatprep.subr.bf16.mxu1 %v4582_v20  ;;  %v6238_v20 = vld [vmem:[#allocation14_spill] sm:$0xff] }
 0x170   :  { %1601 = vmatprep.subr.bf16.mxu0 %v4765_v35 }
 0x172   :  { %1561 = vmatpush1.bf16.msra.mxu1 %v4584_v21  ;;  %v6239_v21 = vld [vmem:[#allocation15_spill] sm:$0xff] }
 0x173   :  { %1602 = vmatpush1.bf16.msra.mxu0 %v4771_v61  ;;  %1562 = vmatprep.subr.bf16.mxu1 %v4589_v23  ;;  %v6240_v23 = vld [vmem:[#allocation16_spill] sm:$0xff] }
 0x174   :  { %1603 = vmatprep.subr.bf16.mxu0 %v4778_v3 }
 0x176   :  { %1563 = vmatpush1.bf16.msra.mxu1 %v4600_v27  ;;  %v6241_v27 = vld [vmem:[#allocation17_spill] sm:$0xff] }
 0x177   :  { %1604 = vmatpush1.bf16.msra.mxu0 %v4784_v0  ;;  %1564 = vmatprep.subr.bf16.mxu1 %v6236_v16  ;;  %v6248_v16 = vld [vmem:[#allocation25_spill] sm:$0xff] }
 0x178   :  { %1605 = vmatprep.subr.bf16.mxu0 %v4790_v6 }
 0x17a   :  { %1565 = vmatpush1.bf16.msra.mxu1 %v6237_v19  ;;  %v6249_v19 = vld [vmem:[#allocation27_spill] sm:$0xff] }
 0x17b   :  { %1606 = vmatpush1.bf16.msra.mxu0 %v4796_v63  ;;  %1566 = vmatprep.subr.bf16.mxu1 %v6238_v20 }
 0x17c   :  { %1607 = vmatprep.subr.bf16.mxu0 %v4800_v9 }
 0x17e   :  { %1567 = vmatpush1.bf16.msra.mxu1 %v6239_v21 }
 0x17f   :  { %1608 = vmatpush1.bf16.msra.mxu0 %v4804_v10  ;;  %1568 = vmatprep.subr.bf16.mxu1 %v6240_v23 }
 0x180   :  { %1609 = vmatprep.subr.bf16.mxu0 %v4808_v62  ;;  %v5062_v62 = vld [vmem:[#allocation5 + $0x170] ss:$8 sps:$4 sm:$0xff]  }
 0x181   :  { %6272 = vst [vmem:[#allocation28_spill] sm:$0xff] %v5062_v62 }
 0x182   :  { %1569 = vmatpush1.bf16.msra.mxu1 %v6241_v27 }
 0x183   :  { %1610 = vmatpush1.bf16.msra.mxu0 %v4812_v13  ;;  %1570 = vmatprep.subr.bf16.mxu1 %v6242_v31  ;;  %v5050_v13 = vld [vmem:[#allocation5 + $0x164] ss:$8 sps:$4 sm:$0xff]  }
 0x184   :  { %1611 = vmatprep.subr.bf16.mxu0 %v4818_v17  ;;  %v5044_v17 = vld [vmem:[#allocation5 + $0x150] ss:$8 sps:$4 sm:$0xff]  }
 0x186   :  { %1571 = vmatpush1.bf16.msra.mxu1 %v6243_v4 }
 0x187   :  { %1612 = vmatpush1.bf16.msra.mxu0 %v4824_v43  ;;  %1572 = vmatprep.subr.bf16.mxu1 %v6244_v14  ;;  %v5038_v43 = vld [vmem:[#allocation5 + $0x154] ss:$8 sps:$4 sm:$0xff]  }
 0x188   :  { %1613 = vmatprep.subr.bf16.mxu0 %v4828_v22  ;;  %v5032_v22 = vld [vmem:[#allocation5 + $0x140] ss:$8 sps:$4 sm:$0xff]  }
 0x18a   :  { %1573 = vmatpush1.bf16.msra.mxu1 %v6245_v18 }
 0x18b   :  { %1614 = vmatpush1.bf16.msra.mxu0 %v4832_v24  ;;  %1574 = vmatprep.subr.bf16.mxu1 %v6246_v12  ;;  %v6257_v24 = vld [vmem:[#allocation35_spill] sm:$0xff] }
 0x18c   :  { %1615 = vmatprep.subr.bf16.mxu0 %v4836_v2  ;;  %v6255_v2 = vld [vmem:[#allocation33_spill] sm:$0xff] }
 0x18e   :  { %1575 = vmatpush1.bf16.msra.mxu1 %v6247_v15 }
 0x18f   :  { %1616 = vmatpush1.bf16.msra.mxu0 %v4840_v25  ;;  %1576 = vmatprep.subr.bf16.mxu1 %v6248_v16  ;;  %v6253_v25 = vld [vmem:[#allocation31_spill] sm:$0xff] }
 0x190   :  { %1617 = vmatprep.subr.bf16.mxu0 %v4844_v26  ;;  %v768_v26 = vadd.f32 %v4732_v5, %v4774_v44  ;;  %v4974_v44 = vld [vmem:[#allocation5 + $0x104] ss:$8 sps:$4 sm:$0xff]   ;;  %v5020_v5 = vld [vmem:[#allocation5 + $0x130] ss:$8 sps:$4 sm:$0xff]  }
 0x192   :  { %1577 = vmatpush1.bf16.msra.mxu1 %v6249_v19 }
 0x193   :  { %1618 = vmatpush1.bf16.msra.mxu0 %v4848_v29  ;;  %1578 = vmatprep.subr.bf16.mxu1 %v6250_v8  ;;  %v6254_v29 = vld [vmem:[#allocation32_spill] sm:$0xff] }
 0x194   :  { %1619 = vmatprep.subr.bf16.mxu0 %v4852_v30  ;;  %v770_v30 = vmax.f32 %v768_v26, 0.0  ;;  %v4982_v26 = vld [vmem:[#allocation5 + $0x100] ss:$8 sps:$4 sm:$0xff]  }
 0x196   :  { %1579 = vmatpush1.bf16.msra.mxu1 %v6251_v11 }
 0x197   :  { %1620 = vmatpush1.bf16.msra.mxu0 %v4856_v33  ;;  %1580 = vmatprep.subr.bf16.mxu1 %v6252_v48  ;;  %v6256_v33 = vld [vmem:[#allocation34_spill] sm:$0xff] }
 0x198   :  { %1621 = vmatprep.subr.bf16.mxu0 %v4860_v34  ;;  %v4970_v34 = vpack.c.bf16 %v770_v30, %v770_v30  ;;  %v4985_v30 = vld [vmem:[#allocation5] ss:$8 sps:$4 sm:$0xff]  }
 0x199   :  { %6259 = vst [vmem:[#allocation13_spill] sm:$0xff] %v4985_v30 }
 0x19a   :  { %1581 = vmatpush1.bf16.msra.mxu1 %v6253_v25 }
 0x19b   :  { %1622 = vmatpush1.bf16.msra.mxu0 %v4864_v47  ;;  %1582 = vmatprep.subr.bf16.mxu1 %v6254_v29  ;;  %v5026_v47 = vld [vmem:[#allocation5 + $0x144] ss:$8 sps:$4 sm:$0xff]  }
 0x19c   :  { %1623 = vmatprep.subr.bf16.mxu0 %v4868_v51  ;;  %v4977_v51 = vld [vmem:[#allocation5 + $0x4] ss:$8 sps:$4 sm:$0xff]  }
 0x19d   :  { %6258 = vst [vmem:[#allocation12_spill] sm:$0xff] %v4977_v51 }
 0x19e   :  { %1583 = vmatpush1.bf16.msra.mxu1 %v6255_v2 }
 0x19f   :  { %1624 = vmatpush1.bf16.msra.mxu0 %v4874_v1  ;;  %1584 = vmatprep.subr.bf16.mxu1 %v6256_v33  ;;  %v5008_v1 = vld [vmem:[#allocation5 + $0x120] ss:$8 sps:$4 sm:$0xff]  }
 0x1a0   :  { %1625 = vmatprep.subr.bf16.mxu0 %v4878_v40  ;;  %v4992_v40 = vld [vmem:[#allocation5 + $0x14] ss:$8 sps:$4 sm:$0xff]  }
 0x1a1   :  { %6260 = vst [vmem:[#allocation14_spill] sm:$0xff] %v4992_v40 }
 0x1a2   :  { %1585 = vmatpush1.bf16.msra.mxu1 %v6257_v24 }
 0x1a3   :  { %1626 = vmatpush1.bf16.msra.mxu0 %v4884_v60  ;;  %1644 = vmatprep.subr.bf16.mxu1 %v4974_v44  ;;  %v4989_v60 = vld [vmem:[#allocation5 + $0x114] ss:$8 sps:$4 sm:$0xff]  }
 0x1a4   :  { %1685 = vmatprep.subr.bf16.mxu0 %v4977_v51  ;;  %v4999_v51 = vld [vmem:[#allocation5 + $0x10] ss:$8 sps:$4 sm:$0xff]  }
 0x1a5   :  { %1587 = vmatmul.mubr.bf16.vlgmr.msra.gmra.mrb[20].mxu1 %v4745_v56  ;;  %v4996_v56 = vld [vmem:[#allocation5 + $0x110] ss:$8 sps:$4 sm:$0xff]   ;;  %6261 = vst [vmem:[#allocation15_spill] sm:$0xff] %v4999_v51 }
 0x1a6   :  { %1628 = vmatmul.mubr.bf16.vlgmr.msra.gmra.mrb[24].mxu0 %v4970_v34  ;;  %1645 = vmatpush1.bf16.msra.mxu1 %v4982_v26 }
 0x1a7   :  { %1686 = vmatpush1.bf16.msra.mxu0 %v4985_v30  ;;  %1717 = vmatprep.mubr.bf16.mxu0 %v4786_v57  ;;  %v5002_v30 = vld [vmem:[#allocation5 + $0x124] ss:$8 sps:$4 sm:$0xff]  }
 0x1a8   :  { %1646 = vmatprep.subr.bf16.mxu1 %v4989_v60  ;;  %1687 = vmatprep.subr.bf16.mxu0 %v4992_v40  ;;  %v5005_v57 = vld [vmem:[#allocation5 + $0x24] ss:$8 sps:$4 sm:$0xff]   ;;  %v5011_v40 = vld [vmem:[#allocation5 + $0x20] ss:$8 sps:$4 sm:$0xff]  }
 0x1a9   :  { %1676 = vmatprep.mubr.bf16.mxu1 %v4896_v55  ;;  %6262 = vst [vmem:[#allocation16_spill] sm:$0xff] %v5005_v57  ;;  %6263 = vst [vmem:[#allocation17_spill] sm:$0xff] %v5011_v40  ;;  %v5014_v55 = vld [vmem:[#allocation5 + $0x134] ss:$8 sps:$4 sm:$0xff]  }
 0x1aa   :  { %1647 = vmatpush1.bf16.msra.mxu1 %v4996_v56 }
 0x1ab   :  { %1688 = vmatpush1.bf16.msra.mxu0 %v4999_v51  ;;  %1648 = vmatprep.subr.bf16.mxu1 %v5002_v30  ;;  %v5017_v51 = vld [vmem:[#allocation5 + $0x34] ss:$8 sps:$4 sm:$0xff]  }
 0x1ac   :  { %1689 = vmatprep.subr.bf16.mxu0 %v5005_v57  ;;  %6264 = vst [vmem:[#allocation18_spill] sm:$0xff] %v5017_v51  ;;  %v5023_v57 = vld [vmem:[#allocation5 + $0x30] ss:$8 sps:$4 sm:$0xff]  }
 0x1ad   :  { %6265 = vst [vmem:[#allocation19_spill] sm:$0xff] %v5023_v57 }
 0x1ae   :  { %1649 = vmatpush1.bf16.msra.mxu1 %v5008_v1 }
 0x1af   :  { %1690 = vmatpush1.bf16.msra.mxu0 %v5011_v40  ;;  %1650 = vmatprep.subr.bf16.mxu1 %v5014_v55  ;;  %v5029_v40 = vld [vmem:[#allocation5 + $0x44] ss:$8 sps:$4 sm:$0xff]  }
 0x1b0   :  { %1691 = vmatprep.subr.bf16.mxu0 %v5017_v51  ;;  %6266 = vst [vmem:[#allocation20_spill] sm:$0xff] %v5029_v40  ;;  %v5035_v51 = vld [vmem:[#allocation5 + $0x40] ss:$8 sps:$4 sm:$0xff]  }
 0x1b1   :  { %6267 = vst [vmem:[#allocation21_spill] sm:$0xff] %v5035_v51 }
 0x1b2   :  { %1651 = vmatpush1.bf16.msra.mxu1 %v5020_v5 }
 0x1b3   :  { %1692 = vmatpush1.bf16.msra.mxu0 %v5023_v57  ;;  %1652 = vmatprep.subr.bf16.mxu1 %v5026_v47  ;;  %v5041_v57 = vld [vmem:[#allocation5 + $0x54] ss:$8 sps:$4 sm:$0xff]  }
 0x1b4   :  { %1693 = vmatprep.subr.bf16.mxu0 %v5029_v40  ;;  %6268 = vst [vmem:[#allocation22_spill] sm:$0xff] %v5041_v57  ;;  %v5047_v40 = vld [vmem:[#allocation5 + $0x50] ss:$8 sps:$4 sm:$0xff]  }
 0x1b5   :  { %6269 = vst [vmem:[#allocation24_spill] sm:$0xff] %v5047_v40 }
 0x1b6   :  { %1653 = vmatpush1.bf16.msra.mxu1 %v5032_v22 }
 0x1b7   :  { %1694 = vmatpush1.bf16.msra.mxu0 %v5035_v51  ;;  %1654 = vmatprep.subr.bf16.mxu1 %v5038_v43  ;;  %v5054_v51 = vld [vmem:[#allocation5 + $0x160] ss:$8 sps:$4 sm:$0xff]  }
 0x1b8   :  { %1695 = vmatprep.subr.bf16.mxu0 %v5041_v57  ;;  %6270 = vst [vmem:[#allocation25_spill] sm:$0xff] %v5054_v51  ;;  %v5058_v57 = vld [vmem:[#allocation5 + $0x174] ss:$8 sps:$4 sm:$0xff]  }
 0x1b9   :  { %6271 = vst [vmem:[#allocation27_spill] sm:$0xff] %v5058_v57 }
 0x1ba   :  { %1655 = vmatpush1.bf16.msra.mxu1 %v5044_v17 }
 0x1bb   :  { %1696 = vmatpush1.bf16.msra.mxu0 %v5047_v40  ;;  %1656 = vmatprep.subr.bf16.mxu1 %v5050_v13  ;;  %v5066_v40 = vld [vmem:[#allocation5 + $0x184] ss:$8 sps:$4 sm:$0xff]  }
 0x1bc   :  { %1697 = vmatprep.subr.bf16.mxu0 %v6238_v20  ;;  %6273 = vst [vmem:[#allocation29_spill] sm:$0xff] %v5066_v40  ;;  %v5070_v20 = vld [vmem:[#allocation5 + $0x180] ss:$8 sps:$4 sm:$0xff]  }
 0x1bd   :  { %6274 = vst [vmem:[#allocation30_spill] sm:$0xff] %v5070_v20 }
 0x1be   :  { %1657 = vmatpush1.bf16.msra.mxu1 %v5054_v51 }
 0x1bf   :  { %1698 = vmatpush1.bf16.msra.mxu0 %v6239_v21  ;;  %1658 = vmatprep.subr.bf16.mxu1 %v5058_v57  ;;  %v5074_v21 = vld [vmem:[#allocation5 + $0x194] ss:$8 sps:$4 sm:$0xff]  }
 0x1c0   :  { %1699 = vmatprep.subr.bf16.mxu0 %v6240_v23  ;;  %6275 = vst [vmem:[#allocation31_spill] sm:$0xff] %v5074_v21  ;;  %v5078_v23 = vld [vmem:[#allocation5 + $0x190] ss:$8 sps:$4 sm:$0xff]  }
 0x1c1   :  { %6276 = vst [vmem:[#allocation32_spill] sm:$0xff] %v5078_v23 }
 0x1c2   :  { %1659 = vmatpush1.bf16.msra.mxu1 %v5062_v62 }
 0x1c3   :  { %1700 = vmatpush1.bf16.msra.mxu0 %v6241_v27  ;;  %1660 = vmatprep.subr.bf16.mxu1 %v5066_v40  ;;  %v5082_v27 = vld [vmem:[#allocation5 + $0x1a4] ss:$8 sps:$4 sm:$0xff]  }
 0x1c4   :  { %1701 = vmatprep.subr.bf16.mxu0 %v6242_v31  ;;  %6277 = vst [vmem:[#allocation33_spill] sm:$0xff] %v5082_v27  ;;  %v6285_v31 = vld [vmem:[#allocation47_spill] sm:$0xff] }
 0x1c6   :  { %1661 = vmatpush1.bf16.msra.mxu1 %v5070_v20 }
 0x1c7   :  { %1702 = vmatpush1.bf16.msra.mxu0 %v6243_v4  ;;  %1662 = vmatprep.subr.bf16.mxu1 %v5074_v21  ;;  %v6286_v4 = vld [vmem:[#allocation48_spill] sm:$0xff] }
 0x1c8   :  { %1703 = vmatprep.subr.bf16.mxu0 %v6244_v14  ;;  %v6287_v14 = vld [vmem:[#allocation49_spill] sm:$0xff] }
 0x1ca   :  { %1663 = vmatpush1.bf16.msra.mxu1 %v5078_v23 }
 0x1cb   :  { %1704 = vmatpush1.bf16.msra.mxu0 %v6245_v18  ;;  %1664 = vmatprep.subr.bf16.mxu1 %v5082_v27  ;;  %v5163_v18 = vld [vmem:[#allocation5 + $0x1a0] ss:$8 sps:$4 sm:$0xff]  }
 0x1cc   :  { %1705 = vmatprep.subr.bf16.mxu0 %v6246_v12  ;;  %6288 = vst [vmem:[#allocation34_spill] sm:$0xff] %v5163_v18  ;;  %v6289_v12 = vld [vmem:[#allocation50_spill] sm:$0xff] }
 0x1ce   :  { %1665 = vmatpush1.bf16.msra.mxu1 %v4631_v37  ;;  %v6278_v37 = vld [vmem:[#allocation23_spill] sm:$0xff] }
 0x1cf   :  { %1706 = vmatpush1.bf16.msra.mxu0 %v6247_v15  ;;  %1666 = vmatprep.subr.bf16.mxu1 %v4634_v38  ;;  %v775_v38 = vadd.f32 %v4735_v52, %v4898_v53  ;;  %v5167_v15 = vld [vmem:[#allocation5 + $0x1b4] ss:$8 sps:$4 sm:$0xff]  }
 0x1d0   :  { %1707 = vmatprep.subr.bf16.mxu0 %v6248_v16  ;;  %6290 = vst [vmem:[#allocation35_spill] sm:$0xff] %v5167_v15  ;;  %v6291_v16 = vld [vmem:[#allocation51_spill] sm:$0xff] }
 0x1d2   :  { %1667 = vmatpush1.bf16.msra.mxu1 %v4643_v41  ;;  %v6279_v41 = vld [vmem:[#allocation26_spill] sm:$0xff] }
 0x1d3   :  { %1708 = vmatpush1.bf16.msra.mxu0 %v6249_v19  ;;  %1668 = vmatprep.subr.bf16.mxu1 %v4646_v42  ;;  %v777_v42 = vmax.f32 %v775_v38, 0.0  ;;  %v5171_v19 = vld [vmem:[#allocation5 + $0x1b0] ss:$8 sps:$4 sm:$0xff]   ;;  %v5175_v38 = vld [vmem:[#allocation5 + $0x1c4] ss:$8 sps:$4 sm:$0xff]  }
 0x1d4   :  { %1709 = vmatprep.subr.bf16.mxu0 %v6250_v8  ;;  %v6283_v8 = vld [vmem:[#allocation45_spill] sm:$0xff]  ;;  %6292 = vst [vmem:[#allocation23_spill] sm:$0xff] %v5171_v19  ;;  %6294 = vst [vmem:[#allocation26_spill] sm:$0xff] %v5175_v38 }
 0x1d6   :  { %1669 = vmatpush1.bf16.msra.mxu1 %v4655_v45  ;;  %v5111_v45 = vpack.c.bf16 %v777_v42, %v777_v42  ;;  %v5179_v42 = vld [vmem:[#allocation5 + $0x1c0] ss:$8 sps:$4 sm:$0xff]  }
 0x1d7   :  { %1710 = vmatpush1.bf16.msra.mxu0 %v6251_v11  ;;  %1670 = vmatprep.subr.bf16.mxu1 %v4658_v46  ;;  %v6284_v11 = vld [vmem:[#allocation46_spill] sm:$0xff] }
 0x1d8   :  { %1711 = vmatprep.subr.bf16.mxu0 %v6252_v48  ;;  %v6282_v48 = vld [vmem:[#allocation43_spill] sm:$0xff] }
 0x1da   :  { %1671 = vmatpush1.bf16.msra.mxu1 %v6278_v37  ;;  %v6293_v37 = vld [vmem:[#allocation52_spill] sm:$0xff] }
 0x1db   :  { %1712 = vmatpush1.bf16.msra.mxu0 %v6253_v25  ;;  %1672 = vmatprep.subr.bf16.mxu1 %v4670_v50 }
 0x1dc   :  { %1713 = vmatprep.subr.bf16.mxu0 %v6254_v29  ;;  %v6280_v29 = vld [vmem:[#allocation40_spill] sm:$0xff] }
 0x1dd   :  { %6296 = vst [vmem:[#allocation40_spill] sm:$0xff] %v5179_v42 }
 0x1de   :  { %1673 = vmatpush1.bf16.msra.mxu1 %v6279_v41  ;;  %v6295_v41 = vld [vmem:[#allocation53_spill] sm:$0xff] }
 0x1df   :  { %1714 = vmatpush1.bf16.msra.mxu0 %v6255_v2  ;;  %1674 = vmatprep.subr.bf16.mxu1 %v4682_v54 }
 0x1e0   :  { %1715 = vmatprep.subr.bf16.mxu0 %v6256_v33  ;;  %v6281_v33 = vld [vmem:[#allocation41_spill] sm:$0xff] }
 0x1e2   :  { %1675 = vmatpush1.bf16.msra.mxu1 %v4691_v58 }
 0x1e3   :  { %1716 = vmatpush1.bf16.msra.mxu0 %v6257_v24  ;;  %1726 = vmatprep.subr.bf16.mxu1 %v4694_v59 }
 0x1e4   :  { %1775 = vmatprep.subr.bf16.mxu0 %v4974_v44 }
 0x1e5   :  { %1677 = vmatmul.mubr.bf16.vlgmr.msra.gmra.mrb[24].mxu1 %v4970_v34 }
 0x1e6   :  { %1718 = vmatmul.mubr.bf16.vlgmr.msra.gmra.mrb[28].mxu0 %v4888_v49  ;;  %1727 = vmatpush1.bf16.msra.mxu1 %v4743_v7 }
 0x1e7   :  { %1776 = vmatpush1.bf16.msra.mxu0 %v4982_v26  ;;  %1728 = vmatprep.subr.bf16.mxu1 %v4747_v28 }
 0x1e8   :  { %1777 = vmatprep.subr.bf16.mxu0 %v4989_v60  ;;  %1758 = vmatprep.mubr.bf16.mxu1 %v5111_v45 }
 0x1e9   :  { %1807 = vmatprep.mubr.bf16.mxu0 %v5111_v45 }
 0x1ea   :  { %1729 = vmatpush1.bf16.msra.mxu1 %v4753_v36 }
 0x1eb   :  { %1778 = vmatpush1.bf16.msra.mxu0 %v4996_v56  ;;  %1730 = vmatprep.subr.bf16.mxu1 %v4757_v39 }
 0x1ec   :  { %1779 = vmatprep.subr.bf16.mxu0 %v5002_v30 }
 0x1ee   :  { %1731 = vmatpush1.bf16.msra.mxu1 %v4761_v32 }
 0x1ef   :  { %1780 = vmatpush1.bf16.msra.mxu0 %v5008_v1  ;;  %1732 = vmatprep.subr.bf16.mxu1 %v4765_v35 }
 0x1f0   :  { %1781 = vmatprep.subr.bf16.mxu0 %v5014_v55 }
 0x1f2   :  { %1733 = vmatpush1.bf16.msra.mxu1 %v4771_v61 }
 0x1f3   :  { %1782 = vmatpush1.bf16.msra.mxu0 %v5020_v5  ;;  %1734 = vmatprep.subr.bf16.mxu1 %v4778_v3 }
 0x1f4   :  { %1783 = vmatprep.subr.bf16.mxu0 %v5026_v47 }
 0x1f6   :  { %1735 = vmatpush1.bf16.msra.mxu1 %v4784_v0 }
 0x1f7   :  { %1784 = vmatpush1.bf16.msra.mxu0 %v5032_v22  ;;  %1736 = vmatprep.subr.bf16.mxu1 %v4790_v6 }
 0x1f8   :  { %v1052_v46 = vpop.f32.mrb[12].mxu1  ;;  %v1253_v49 = vpop.f32.mrb[16].mxu0  ;;  %1785 = vmatprep.subr.bf16.mxu0 %v5038_v43 }
 0x1f9   :  { %v5138_v50 = vadd.f32 %v1253_v49, %v1052_v46  ;;  %v1054_v53 = vpop.f32.mrb[13].mxu1  ;;  %v1255_v54 = vpop.f32.mrb[17].mxu0  ;;  %v6297_v46 = vld [vmem:[#allocation54_spill] sm:$0xff] }
 0x1fa   :  { %v5140_v58 = vadd.f32 %v1255_v54, %v1054_v53  ;;  %1737 = vmatpush1.bf16.msra.mxu1 %v4796_v63  ;;  %v1056_v59 = vpop.f32.mrb[14].mxu1  ;;  %v1257_v24 = vpop.f32.mrb[18].mxu0  ;;  %v5183_v49 = vld [vmem:[#allocation5 + $0x1d4] ss:$8 sps:$4 sm:$0xff]   ;;  %v6299_v53 = vld [vmem:[#allocation55_spill] sm:$0xff]  ;;  %v6300_v54 = vld [vmem:[#allocation60_spill] sm:$0xff] }
 0x1fb   :  { %1786 = vmatpush1.bf16.msra.mxu0 %v5044_v17  ;;  %v1057_v2 = vpop.f32.mrb[15].mxu1  ;;  %1738 = vmatprep.subr.bf16.mxu1 %v4800_v9  ;;  %v1258_v25 = vpop.f32.mrb[19].mxu0  ;;  %6298 = vst [vmem:[#allocation41_spill] sm:$0xff] %v5183_v49  ;;  %v6301_v59 = vld [vmem:[#allocation38_spill] sm:$0xff] }
 0x1fc   :  { %1787 = vmatprep.subr.bf16.mxu0 %v5050_v13  ;;  %v774_v24 = vadd.f32 %v6301_v59, %v6300_v54  ;;  %v5189_v2 = vld [vmem:[#allocation5 + $0x1d0] ss:$8 sps:$4 sm:$0xff]   ;;  %v6303_v25 = vld [vmem:[#allocation56_spill] sm:$0xff] }
 0x1fd   :  { %6302 = vst [vmem:[#allocation43_spill] sm:$0xff] %v5189_v2  ;;  %v6308_v54 = vld [vmem:[#allocation58_spill] sm:$0xff] }
 0x1fe   :  { %1739 = vmatpush1.bf16.msra.mxu1 %v4804_v10 }
 0x1ff   :  { %1788 = vmatpush1.bf16.msra.mxu0 %v5054_v51  ;;  %1740 = vmatprep.subr.bf16.mxu1 %v6280_v29  ;;  %v5254_v51 = vld [vmem:[#allocation5 + $0x64] ss:$8 sps:$4 sm:$0xff]  }
 0x200   :  { %1789 = vmatprep.subr.bf16.mxu0 %v5058_v57 }
 0x202   :  { %1741 = vmatpush1.bf16.msra.mxu1 %v6281_v33 }
 0x203   :  { %1790 = vmatpush1.bf16.msra.mxu0 %v5062_v62  ;;  %1742 = vmatprep.subr.bf16.mxu1 %v6282_v48  ;;  %v6326_v62 = vld [vmem:[#allocation24_spill] sm:$0xff] }
 0x204   :  { %1791 = vmatprep.subr.bf16.mxu0 %v5066_v40 }
 0x206   :  { %1743 = vmatpush1.bf16.msra.mxu1 %v6283_v8 }
 0x207   :  { %1792 = vmatpush1.bf16.msra.mxu0 %v5070_v20  ;;  %1744 = vmatprep.subr.bf16.mxu1 %v6284_v11 }
 0x208   :  { %1793 = vmatprep.subr.bf16.mxu0 %v5074_v21  ;;  %v5209_v21 = vld [vmem:[#allocation5 + $0x1f0] ss:$8 sps:$4 sm:$0xff]  }
 0x209   :  { %6312 = vst [vmem:[#allocation49_spill] sm:$0xff] %v5209_v21 }
 0x20a   :  { %1745 = vmatpush1.bf16.msra.mxu1 %v6285_v31 }
 0x20b   :  { %1794 = vmatpush1.bf16.msra.mxu0 %v5078_v23  ;;  %1746 = vmatprep.subr.bf16.mxu1 %v6286_v4  ;;  %v6310_v23 = vld [vmem:[#allocation59_spill] sm:$0xff] }
 0x20c   :  { %1795 = vmatprep.subr.bf16.mxu0 %v5082_v27  ;;  %v5203_v27 = vld [vmem:[#allocation5 + $0x1f4] ss:$8 sps:$4 sm:$0xff]  }
 0x20d   :  { %6309 = vst [vmem:[#allocation47_spill] sm:$0xff] %v5203_v27 }
 0x20e   :  { %1747 = vmatpush1.bf16.msra.mxu1 %v6287_v14 }
 0x20f   :  { %1796 = vmatpush1.bf16.msra.mxu0 %v5163_v18  ;;  %1748 = vmatprep.subr.bf16.mxu1 %v6289_v12  ;;  %v5199_v18 = vld [vmem:[#allocation5 + $0x1e0] ss:$8 sps:$4 sm:$0xff]  }
 0x210   :  { %1797 = vmatprep.subr.bf16.mxu0 %v5167_v15  ;;  %v6306_v15 = vld [vmem:[#allocation57_spill] sm:$0xff]  ;;  %6307 = vst [vmem:[#allocation46_spill] sm:$0xff] %v5199_v18 }
 0x212   :  { %1749 = vmatpush1.bf16.msra.mxu1 %v6291_v16 }
 0x213   :  { %1798 = vmatpush1.bf16.msra.mxu0 %v5171_v19  ;;  %1750 = vmatprep.subr.bf16.mxu1 %v6293_v37 }
 0x214   :  { %1799 = vmatprep.subr.bf16.mxu0 %v5175_v38  ;;  %v5193_v38 = vld [vmem:[#allocation5 + $0x1e4] ss:$8 sps:$4 sm:$0xff]  }
 0x215   :  { %6304 = vst [vmem:[#allocation45_spill] sm:$0xff] %v5193_v38 }
 0x216   :  { %1751 = vmatpush1.bf16.msra.mxu1 %v6295_v41 }
 0x217   :  { %1800 = vmatpush1.bf16.msra.mxu0 %v5179_v42  ;;  %1752 = vmatprep.subr.bf16.mxu1 %v6297_v46  ;;  %v6305_v42 = vld [vmem:[#allocation44_spill] sm:$0xff] }
 0x218   :  { %1801 = vmatprep.subr.bf16.mxu0 %v5183_v49  ;;  %v781_v19 = vadd.f32 %v4735_v52, %v6305_v42  ;;  %v776_v49 = vmax.f32 %v774_v24, 0.0  ;;  %v6313_v42 = vld [vmem:[#allocation12_spill] sm:$0xff] }
 0x219   :  { %v5213_v24 = vld [vmem:[#allocation5 + $0x204] ss:$8 sps:$4 sm:$0xff]  }
 0x21a   :  { %1753 = vmatpush1.bf16.msra.mxu1 %v6299_v53  ;;  %6314 = vst [vmem:[#allocation50_spill] sm:$0xff] %v5213_v24 }
 0x21b   :  { %1802 = vmatpush1.bf16.msra.mxu0 %v5189_v2  ;;  %1754 = vmatprep.subr.bf16.mxu1 %v6303_v25  ;;  %v783_v2 = vmax.f32 %v781_v19, 0.0  ;;  %v6315_v19 = vld [vmem:[#allocation13_spill] sm:$0xff] }
 0x21c   :  { %1803 = vmatprep.subr.bf16.mxu0 %v5193_v38  ;;  %v5207_v38 = vpack.c.bf16 %v776_v49, %v776_v49  ;;  %v6316_v49 = vld [vmem:[#allocation61_spill] sm:$0xff] }
 0x21e   :  { %1755 = vmatpush1.bf16.msra.mxu1 %v6306_v15  ;;  %6311 = vst [vmem:[#allocation48_spill] sm:$0xff] %v5207_v38 }
 0x21f   :  { %1804 = vmatpush1.bf16.msra.mxu0 %v5199_v18  ;;  %1756 = vmatprep.subr.bf16.mxu1 %v6308_v54  ;;  %v5217_v18 = vpack.c.bf16 %v783_v2, %v783_v2  ;;  %v6319_v2 = vld [vmem:[#allocation16_spill] sm:$0xff] }
 0x220   :  { %1805 = vmatprep.subr.bf16.mxu0 %v5203_v27  ;;  %v6318_v27 = vld [vmem:[#allocation15_spill] sm:$0xff] }
 0x222   :  { %1757 = vmatpush1.bf16.msra.mxu1 %v6310_v23 }
 0x223   :  { %1806 = vmatpush1.bf16.msra.mxu0 %v5209_v21  ;;  %1816 = vmatprep.subr.bf16.mxu1 %v6313_v42  ;;  %v6317_v21 = vld [vmem:[#allocation14_spill] sm:$0xff] }
 0x224   :  { %1857 = vmatprep.subr.bf16.mxu0 %v5213_v24 }
 0x225   :  { %1759 = vmatmul.mubr.bf16.vlgmr.msra.gmra.mrb[28].mxu1 %v5207_v38 }
 0x226   :  { %1808 = vmatmul.mubr.bf16.vlgmr.msra.gmra.mrb[32].mxu0 %v5207_v38  ;;  %1817 = vmatpush1.bf16.msra.mxu1 %v6315_v19  ;;  %v6320_v38 = vld [vmem:[#allocation17_spill] sm:$0xff] }
 0x227   :  { %1848 = vmatprep.mubr.bf16.mxu1 %v6316_v49  ;;  %1858 = vmatpush1.bf16.msra.mxu0 %v4743_v7  ;;  %v6321_v49 = vld [vmem:[#allocation18_spill] sm:$0xff]  ;;  %v6322_v7 = vld [vmem:[#allocation19_spill] sm:$0xff] }
 0x228   :  { %1889 = vmatprep.mubr.bf16.mxu0 %v5217_v18  ;;  %1818 = vmatprep.subr.bf16.mxu1 %v6317_v21 }
 0x229   :  { %1859 = vmatprep.subr.bf16.mxu0 %v4747_v28  ;;  %v6323_v28 = vld [vmem:[#allocation20_spill] sm:$0xff] }
 0x22a   :  { %1819 = vmatpush1.bf16.msra.mxu1 %v6318_v27 }
 0x22b   :  { %1860 = vmatpush1.bf16.msra.mxu0 %v4753_v36  ;;  %1820 = vmatprep.subr.bf16.mxu1 %v6319_v2  ;;  %v6324_v36 = vld [vmem:[#allocation21_spill] sm:$0xff] }
 0x22c   :  { %1861 = vmatprep.subr.bf16.mxu0 %v4757_v39  ;;  %v6325_v39 = vld [vmem:[#allocation22_spill] sm:$0xff] }
 0x22e   :  { %1821 = vmatpush1.bf16.msra.mxu1 %v6320_v38 }
 0x22f   :  { %1862 = vmatpush1.bf16.msra.mxu0 %v4761_v32  ;;  %1822 = vmatprep.subr.bf16.mxu1 %v6321_v49 }
 0x230   :  { %1863 = vmatprep.subr.bf16.mxu0 %v4765_v35 }
 0x232   :  { %1823 = vmatpush1.bf16.msra.mxu1 %v6322_v7 }
 0x233   :  { %1864 = vmatpush1.bf16.msra.mxu0 %v4771_v61  ;;  %1824 = vmatprep.subr.bf16.mxu1 %v6323_v28 }
 0x234   :  { %1865 = vmatprep.subr.bf16.mxu0 %v4778_v3 }
 0x236   :  { %1825 = vmatpush1.bf16.msra.mxu1 %v6324_v36 }
 0x237   :  { %1866 = vmatpush1.bf16.msra.mxu0 %v4784_v0  ;;  %1826 = vmatprep.subr.bf16.mxu1 %v6325_v39 }
 0x238   :  { %v1487_v24 = vpop.f32.mrb[16].mxu1  ;;  %v5241_v32 = vpop.f32.mrb[20].mxu0  ;;  %1867 = vmatprep.subr.bf16.mxu0 %v4790_v6  ;;  %v5258_v6 = vld [vmem:[#allocation5 + $0x60] ss:$8 sps:$4 sm:$0xff]  }
 0x239   :  { %v5245_v35 = vadd.f32 %v1487_v24, %v5138_v50  ;;  %v1489_v52 = vpop.f32.mrb[17].mxu1  ;;  %v5247_v61 = vpop.f32.mrb[21].mxu0  ;;  %v5286_v50 = vld [vmem:[#allocation5 + $0xa4] ss:$8 sps:$4 sm:$0xff]   ;;  %v5403_v24 = vld [vmem:[%s6000_s4] sm:$0x3] }
 0x23a   :  { %v5250_v20 = vadd.f32 %v1489_v52, %v5140_v58  ;;  %v1491_v3 = vpop.f32.mrb[18].mxu1  ;;  %v1551_v40 = vpop.f32.mrb[22].mxu0  ;;  %1827 = vmatpush1.bf16.msra.mxu1 %v6326_v62  ;;  %v5262_v52 = vld [vmem:[#allocation5 + $0x74] ss:$8 sps:$4 sm:$0xff]   ;;  %v5290_v58 = vld [vmem:[#allocation5 + $0xa0] ss:$8 sps:$4 sm:$0xff]  }
 0x23b   :  { %1868 = vmatpush1.bf16.msra.mxu0 %v4796_v63  ;;  %v1492_v0 = vpop.f32.mrb[19].mxu1  ;;  %v1552_v57 = vpop.f32.mrb[23].mxu0  ;;  %1828 = vmatprep.subr.bf16.mxu1 %v5254_v51  ;;  %v5266_v63 = vld [vmem:[#allocation5 + $0x70] ss:$8 sps:$4 sm:$0xff]   ;;  %v5270_v40 = vld [vmem:[#allocation5 + $0x84] ss:$8 sps:$4 sm:$0xff]  }
 0x23c   :  { %1869 = vmatprep.subr.bf16.mxu0 %v4800_v9  ;;  %v5274_v9 = vld [vmem:[#allocation5 + $0x80] ss:$8 sps:$4 sm:$0xff]   ;;  %v5282_v57 = vld [vmem:[#allocation5 + $0x90] ss:$8 sps:$4 sm:$0xff]   ;;  %v5420_v0 = vld [vmem:[#allocation7 + $0x104] ss:$8 sps:$4 sm:$0xff]  }
 0x23d   :  { %v6348_v3 = vld [vmem:[#allocation47_spill] sm:$0xff] }
 0x23e   :  { %1829 = vmatpush1.bf16.msra.mxu1 %v5258_v6 }
 0x23f   :  { %1870 = vmatpush1.bf16.msra.mxu0 %v4804_v10  ;;  %1830 = vmatprep.subr.bf16.mxu1 %v5262_v52  ;;  %v5278_v10 = vld [vmem:[#allocation5 + $0x94] ss:$8 sps:$4 sm:$0xff]  }
 0x240   :  { %1871 = vmatprep.subr.bf16.mxu0 %v6280_v29  ;;  %v5294_v29 = vld [vmem:[#allocation5 + $0xb4] ss:$8 sps:$4 sm:$0xff]  }
 0x242   :  { %1831 = vmatpush1.bf16.msra.mxu1 %v5266_v63 }
 0x243   :  { %1872 = vmatpush1.bf16.msra.mxu0 %v6281_v33  ;;  %1832 = vmatprep.subr.bf16.mxu1 %v5270_v40  ;;  %v5298_v33 = vld [vmem:[#allocation5 + $0xb0] ss:$8 sps:$4 sm:$0xff]  }
 0x244   :  { %1873 = vmatprep.subr.bf16.mxu0 %v6282_v48  ;;  %v5302_v48 = vld [vmem:[#allocation5 + $0xc4] ss:$8 sps:$4 sm:$0xff]  }
 0x246   :  { %1833 = vmatpush1.bf16.msra.mxu1 %v5274_v9 }
 0x247   :  { %1874 = vmatpush1.bf16.msra.mxu0 %v6283_v8  ;;  %1834 = vmatprep.subr.bf16.mxu1 %v5278_v10  ;;  %v5306_v8 = vld [vmem:[#allocation5 + $0xc0] ss:$8 sps:$4 sm:$0xff]  }
 0x248   :  { %1875 = vmatprep.subr.bf16.mxu0 %v6284_v11  ;;  %v5310_v11 = vld [vmem:[#allocation5 + $0xd4] ss:$8 sps:$4 sm:$0xff]  }
 0x24a   :  { %1835 = vmatpush1.bf16.msra.mxu1 %v5282_v57 }
 0x24b   :  { %1876 = vmatpush1.bf16.msra.mxu0 %v6285_v31  ;;  %1836 = vmatprep.subr.bf16.mxu1 %v5286_v50  ;;  %v5314_v31 = vld [vmem:[#allocation5 + $0xd0] ss:$8 sps:$4 sm:$0xff]  }
 0x24c   :  { %1877 = vmatprep.subr.bf16.mxu0 %v6286_v4  ;;  %v5318_v4 = vld [vmem:[#allocation5 + $0xe4] ss:$8 sps:$4 sm:$0xff]  }
 0x24e   :  { %1837 = vmatpush1.bf16.msra.mxu1 %v5290_v58 }
 0x24f   :  { %1878 = vmatpush1.bf16.msra.mxu0 %v6287_v14  ;;  %1838 = vmatprep.subr.bf16.mxu1 %v5294_v29  ;;  %v6327_v14 = vld [vmem:[#allocation42_spill] sm:$0xff] }
 0x250   :  { %1879 = vmatprep.subr.bf16.mxu0 %v6289_v12  ;;  %v780_v12 = vadd.f32 %v6301_v59, %v6327_v14  ;;  %v5442_v14 = vld [vmem:[#allocation7 + $0x134] ss:$8 sps:$4 sm:$0xff]  }
 0x252   :  { %1839 = vmatpush1.bf16.msra.mxu1 %v5298_v33 }
 0x253   :  { %1880 = vmatpush1.bf16.msra.mxu0 %v6291_v16  ;;  %1840 = vmatprep.subr.bf16.mxu1 %v5302_v48  ;;  %v5324_v16 = vld [vmem:[#allocation5 + $0xe0] ss:$8 sps:$4 sm:$0xff]  }
 0x254   :  { %1881 = vmatprep.subr.bf16.mxu0 %v6293_v37  ;;  %v5328_v37 = vld [vmem:[#allocation5 + $0xf4] ss:$8 sps:$4 sm:$0xff]  }
 0x256   :  { %1841 = vmatpush1.bf16.msra.mxu1 %v5306_v8 }
 0x257   :  { %1882 = vmatpush1.bf16.msra.mxu0 %v6295_v41  ;;  %1842 = vmatprep.subr.bf16.mxu1 %v5310_v11  ;;  %v782_v41 = vmax.f32 %v780_v12, 0.0  ;;  %v4253_v12 = vld [vmem:[#allocation5 + $0x220] ss:$8 sps:$4 sm:$0xff]  }
 0x258   :  { %1883 = vmatprep.subr.bf16.mxu0 %v6297_v46  ;;  %v5332_v46 = vld [vmem:[#allocation5 + $0xf0] ss:$8 sps:$4 sm:$0xff]  }
 0x25a   :  { %1843 = vmatpush1.bf16.msra.mxu1 %v5314_v31 }
 0x25b   :  { %1884 = vmatpush1.bf16.msra.mxu0 %v6299_v53  ;;  %1844 = vmatprep.subr.bf16.mxu1 %v5318_v4  ;;  %v5337_v53 = vpack.c.bf16 %v782_v41, %v782_v41  ;;  %v5448_v41 = vld [vmem:[#allocation7 + $0x144] ss:$8 sps:$4 sm:$0xff]  }
 0x25c   :  { %1885 = vmatprep.subr.bf16.mxu0 %v6303_v25  ;;  %v6339_v25 = vld [vmem:[#allocation26_spill] sm:$0xff] }
 0x25e   :  { %1845 = vmatpush1.bf16.msra.mxu1 %v5324_v16 }
 0x25f   :  { %1886 = vmatpush1.bf16.msra.mxu0 %v6306_v15  ;;  %1846 = vmatprep.subr.bf16.mxu1 %v5328_v37  ;;  %v6337_v15 = vld [vmem:[#allocation35_spill] sm:$0xff] }
 0x260   :  { %1887 = vmatprep.subr.bf16.mxu0 %v6308_v54  ;;  %v6340_v54 = vld [vmem:[#allocation40_spill] sm:$0xff] }
 0x262   :  { %1847 = vmatpush1.bf16.msra.mxu1 %v5332_v46 }
 0x263   :  { %1888 = vmatpush1.bf16.msra.mxu0 %v6310_v23  ;;  %1906 = vmatprep.subr.bf16.mxu1 %v4974_v44  ;;  %v6329_v23 = vld [vmem:[#allocation27_spill] sm:$0xff] }
 0x264   :  { %1947 = vmatprep.subr.bf16.mxu0 %v6313_v42  ;;  %v6341_v42 = vld [vmem:[#allocation41_spill] sm:$0xff] }
 0x265   :  { %1849 = vmatmul.mubr.bf16.vlgmr.msra.gmra.mrb[32].mxu1 %v4970_v34 }
 0x266   :  { %1890 = vmatmul.mubr.bf16.vlgmr.msra.gmra.mrb[36].mxu0 %v5337_v53  ;;  %1907 = vmatpush1.bf16.msra.mxu1 %v4982_v26 }
 0x267   :  { %1938 = vmatprep.mubr.bf16.mxu1 %v5217_v18  ;;  %1948 = vmatpush1.bf16.msra.mxu0 %v6315_v19  ;;  %v6336_v18 = vld [vmem:[#allocation34_spill] sm:$0xff]  ;;  %v6342_v19 = vld [vmem:[#allocation43_spill] sm:$0xff] }
 0x268   :  { %1979 = vmatprep.mubr.bf16.mxu0 %v5111_v45  ;;  %1908 = vmatprep.subr.bf16.mxu1 %v4989_v60  ;;  %v6335_v45 = vld [vmem:[#allocation33_spill] sm:$0xff] }
 0x269   :  { %1949 = vmatprep.subr.bf16.mxu0 %v6317_v21  ;;  %v6328_v21 = vld [vmem:[#allocation25_spill] sm:$0xff] }
 0x26a   :  { %1909 = vmatpush1.bf16.msra.mxu1 %v4996_v56 }
 0x26b   :  { %1950 = vmatpush1.bf16.msra.mxu0 %v6318_v27  ;;  %1910 = vmatprep.subr.bf16.mxu1 %v5002_v30  ;;  %v6334_v27 = vld [vmem:[#allocation32_spill] sm:$0xff] }
 0x26c   :  { %1951 = vmatprep.subr.bf16.mxu0 %v6319_v2  ;;  %v6343_v2 = vld [vmem:[#allocation45_spill] sm:$0xff] }
 0x26e   :  { %1911 = vmatpush1.bf16.msra.mxu1 %v5008_v1 }
 0x26f   :  { %1952 = vmatpush1.bf16.msra.mxu0 %v6320_v38  ;;  %1912 = vmatprep.subr.bf16.mxu1 %v5014_v55  ;;  %v6338_v38 = vld [vmem:[#allocation23_spill] sm:$0xff] }
 0x270   :  { %1953 = vmatprep.subr.bf16.mxu0 %v6321_v49  ;;  %v6344_v49 = vld [vmem:[#allocation37_spill] sm:$0xff] }
 0x272   :  { %1913 = vmatpush1.bf16.msra.mxu1 %v5020_v5 }
 0x273   :  { %1954 = vmatpush1.bf16.msra.mxu0 %v6322_v7  ;;  %1914 = vmatprep.subr.bf16.mxu1 %v5026_v47  ;;  %v5410_v7 = vrot.slane %v5403_v24, %v6344_v49  ;;  %v5607_v49 = vld [vmem:[#allocation7 + $0x264] ss:$8 sps:$4 sm:$0xff]  }
 0x274   :  { %1955 = vmatprep.subr.bf16.mxu0 %v6323_v28  ;;  %v6345_v28 = vld [vmem:[#allocation63_spill] sm:$0xff]  ;;  %6374 = vst [vmem:[#allocation19_spill] sm:$0xff] %v5607_v49 }
 0x276   :  { %1915 = vmatpush1.bf16.msra.mxu1 %v5032_v22 }
 0x277   :  { %1956 = vmatpush1.bf16.msra.mxu0 %v6324_v36  ;;  %1916 = vmatprep.subr.bf16.mxu1 %v5038_v43  ;;  %v6346_v36 = vld [vmem:[#allocation39_spill] sm:$0xff] }
 0x278   :  { %v1588_v34 = vpop.f32.mrb[20].mxu1  ;;  %1957 = vmatprep.subr.bf16.mxu0 %v6325_v39  ;;  %v787_v39 = vadd.f32 %v6346_v36, %v6345_v28  ;;  %v5482_v28 = vld [vmem:[#allocation7 + $0x194] ss:$8 sps:$4 sm:$0xff]   ;;  %v4265_v36 = vld [vmem:[#allocation5 + $0x280] ss:$8 sps:$4 sm:$0xff]  }
 0x279   :  { %v1589_v1 = vadd.f32 %v1588_v34, %v5241_v32  ;;  %v1590_v60 = vpop.f32.mrb[21].mxu1  ;;  %v1629_v55 = vpop.f32.mrb[24].mxu0  ;;  %v5451_v34 = vld [vmem:[#allocation7 + $0x140] ss:$8 sps:$4 sm:$0xff]  }
 0x27a   :  { %v1591_v5 = vadd.f32 %v1590_v60, %v5247_v61  ;;  %v1592_v44 = vpop.f32.mrb[22].mxu1  ;;  %1917 = vmatpush1.bf16.msra.mxu1 %v5044_v17  ;;  %v1631_v47 = vpop.f32.mrb[25].mxu0  ;;  %v6330_v17 = vld [vmem:[#allocation28_spill] sm:$0xff]  ;;  %v6347_v61 = vld [vmem:[#allocation46_spill] sm:$0xff] }
 0x27b   :  { %v5367_v26 = vadd.f32 %v1629_v55, %v1589_v1  ;;  %1958 = vmatpush1.bf16.msra.mxu0 %v6326_v62  ;;  %v1593_v22 = vpop.f32.mrb[23].mxu1  ;;  %1918 = vmatprep.subr.bf16.mxu1 %v5050_v13  ;;  %v1633_v43 = vpop.f32.mrb[26].mxu0  ;;  %v6331_v62 = vld [vmem:[#allocation29_spill] sm:$0xff]  ;;  %v6332_v13 = vld [vmem:[#allocation30_spill] sm:$0xff]  ;;  %v4257_v60 = vld [vmem:[#allocation5 + $0x240] ss:$8 sps:$4 sm:$0xff]  }
 0x27c   :  { %v1637_v30 = vadd.f32 %v1631_v47, %v1591_v5  ;;  %1959 = vmatprep.subr.bf16.mxu0 %v5254_v51  ;;  %v1634_v56 = vpop.f32.mrb[27].mxu0  ;;  %v6333_v51 = vld [vmem:[#allocation31_spill] sm:$0xff]  ;;  %v5454_v1 = vld [vmem:[#allocation7 + $0x154] ss:$8 sps:$4 sm:$0xff]   ;;  %v5457_v5 = vld [vmem:[#allocation7 + $0x150] ss:$8 sps:$4 sm:$0xff]  }
 0x27d   :  { %v4258_v55 = vld [vmem:[#allocation5 + $0x254] ss:$8 sps:$4 sm:$0xff]   ;;  %v5460_v47 = vld [vmem:[#allocation7 + $0x164] ss:$8 sps:$4 sm:$0xff]  }
 0x27e   :  { %1919 = vmatpush1.bf16.msra.mxu1 %v6328_v21  ;;  %v1639_v32 = vadd.f32 %v1637_v30, %v5410_v7 }
 0x27f   :  { %1960 = vmatpush1.bf16.msra.mxu0 %v5258_v6  ;;  %1920 = vmatprep.subr.bf16.mxu1 %v6329_v23  ;;  %v789_v6 = vmax.f32 %v787_v39, 0.0  ;;  %v4259_v23 = vld [vmem:[#allocation5 + $0x250] ss:$8 sps:$4 sm:$0xff]   ;;  %v4266_v39 = vld [vmem:[#allocation5 + $0x294] ss:$8 sps:$4 sm:$0xff]  }
 0x280   :  { %1961 = vmatprep.subr.bf16.mxu0 %v5262_v52  ;;  %v1641_v52 = vmax.f32 %v1639_v32, 0.0  ;;  %v5485_v32 = vld [vmem:[#allocation7 + $0x190] ss:$8 sps:$4 sm:$0xff]  }
 0x282   :  { %1921 = vmatpush1.bf16.msra.mxu1 %v6330_v17 }
 0x283   :  { %1962 = vmatpush1.bf16.msra.mxu0 %v5266_v63  ;;  %1922 = vmatprep.subr.bf16.mxu1 %v6331_v62  ;;  %v6349_v63 = vld [vmem:[#allocation49_spill] sm:$0xff] }
 0x284   :  { %1963 = vmatprep.subr.bf16.mxu0 %v5270_v40  ;;  %v6350_v40 = vld [vmem:[#allocation50_spill] sm:$0xff] }
 0x286   :  { %1923 = vmatpush1.bf16.msra.mxu1 %v6332_v13 }
 0x287   :  { %1964 = vmatpush1.bf16.msra.mxu0 %v5274_v9  ;;  %1924 = vmatprep.subr.bf16.mxu1 %v6333_v51  ;;  %v5425_v9 = vld [vmem:[#allocation7 + $0x100] ss:$8 sps:$4 sm:$0xff]   ;;  %v4260_v51 = vld [vmem:[#allocation5 + $0x264] ss:$8 sps:$4 sm:$0xff]  }
 0x288   :  { %1965 = vmatprep.subr.bf16.mxu0 %v5278_v10  ;;  %v791_v10 = vpack.c.bf16 %v789_v6, %v789_v6  ;;  %v4268_v6 = vld [vmem:[#allocation5 + $0x2a4] ss:$8 sps:$4 sm:$0xff]  }
 0x28a   :  { %1925 = vmatpush1.bf16.msra.mxu1 %v6334_v27  ;;  %v5467_v27 = vld [vmem:[#allocation7 + $0x160] ss:$8 sps:$4 sm:$0xff]  }
 0x28b   :  { %1966 = vmatpush1.bf16.msra.mxu0 %v5282_v57  ;;  %1926 = vmatprep.subr.bf16.mxu1 %v6335_v45  ;;  %v5429_v57 = vld [vmem:[#allocation7 + $0x114] ss:$8 sps:$4 sm:$0xff]  }
 0x28c   :  { %1967 = vmatprep.subr.bf16.mxu0 %v5286_v50  ;;  %v1643_v50 = vpack.c.bf16 %v1641_v52, %v1641_v52  ;;  %v5491_v52 = vld [vmem:[#allocation7 + $0x1a0] ss:$8 sps:$4 sm:$0xff]  }
 0x28e   :  { %1927 = vmatpush1.bf16.msra.mxu1 %v6336_v18  ;;  %v5470_v18 = vld [vmem:[#allocation7 + $0x174] ss:$8 sps:$4 sm:$0xff]  }
 0x28f   :  { %1968 = vmatpush1.bf16.msra.mxu0 %v5290_v58  ;;  %1928 = vmatprep.subr.bf16.mxu1 %v6337_v15  ;;  %v6351_v58 = vld [vmem:[#allocation48_spill] sm:$0xff] }
 0x290   :  { %1969 = vmatprep.subr.bf16.mxu0 %v5294_v29  ;;  %v4249_v29 = vld [vmem:[#allocation5 + $0x200] ss:$8 sps:$4 sm:$0xff]  }
 0x291   :  { %v4261_v15 = vld [vmem:[#allocation5 + $0x260] ss:$8 sps:$4 sm:$0xff]  }
 0x292   :  { %1929 = vmatpush1.bf16.msra.mxu1 %v6338_v38  ;;  %v4262_v38 = vld [vmem:[#allocation5 + $0x274] ss:$8 sps:$4 sm:$0xff]  }
 0x293   :  { %1970 = vmatpush1.bf16.msra.mxu0 %v5298_v33  ;;  %1930 = vmatprep.subr.bf16.mxu1 %v6339_v25  ;;  %v5433_v33 = vld [vmem:[#allocation7 + $0x110] ss:$8 sps:$4 sm:$0xff]  }
 0x294   :  { %1971 = vmatprep.subr.bf16.mxu0 %v5302_v48  ;;  %v4250_v48 = vld [vmem:[#allocation5 + $0x214] ss:$8 sps:$4 sm:$0xff]   ;;  %v5473_v25 = vld [vmem:[#allocation7 + $0x170] ss:$8 sps:$4 sm:$0xff]  }
 0x296   :  { %1931 = vmatpush1.bf16.msra.mxu1 %v6340_v54  ;;  %v5476_v54 = vld [vmem:[#allocation7 + $0x184] ss:$8 sps:$4 sm:$0xff]  }
 0x297   :  { %1972 = vmatpush1.bf16.msra.mxu0 %v5306_v8  ;;  %1932 = vmatprep.subr.bf16.mxu1 %v6341_v42  ;;  %v5435_v8 = vld [vmem:[#allocation7 + $0x124] ss:$8 sps:$4 sm:$0xff]   ;;  %v4263_v42 = vld [vmem:[#allocation5 + $0x270] ss:$8 sps:$4 sm:$0xff]  }
 0x298   :  { %1973 = vmatprep.subr.bf16.mxu0 %v5310_v11  ;;  %v4251_v11 = vld [vmem:[#allocation5 + $0x210] ss:$8 sps:$4 sm:$0xff]  }
 0x29a   :  { %1933 = vmatpush1.bf16.msra.mxu1 %v6342_v19  ;;  %v4264_v19 = vld [vmem:[#allocation5 + $0x284] ss:$8 sps:$4 sm:$0xff]  }
 0x29b   :  { %1974 = vmatpush1.bf16.msra.mxu0 %v5314_v31  ;;  %1934 = vmatprep.subr.bf16.mxu1 %v6343_v2  ;;  %v4252_v31 = vld [vmem:[#allocation5 + $0x224] ss:$8 sps:$4 sm:$0xff]   ;;  %v5479_v2 = vld [vmem:[#allocation7 + $0x180] ss:$8 sps:$4 sm:$0xff]  }
 0x29c   :  { %1975 = vmatprep.subr.bf16.mxu0 %v5318_v4  ;;  %v5439_v4 = vld [vmem:[#allocation7 + $0x120] ss:$8 sps:$4 sm:$0xff]  }
 0x29e   :  { %1935 = vmatpush1.bf16.msra.mxu1 %v6347_v61  ;;  %v5488_v61 = vld [vmem:[#allocation7 + $0x1a4] ss:$8 sps:$4 sm:$0xff]  }
 0x29f   :  { %1976 = vmatpush1.bf16.msra.mxu0 %v5324_v16  ;;  %1936 = vmatprep.subr.bf16.mxu1 %v6348_v3  ;;  %v4254_v16 = vld [vmem:[#allocation5 + $0x234] ss:$8 sps:$4 sm:$0xff]   ;;  %v4267_v3 = vld [vmem:[#allocation5 + $0x290] ss:$8 sps:$4 sm:$0xff]  }
 0x2a0   :  { %1977 = vmatprep.subr.bf16.mxu0 %v5328_v37  ;;  %v5445_v37 = vld [vmem:[#allocation7 + $0x130] ss:$8 sps:$4 sm:$0xff]  }
 0x2a2   :  { %1937 = vmatpush1.bf16.msra.mxu1 %v6349_v63  ;;  %v5494_v63 = vld [vmem:[#allocation7 + $0x1b4] ss:$8 sps:$4 sm:$0xff]  }
 0x2a3   :  { %1978 = vmatpush1.bf16.msra.mxu0 %v5332_v46  ;;  %1988 = vmatprep.subr.bf16.mxu1 %v6350_v40  ;;  %v4255_v46 = vld [vmem:[#allocation5 + $0x230] ss:$8 sps:$4 sm:$0xff]   ;;  %v4269_v40 = vld [vmem:[#allocation5 + $0x2a0] ss:$8 sps:$4 sm:$0xff]  }
 0x2a4   :  { %2263 = vmatprep.subr.bf16.mxu0 %v5420_v0 }
 0x2a5   :  { %1939 = vmatmul.mubr.bf16.vlgmr.msra.gmra.mrb[36].mxu1 %v5337_v53  ;;  %v4256_v53 = vld [vmem:[#allocation5 + $0x244] ss:$8 sps:$4 sm:$0xff]  }
 0x2a6   :  { %1980 = vmatmul.mubr.bf16.vlgmr.msra.gmra.mrb[40].mxu0 %v6351_v58  ;;  %1989 = vmatpush1.bf16.msra.mxu1 %v4249_v29  ;;  %v5500_v58 = vld [vmem:[#allocation7 + $0x1c4] ss:$8 sps:$4 sm:$0xff]   ;;  %v4271_v29 = vld [vmem:[#allocation5 + $0x2b0] ss:$8 sps:$4 sm:$0xff]  }
 0x2a7   :  { %2020 = vmatprep.mubr.bf16.mxu1 %v791_v10  ;;  %2264 = vmatpush1.bf16.msra.mxu0 %v5425_v9  ;;  %v4270_v10 = vld [vmem:[#allocation5 + $0x2b4] ss:$8 sps:$4 sm:$0xff]   ;;  %6352 = vst [vmem:[#allocation51_spill] sm:$0xff] %v5500_v58 }
 0x2a8   :  { %2295 = vmatprep.mubr.bf16.mxu0 %v1643_v50  ;;  %1990 = vmatprep.subr.bf16.mxu1 %v4250_v48  ;;  %v5497_v50 = vld [vmem:[#allocation7 + $0x1b0] ss:$8 sps:$4 sm:$0xff]   ;;  %v4272_v48 = vld [vmem:[#allocation5 + $0x2c4] ss:$8 sps:$4 sm:$0xff]  }
 0x2a9   :  { %2265 = vmatprep.subr.bf16.mxu0 %v5429_v57 }
 0x2aa   :  { %1991 = vmatpush1.bf16.msra.mxu1 %v4251_v11  ;;  %v5503_v11 = vld [vmem:[#allocation7 + $0x1c0] ss:$8 sps:$4 sm:$0xff]  }
 0x2ab   :  { %2266 = vmatpush1.bf16.msra.mxu0 %v5433_v33  ;;  %1992 = vmatprep.subr.bf16.mxu1 %v4252_v31  ;;  %6353 = vst [vmem:[#allocation52_spill] sm:$0xff] %v5503_v11  ;;  %v5506_v31 = vld [vmem:[#allocation7 + $0x1d4] ss:$8 sps:$4 sm:$0xff]  }
 0x2ac   :  { %2267 = vmatprep.subr.bf16.mxu0 %v5435_v8  ;;  %6354 = vst [vmem:[#allocation53_spill] sm:$0xff] %v5506_v31 }
 0x2ae   :  { %1993 = vmatpush1.bf16.msra.mxu1 %v4253_v12  ;;  %v4273_v12 = vld [vmem:[#allocation5 + $0x2c0] ss:$8 sps:$4 sm:$0xff]  }
 0x2af   :  { %2268 = vmatpush1.bf16.msra.mxu0 %v5439_v4  ;;  %1994 = vmatprep.subr.bf16.mxu1 %v4254_v16  ;;  %v4274_v16 = vld [vmem:[#allocation5 + $0x2d4] ss:$8 sps:$4 sm:$0xff]  }
 0x2b0   :  { %2269 = vmatprep.subr.bf16.mxu0 %v5442_v14 }
 0x2b2   :  { %1995 = vmatpush1.bf16.msra.mxu1 %v4255_v46  ;;  %v5509_v46 = vld [vmem:[#allocation7 + $0x1d0] ss:$8 sps:$4 sm:$0xff]  }
 0x2b3   :  { %2270 = vmatpush1.bf16.msra.mxu0 %v5445_v37  ;;  %1996 = vmatprep.subr.bf16.mxu1 %v4256_v53  ;;  %6355 = vst [vmem:[#allocation54_spill] sm:$0xff] %v5509_v46  ;;  %v5512_v53 = vld [vmem:[#allocation7 + $0x1e4] ss:$8 sps:$4 sm:$0xff]  }
 0x2b4   :  { %2271 = vmatprep.subr.bf16.mxu0 %v5448_v41  ;;  %6356 = vst [vmem:[#allocation55_spill] sm:$0xff] %v5512_v53 }
 0x2b6   :  { %1997 = vmatpush1.bf16.msra.mxu1 %v4257_v60  ;;  %v6357_v60 = vld [vmem:[#allocation36_spill] sm:$0xff] }
 0x2b7   :  { %2272 = vmatpush1.bf16.msra.mxu0 %v5451_v34  ;;  %1998 = vmatprep.subr.bf16.mxu1 %v4258_v55  ;;  %v5516_v55 = vrot.slane %v5403_v24, %v6357_v60  ;;  %v1508_v24 = vadd.f32 %v5410_v7, %v5250_v20  ;;  %v5538_v20 = vld [vmem:[#allocation7] ss:$8 sps:$4 sm:$0xff]  }
 0x2b8   :  { %v1678_v44 = vpop.f32.mrb[24].mxu1  ;;  %2273 = vmatprep.subr.bf16.mxu0 %v5454_v1 }
 0x2b9   :  { %v1719_v22 = vpop.f32.mrb[28].mxu0  ;;  %v1680_v43 = vpop.f32.mrb[25].mxu1 }
 0x2ba   :  { %v5462_v30 = vadd.f32 %v1719_v22, %v1678_v44  ;;  %v1721_v56 = vpop.f32.mrb[29].mxu0  ;;  %v1682_v21 = vpop.f32.mrb[26].mxu1  ;;  %1999 = vmatpush1.bf16.msra.mxu1 %v4259_v23  ;;  %v4275_v44 = vld [vmem:[#allocation5 + $0x2d0] ss:$8 sps:$4 sm:$0xff]   ;;  %v1638_v23 = vadd.f32 %v5367_v26, %v5516_v55  ;;  %v5536_v26 = vld [vmem:[#allocation7 + $0x204] ss:$8 sps:$4 sm:$0xff]  }
 0x2bb   :  { %v5464_v17 = vadd.f32 %v1721_v56, %v1680_v43  ;;  %v1723_v62 = vpop.f32.mrb[30].mxu0  ;;  %2274 = vmatpush1.bf16.msra.mxu0 %v5457_v5  ;;  %v1683_v13 = vpop.f32.mrb[27].mxu1  ;;  %2000 = vmatprep.subr.bf16.mxu1 %v4260_v51  ;;  %v6358_v22 = vld [vmem:[#allocation62_spill] sm:$0xff]  ;;  %v4276_v56 = vld [vmem:[#allocation5 + $0x2e4] ss:$8 sps:$4 sm:$0xff]   ;;  %6362 = vst [vmem:[#allocation44_spill] sm:$0xff] %v5536_v26 }
 0x2bc   :  { %v1724_v45 = vpop.f32.mrb[31].mxu0  ;;  %2275 = vmatprep.subr.bf16.mxu0 %v5460_v47  ;;  %v786_v43 = vadd.f32 %v6301_v59, %v6358_v22  ;;  %v5521_v21 = vld [vmem:[#allocation7 + $0x1e0] ss:$8 sps:$4 sm:$0xff]   ;;  %v5526_v62 = vld [vmem:[#allocation7 + $0x1f4] ss:$8 sps:$4 sm:$0xff]  }
 0x2bd   :  { %6359 = vst [vmem:[#allocation60_spill] sm:$0xff] %v5521_v21  ;;  %6360 = vst [vmem:[#allocation38_spill] sm:$0xff] %v5526_v62  ;;  %v4277_v13 = vld [vmem:[#allocation5 + $0x2e0] ss:$8 sps:$4 sm:$0xff]   ;;  %v4278_v59 = vld [vmem:[#allocation5 + $0x2f4] ss:$8 sps:$4 sm:$0xff]  }
 0x2be   :  { %2001 = vmatpush1.bf16.msra.mxu1 %v4261_v15  ;;  %v788_v51 = vmax.f32 %v786_v43, 0.0  ;;  %v5531_v45 = vld [vmem:[#allocation7 + $0x1f0] ss:$8 sps:$4 sm:$0xff]   ;;  %v5533_v15 = vld [vmem:[#allocation7 + $0x4] ss:$8 sps:$4 sm:$0xff]  }
 0x2bf   :  { %2276 = vmatpush1.bf16.msra.mxu0 %v5467_v27  ;;  %2002 = vmatprep.subr.bf16.mxu1 %v4262_v38  ;;  %6361 = vst [vmem:[#allocation56_spill] sm:$0xff] %v5531_v45  ;;  %v1640_v38 = vmax.f32 %v1638_v23, 0.0  ;;  %v5566_v22 = vld [vmem:[#allocation7 + $0x220] ss:$8 sps:$4 sm:$0xff]   ;;  %v5568_v43 = vld [vmem:[#allocation7 + $0x34] ss:$8 sps:$4 sm:$0xff]  }
 0x2c0   :  { %2277 = vmatprep.subr.bf16.mxu0 %v5470_v18  ;;  %6367 = vst [vmem:[#allocation13_spill] sm:$0xff] %v5566_v22  ;;  %v5574_v23 = vld [vmem:[#allocation7 + $0x30] ss:$8 sps:$4 sm:$0xff]  }
 0x2c2   :  { %2003 = vmatpush1.bf16.msra.mxu1 %v4263_v42  ;;  %v1510_v42 = vmax.f32 %v1508_v24, 0.0  ;;  %v5578_v24 = vld [vmem:[#allocation7 + $0x230] ss:$8 sps:$4 sm:$0xff]  }
 0x2c3   :  { %2278 = vmatpush1.bf16.msra.mxu0 %v5473_v25  ;;  %2004 = vmatprep.subr.bf16.mxu1 %v4264_v19  ;;  %v4279_v19 = vld [vmem:[#allocation5 + $0x2f0] ss:$8 sps:$4 sm:$0xff]   ;;  %6369 = vst [vmem:[#allocation14_spill] sm:$0xff] %v5578_v24 }
 0x2c4   :  { %2279 = vmatprep.subr.bf16.mxu0 %v5476_v54 }
 0x2c6   :  { %2005 = vmatpush1.bf16.msra.mxu1 %v4265_v36  ;;  %v790_v36 = vpack.c.bf16 %v788_v51, %v788_v51  ;;  %v5583_v51 = vld [vmem:[#allocation7 + $0x244] ss:$8 sps:$4 sm:$0xff]  }
 0x2c7   :  { %2280 = vmatpush1.bf16.msra.mxu0 %v5479_v2  ;;  %2006 = vmatprep.subr.bf16.mxu1 %v4266_v39  ;;  %v5542_v39 = vld [vmem:[#allocation7 + $0x200] ss:$8 sps:$4 sm:$0xff]   ;;  %6370 = vst [vmem:[#allocation15_spill] sm:$0xff] %v5583_v51 }
 0x2c8   :  { %2281 = vmatprep.subr.bf16.mxu0 %v5482_v28  ;;  %6363 = vst [vmem:[#allocation57_spill] sm:$0xff] %v5542_v39 }
 0x2ca   :  { %2007 = vmatpush1.bf16.msra.mxu1 %v4267_v3  ;;  %v1642_v3 = vpack.c.bf16 %v1640_v38, %v1640_v38  ;;  %v5590_v38 = vld [vmem:[#allocation7 + $0x240] ss:$8 sps:$4 sm:$0xff]  }
 0x2cb   :  { %2282 = vmatpush1.bf16.msra.mxu0 %v5485_v32  ;;  %2008 = vmatprep.subr.bf16.mxu1 %v4268_v6  ;;  %v5545_v6 = vld [vmem:[#allocation7 + $0x14] ss:$8 sps:$4 sm:$0xff]   ;;  %6371 = vst [vmem:[#allocation16_spill] sm:$0xff] %v5590_v38 }
 0x2cc   :  { %2283 = vmatprep.subr.bf16.mxu0 %v5488_v61 }
 0x2ce   :  { %2009 = vmatpush1.bf16.msra.mxu1 %v4269_v40  ;;  %v5547_v40 = vld [vmem:[#allocation7 + $0x214] ss:$8 sps:$4 sm:$0xff]  }
 0x2cf   :  { %2284 = vmatpush1.bf16.msra.mxu0 %v5491_v52  ;;  %2010 = vmatprep.subr.bf16.mxu1 %v4270_v10  ;;  %6364 = vst [vmem:[#allocation58_spill] sm:$0xff] %v5547_v40  ;;  %v1512_v10 = vpack.c.bf16 %v1510_v42, %v1510_v42  ;;  %v5592_v42 = vld [vmem:[#allocation7 + $0x54] ss:$8 sps:$4 sm:$0xff]  }
 0x2d0   :  { %2285 = vmatprep.subr.bf16.mxu0 %v5494_v63 }
 0x2d2   :  { %2011 = vmatpush1.bf16.msra.mxu1 %v4271_v29  ;;  %v5550_v29 = vld [vmem:[#allocation7 + $0x10] ss:$8 sps:$4 sm:$0xff]  }
 0x2d3   :  { %2286 = vmatpush1.bf16.msra.mxu0 %v5497_v50  ;;  %2012 = vmatprep.subr.bf16.mxu1 %v4272_v48  ;;  %v5553_v48 = vld [vmem:[#allocation7 + $0x210] ss:$8 sps:$4 sm:$0xff]  }
 0x2d4   :  { %2287 = vmatprep.subr.bf16.mxu0 %v5500_v58  ;;  %6365 = vst [vmem:[#allocation59_spill] sm:$0xff] %v5553_v48  ;;  %v5710_v58 = vld [vmem:[#allocation7 + $0x2d0] ss:$8 sps:$4 sm:$0xff]  }
 0x2d5   :  { %6394 = vst [vmem:[#allocation43_spill] sm:$0xff] %v5710_v58 }
 0x2d6   :  { %2013 = vmatpush1.bf16.msra.mxu1 %v4273_v12  ;;  %v5555_v12 = vld [vmem:[#allocation7 + $0x24] ss:$8 sps:$4 sm:$0xff]  }
 0x2d7   :  { %2288 = vmatpush1.bf16.msra.mxu0 %v5503_v11  ;;  %2014 = vmatprep.subr.bf16.mxu1 %v4274_v16  ;;  %v5559_v16 = vld [vmem:[#allocation7 + $0x224] ss:$8 sps:$4 sm:$0xff]   ;;  %v5703_v11 = vld [vmem:[#allocation7 + $0x2d4] ss:$8 sps:$4 sm:$0xff]  }
 0x2d8   :  { %2289 = vmatprep.subr.bf16.mxu0 %v5506_v31  ;;  %6366 = vst [vmem:[#allocation12_spill] sm:$0xff] %v5559_v16  ;;  %v5698_v31 = vld [vmem:[#allocation7 + $0x2c0] ss:$8 sps:$4 sm:$0xff]   ;;  %6392 = vst [vmem:[#allocation40_spill] sm:$0xff] %v5703_v11 }
 0x2d9   :  { %6390 = vst [vmem:[#allocation23_spill] sm:$0xff] %v5698_v31 }
 0x2da   :  { %2015 = vmatpush1.bf16.msra.mxu1 %v4275_v44  ;;  %v5562_v44 = vld [vmem:[#allocation7 + $0x20] ss:$8 sps:$4 sm:$0xff]  }
 0x2db   :  { %2290 = vmatpush1.bf16.msra.mxu0 %v5509_v46  ;;  %2016 = vmatprep.subr.bf16.mxu1 %v4276_v56  ;;  %v5571_v56 = vld [vmem:[#allocation7 + $0x234] ss:$8 sps:$4 sm:$0xff]   ;;  %v5691_v46 = vld [vmem:[#allocation7 + $0x2c4] ss:$8 sps:$4 sm:$0xff]  }
 0x2dc   :  { %2291 = vmatprep.subr.bf16.mxu0 %v5512_v53  ;;  %6368 = vst [vmem:[#allocation61_spill] sm:$0xff] %v5571_v56  ;;  %v5686_v53 = vld [vmem:[#allocation7 + $0x2b0] ss:$8 sps:$4 sm:$0xff]   ;;  %6388 = vst [vmem:[#allocation34_spill] sm:$0xff] %v5691_v46 }
 0x2dd   :  { %6386 = vst [vmem:[#allocation32_spill] sm:$0xff] %v5686_v53 }
 0x2de   :  { %2017 = vmatpush1.bf16.msra.mxu1 %v4277_v13  ;;  %v5580_v13 = vld [vmem:[#allocation7 + $0x44] ss:$8 sps:$4 sm:$0xff]  }
 0x2df   :  { %2292 = vmatpush1.bf16.msra.mxu0 %v5521_v21  ;;  %2018 = vmatprep.subr.bf16.mxu1 %v4278_v59  ;;  %v5586_v59 = vld [vmem:[#allocation7 + $0x40] ss:$8 sps:$4 sm:$0xff]   ;;  %v5679_v21 = vld [vmem:[#allocation7 + $0x2b4] ss:$8 sps:$4 sm:$0xff]  }
 0x2e0   :  { %2293 = vmatprep.subr.bf16.mxu0 %v5526_v62  ;;  %v5674_v62 = vld [vmem:[#allocation7 + $0x2a0] ss:$8 sps:$4 sm:$0xff]   ;;  %6384 = vst [vmem:[#allocation30_spill] sm:$0xff] %v5679_v21 }
 0x2e1   :  { %6383 = vst [vmem:[#allocation29_spill] sm:$0xff] %v5674_v62 }
 0x2e2   :  { %2019 = vmatpush1.bf16.msra.mxu1 %v4279_v19  ;;  %v5595_v19 = vld [vmem:[#allocation7 + $0x254] ss:$8 sps:$4 sm:$0xff]  }
 0x2e3   :  { %2294 = vmatpush1.bf16.msra.mxu0 %v5531_v45  ;;  %2464 = vmatprep.subr.bf16.mxu1 %v5533_v15  ;;  %6372 = vst [vmem:[#allocation17_spill] sm:$0xff] %v5595_v19  ;;  %v5667_v45 = vld [vmem:[#allocation7 + $0x2a4] ss:$8 sps:$4 sm:$0xff]  }
 0x2e4   :  { %2698 = vmatprep.subr.bf16.mxu0 %v5536_v26  ;;  %6382 = vst [vmem:[#allocation28_spill] sm:$0xff] %v5667_v45 }
 0x2e5   :  { %2021 = vmatmul.mubr.bf16.vlgmr.msra.gmra.mrb[40].mxu1 %v790_v36  ;;  %v5598_v36 = vld [vmem:[#allocation7 + $0x50] ss:$8 sps:$4 sm:$0xff]  }
 0x2e6   :  { %2296 = vmatmul.mubr.bf16.vlgmr.msra.gmra.mrb[44].mxu0 %v1642_v3  ;;  %2465 = vmatpush1.bf16.msra.mxu1 %v5538_v20  ;;  %v5602_v3 = vld [vmem:[#allocation7 + $0x250] ss:$8 sps:$4 sm:$0xff]  }
 0x2e7   :  { %2496 = vmatprep.mubr.bf16.mxu1 %v1512_v10  ;;  %2699 = vmatpush1.bf16.msra.mxu0 %v5542_v39  ;;  %6373 = vst [vmem:[#allocation18_spill] sm:$0xff] %v5602_v3  ;;  %v5604_v10 = vld [vmem:[#allocation7 + $0x64] ss:$8 sps:$4 sm:$0xff]  }
 0x2e8   :  { %2466 = vmatprep.subr.bf16.mxu1 %v5545_v6  ;;  %2700 = vmatprep.subr.bf16.mxu0 %v5547_v40 }
 0x2ea   :  { %2467 = vmatpush1.bf16.msra.mxu1 %v5550_v29 }
 0x2eb   :  { %2701 = vmatpush1.bf16.msra.mxu0 %v5553_v48  ;;  %2468 = vmatprep.subr.bf16.mxu1 %v5555_v12  ;;  %v5618_v48 = vld [vmem:[#allocation7 + $0x60] ss:$8 sps:$4 sm:$0xff]  }
 0x2ec   :  { %2702 = vmatprep.subr.bf16.mxu0 %v5559_v16 }
 0x2ee   :  { %2469 = vmatpush1.bf16.msra.mxu1 %v5562_v44 }
 0x2ef   :  { %2703 = vmatpush1.bf16.msra.mxu0 %v5566_v22  ;;  %2470 = vmatprep.subr.bf16.mxu1 %v5568_v43 }
 0x2f0   :  { %2704 = vmatprep.subr.bf16.mxu0 %v5571_v56 }
 0x2f2   :  { %2471 = vmatpush1.bf16.msra.mxu1 %v5574_v23 }
 0x2f3   :  { %2705 = vmatpush1.bf16.msra.mxu0 %v5578_v24  ;;  %2472 = vmatprep.subr.bf16.mxu1 %v5580_v13 }
 0x2f4   :  { %2706 = vmatprep.subr.bf16.mxu0 %v5583_v51 }
 0x2f6   :  { %2473 = vmatpush1.bf16.msra.mxu1 %v5586_v59 }
 0x2f7   :  { %2707 = vmatpush1.bf16.msra.mxu0 %v5590_v38  ;;  %2474 = vmatprep.subr.bf16.mxu1 %v5592_v42 }
 0x2f8   :  { %v1760_v60 = vpop.f32.mrb[28].mxu1  ;;  %2708 = vmatprep.subr.bf16.mxu0 %v5595_v19 }
 0x2f9   :  { %v5610_v51 = vadd.f32 %v1760_v60, %v5462_v30  ;;  %v5612_v24 = vpop.f32.mrb[32].mxu0  ;;  %v1762_v56 = vpop.f32.mrb[29].mxu1  ;;  %v5622_v30 = vld [vmem:[#allocation7 + $0x260] ss:$8 sps:$4 sm:$0xff]   ;;  %v5624_v60 = vld [vmem:[#allocation7 + $0x74] ss:$8 sps:$4 sm:$0xff]  }
 0x2fa   :  { %v1768_v22 = vadd.f32 %v1762_v56, %v5464_v17  ;;  %v5615_v38 = vpop.f32.mrb[33].mxu0  ;;  %v1764_v16 = vpop.f32.mrb[30].mxu1  ;;  %2475 = vmatpush1.bf16.msra.mxu1 %v5598_v36  ;;  %6375 = vst [vmem:[#allocation20_spill] sm:$0xff] %v5622_v30 }
 0x2fb   :  { %v1813_v40 = vpop.f32.mrb[34].mxu0  ;;  %2709 = vmatpush1.bf16.msra.mxu0 %v5602_v3  ;;  %v1765_v19 = vpop.f32.mrb[31].mxu1  ;;  %2476 = vmatprep.subr.bf16.mxu1 %v5604_v10  ;;  %v5628_v16 = vld [vmem:[#allocation7 + $0x274] ss:$8 sps:$4 sm:$0xff]   ;;  %v5637_v3 = vld [vmem:[#allocation7 + $0x84] ss:$8 sps:$4 sm:$0xff]  }
 0x2fc   :  { %v1770_v39 = vadd.f32 %v1768_v22, %v5410_v7  ;;  %v1814_v17 = vpop.f32.mrb[35].mxu0  ;;  %2710 = vmatprep.subr.bf16.mxu0 %v5607_v49  ;;  %6376 = vst [vmem:[#allocation21_spill] sm:$0xff] %v5628_v16  ;;  %v5631_v40 = vld [vmem:[#allocation7 + $0x70] ss:$8 sps:$4 sm:$0xff]   ;;  %v5642_v22 = vld [vmem:[#allocation7 + $0x284] ss:$8 sps:$4 sm:$0xff]  }
 0x2fd   :  { %v5635_v19 = vld [vmem:[#allocation7 + $0x270] ss:$8 sps:$4 sm:$0xff]   ;;  %6378 = vst [vmem:[#allocation24_spill] sm:$0xff] %v5642_v22  ;;  %v5650_v17 = vld [vmem:[#allocation7 + $0x280] ss:$8 sps:$4 sm:$0xff]  }
 0x2fe   :  { %v1772_v56 = vmax.f32 %v1770_v39, 0.0  ;;  %2477 = vmatpush1.bf16.msra.mxu1 %v5618_v48  ;;  %6377 = vst [vmem:[#allocation22_spill] sm:$0xff] %v5635_v19  ;;  %v5646_v39 = vld [vmem:[#allocation7 + $0x80] ss:$8 sps:$4 sm:$0xff]   ;;  %6379 = vst [vmem:[#allocation42_spill] sm:$0xff] %v5650_v17 }
 0x2ff   :  { %2711 = vmatpush1.bf16.msra.mxu0 %v5622_v30  ;;  %2478 = vmatprep.subr.bf16.mxu1 %v5624_v60  ;;  %v5652_v30 = vld [vmem:[#allocation7 + $0x94] ss:$8 sps:$4 sm:$0xff]   ;;  %v5662_v49 = vld [vmem:[#allocation7 + $0x290] ss:$8 sps:$4 sm:$0xff]  }
 0x300   :  { %v5639_v26 = vpack.c.bf16 %v1772_v56, %v1772_v56  ;;  %2712 = vmatprep.subr.bf16.mxu0 %v5628_v16  ;;  %v5655_v56 = vld [vmem:[#allocation7 + $0x294] ss:$8 sps:$4 sm:$0xff]   ;;  %v5658_v16 = vld [vmem:[#allocation7 + $0x90] ss:$8 sps:$4 sm:$0xff]   ;;  %6381 = vst [vmem:[#allocation27_spill] sm:$0xff] %v5662_v49 }
 0x301   :  { %6380 = vst [vmem:[#allocation25_spill] sm:$0xff] %v5655_v56 }
 0x302   :  { %2479 = vmatpush1.bf16.msra.mxu1 %v5631_v40  ;;  %2730 = vmatprep.mubr.bf16.mxu0 %v5639_v26 }
 0x303   :  { %2713 = vmatpush1.bf16.msra.mxu0 %v5635_v19  ;;  %2480 = vmatprep.subr.bf16.mxu1 %v5637_v3  ;;  %v5664_v19 = vld [vmem:[#allocation7 + $0xa4] ss:$8 sps:$4 sm:$0xff]  }
 0x304   :  { %2714 = vmatprep.subr.bf16.mxu0 %v5642_v22  ;;  %v5670_v22 = vld [vmem:[#allocation7 + $0xa0] ss:$8 sps:$4 sm:$0xff]  }
 0x306   :  { %2481 = vmatpush1.bf16.msra.mxu1 %v5646_v39 }
 0x307   :  { %2715 = vmatpush1.bf16.msra.mxu0 %v5650_v17  ;;  %2482 = vmatprep.subr.bf16.mxu1 %v5652_v30  ;;  %v5676_v17 = vld [vmem:[#allocation7 + $0xb4] ss:$8 sps:$4 sm:$0xff]  }
 0x308   :  { %2716 = vmatprep.subr.bf16.mxu0 %v5655_v56  ;;  %v5682_v56 = vld [vmem:[#allocation7 + $0xb0] ss:$8 sps:$4 sm:$0xff]  }
 0x309   :  { %6385 = vst [vmem:[#allocation31_spill] sm:$0xff] %v5682_v56 }
 0x30a   :  { %2483 = vmatpush1.bf16.msra.mxu1 %v5658_v16 }
 0x30b   :  { %2717 = vmatpush1.bf16.msra.mxu0 %v5662_v49  ;;  %2484 = vmatprep.subr.bf16.mxu1 %v5664_v19  ;;  %v5688_v49 = vld [vmem:[#allocation7 + $0xc4] ss:$8 sps:$4 sm:$0xff]  }
 0x30c   :  { %2718 = vmatprep.subr.bf16.mxu0 %v5667_v45  ;;  %6387 = vst [vmem:[#allocation33_spill] sm:$0xff] %v5688_v49  ;;  %v5694_v45 = vld [vmem:[#allocation7 + $0xc0] ss:$8 sps:$4 sm:$0xff]  }
 0x30d   :  { %6389 = vst [vmem:[#allocation35_spill] sm:$0xff] %v5694_v45 }
 0x30e   :  { %2485 = vmatpush1.bf16.msra.mxu1 %v5670_v22 }
 0x30f   :  { %2719 = vmatpush1.bf16.msra.mxu0 %v5674_v62  ;;  %2486 = vmatprep.subr.bf16.mxu1 %v5676_v17  ;;  %v5700_v62 = vld [vmem:[#allocation7 + $0xd4] ss:$8 sps:$4 sm:$0xff]  }
 0x310   :  { %2720 = vmatprep.subr.bf16.mxu0 %v5679_v21  ;;  %6391 = vst [vmem:[#allocation26_spill] sm:$0xff] %v5700_v62  ;;  %v5706_v21 = vld [vmem:[#allocation7 + $0xd0] ss:$8 sps:$4 sm:$0xff]  }
 0x311   :  { %6393 = vst [vmem:[#allocation41_spill] sm:$0xff] %v5706_v21 }
 0x312   :  { %2487 = vmatpush1.bf16.msra.mxu1 %v5682_v56  ;;  %v5731_v56 = vld [vmem:[#allocation7 + $0x2f4] ss:$8 sps:$4 sm:$0xff]  }
 0x313   :  { %2721 = vmatpush1.bf16.msra.mxu0 %v5686_v53  ;;  %2488 = vmatprep.subr.bf16.mxu1 %v5688_v49  ;;  %v5712_v53 = vld [vmem:[#allocation7 + $0xe4] ss:$8 sps:$4 sm:$0xff]  }
 0x314   :  { %2722 = vmatprep.subr.bf16.mxu0 %v5691_v46  ;;  %6395 = vst [vmem:[#allocation45_spill] sm:$0xff] %v5712_v53  ;;  %v5715_v49 = vld [vmem:[#allocation7 + $0x2e4] ss:$8 sps:$4 sm:$0xff]   ;;  %v5718_v46 = vld [vmem:[#allocation7 + $0xe0] ss:$8 sps:$4 sm:$0xff]  }
 0x315   :  { %6396 = vst [vmem:[#allocation63_spill] sm:$0xff] %v5715_v49 }
 0x316   :  { %2489 = vmatpush1.bf16.msra.mxu1 %v5694_v45  ;;  %v1507_v45 = vadd.f32 %v5516_v55, %v5245_v35 }
 0x317   :  { %2723 = vmatpush1.bf16.msra.mxu0 %v5698_v31  ;;  %2490 = vmatprep.subr.bf16.mxu1 %v5700_v62  ;;  %v5724_v31 = vld [vmem:[#allocation7 + $0x2e0] ss:$8 sps:$4 sm:$0xff]   ;;  %v5726_v62 = vld [vmem:[#allocation7 + $0xf4] ss:$8 sps:$4 sm:$0xff]  }
 0x318   :  { %2724 = vmatprep.subr.bf16.mxu0 %v5703_v11  ;;  %v1769_v11 = vadd.f32 %v5610_v51, %v5516_v55  ;;  %v1509_v35 = vmax.f32 %v1507_v45, 0.0 }
 0x31a   :  { %2491 = vmatpush1.bf16.msra.mxu1 %v5706_v21  ;;  %v5734_v21 = vld [vmem:[#allocation7 + $0xf0] ss:$8 sps:$4 sm:$0xff]   ;;  %v1511_v51 = vpack.c.bf16 %v1509_v35, %v1509_v35 }
 0x31b   :  { %2725 = vmatpush1.bf16.msra.mxu0 %v5710_v58  ;;  %2492 = vmatprep.subr.bf16.mxu1 %v5712_v53  ;;  %v5738_v58 = vld [vmem:[#allocation7 + $0x2f0] ss:$8 sps:$4 sm:$0xff]   ;;  %v1771_v53 = vmax.f32 %v1769_v11, 0.0 }
 0x31c   :  { %2726 = vmatprep.subr.bf16.mxu0 %v5715_v49  ;;  %v6426_v35 = vld [vmem:[#allocation22_spill] sm:$0xff] }
 0x31d   :  { %v5744_v49 = vpack.c.bf16 %v1771_v53, %v1771_v53 }
 0x31e   :  { %2493 = vmatpush1.bf16.msra.mxu1 %v5718_v46 }
 0x31f   :  { %2727 = vmatpush1.bf16.msra.mxu0 %v5724_v31  ;;  %2494 = vmatprep.subr.bf16.mxu1 %v5726_v62 }
 0x320   :  { %2728 = vmatprep.subr.bf16.mxu0 %v5731_v56 }
 0x322   :  { %2495 = vmatpush1.bf16.msra.mxu1 %v5734_v21 }
 0x323   :  { %2729 = vmatpush1.bf16.msra.mxu0 %v5738_v58  ;;  %2758 = vmatprep.subr.bf16.mxu1 %v5420_v0 }
 0x324   :  { %2799 = vmatprep.subr.bf16.mxu0 %v5533_v15  ;;  %v6408_v15 = vld [vmem:[#allocation60_spill] sm:$0xff] }
 0x325   :  { %2497 = vmatmul.mubr.bf16.vlgmr.msra.gmra.mrb[44].mxu1 %v1511_v51  ;;  %v6427_v51 = vld [vmem:[#allocation24_spill] sm:$0xff] }
 0x326   :  { %2731 = vmatmul.mubr.bf16.vlgmr.msra.gmra.mrb[48].mxu0 %v5744_v49  ;;  %2759 = vmatpush1.bf16.msra.mxu1 %v5425_v9 }
 0x327   :  { %2800 = vmatpush1.bf16.msra.mxu0 %v5538_v20  ;;  %2831 = vmatprep.mubr.bf16.mxu0 %v5639_v26  ;;  %v6409_v20 = vld [vmem:[#allocation38_spill] sm:$0xff] }
 0x328   :  { %2760 = vmatprep.subr.bf16.mxu1 %v5429_v57  ;;  %2801 = vmatprep.subr.bf16.mxu0 %v5545_v6  ;;  %v6410_v6 = vld [vmem:[#allocation56_spill] sm:$0xff] }
 0x32a   :  { %2761 = vmatpush1.bf16.msra.mxu1 %v5433_v33 }
 0x32b   :  { %2802 = vmatpush1.bf16.msra.mxu0 %v5550_v29  ;;  %2762 = vmatprep.subr.bf16.mxu1 %v5435_v8 }
 0x32c   :  { %2803 = vmatprep.subr.bf16.mxu0 %v5555_v12  ;;  %v6412_v12 = vld [vmem:[#allocation57_spill] sm:$0xff] }
 0x32e   :  { %2763 = vmatpush1.bf16.msra.mxu1 %v5439_v4 }
 0x32f   :  { %2804 = vmatpush1.bf16.msra.mxu0 %v5562_v44  ;;  %2764 = vmatprep.subr.bf16.mxu1 %v5442_v14  ;;  %v6413_v44 = vld [vmem:[#allocation58_spill] sm:$0xff] }
 0x330   :  { %2805 = vmatprep.subr.bf16.mxu0 %v5568_v43  ;;  %v6414_v43 = vld [vmem:[#allocation59_spill] sm:$0xff] }
 0x332   :  { %2765 = vmatpush1.bf16.msra.mxu1 %v5445_v37 }
 0x333   :  { %2806 = vmatpush1.bf16.msra.mxu0 %v5574_v23  ;;  %2766 = vmatprep.subr.bf16.mxu1 %v5448_v41  ;;  %v6416_v23 = vld [vmem:[#allocation13_spill] sm:$0xff] }
 0x334   :  { %2807 = vmatprep.subr.bf16.mxu0 %v5580_v13  ;;  %v6420_v13 = vld [vmem:[#allocation16_spill] sm:$0xff] }
 0x336   :  { %2767 = vmatpush1.bf16.msra.mxu1 %v5451_v34 }
 0x337   :  { %2808 = vmatpush1.bf16.msra.mxu0 %v5586_v59  ;;  %2768 = vmatprep.subr.bf16.mxu1 %v5454_v1  ;;  %v6421_v59 = vld [vmem:[#allocation17_spill] sm:$0xff] }
 0x338   :  { %v1850_v0 = vpop.f32.mrb[32].mxu1  ;;  %2809 = vmatprep.subr.bf16.mxu0 %v5592_v42 }
 0x339   :  { %v1851_v9 = vadd.f32 %v1850_v0, %v5612_v24  ;;  %v1891_v57 = vpop.f32.mrb[36].mxu0  ;;  %v1852_v33 = vpop.f32.mrb[33].mxu1  ;;  %v6418_v24 = vld [vmem:[#allocation14_spill] sm:$0xff] }
 0x33a   :  { %v1853_v8 = vadd.f32 %v1852_v33, %v5615_v38  ;;  %v1893_v4 = vpop.f32.mrb[37].mxu0  ;;  %v1854_v14 = vpop.f32.mrb[34].mxu1  ;;  %2769 = vmatpush1.bf16.msra.mxu1 %v5457_v5  ;;  %v6428_v0 = vld [vmem:[#allocation42_spill] sm:$0xff]  ;;  %v6431_v33 = vld [vmem:[#allocation28_spill] sm:$0xff] }
 0x33b   :  { %v1898_v37 = vadd.f32 %v1891_v57, %v1851_v9  ;;  %v1895_v41 = vpop.f32.mrb[38].mxu0  ;;  %2810 = vmatpush1.bf16.msra.mxu0 %v5598_v36  ;;  %v1855_v34 = vpop.f32.mrb[35].mxu1  ;;  %2770 = vmatprep.subr.bf16.mxu1 %v5460_v47  ;;  %v6397_v47 = vld [vmem:[#allocation31_spill] sm:$0xff]  ;;  %v6429_v9 = vld [vmem:[#allocation25_spill] sm:$0xff]  ;;  %v6434_v14 = vld [vmem:[#allocation32_spill] sm:$0xff] }
 0x33c   :  { %v1899_v1 = vadd.f32 %v1893_v4, %v1853_v8  ;;  %v1896_v11 = vpop.f32.mrb[39].mxu0  ;;  %2811 = vmatprep.subr.bf16.mxu0 %v5604_v10  ;;  %v6430_v57 = vld [vmem:[#allocation27_spill] sm:$0xff]  ;;  %v6432_v8 = vld [vmem:[#allocation29_spill] sm:$0xff]  ;;  %v6433_v4 = vld [vmem:[#allocation30_spill] sm:$0xff] }
 0x33d   :  { %v6436_v41 = vld [vmem:[#allocation23_spill] sm:$0xff]  ;;  %v6437_v34 = vld [vmem:[#allocation40_spill] sm:$0xff] }
 0x33e   :  { %v1901_v53 = vadd.f32 %v1899_v1, %v5410_v7  ;;  %2771 = vmatpush1.bf16.msra.mxu1 %v5467_v27  ;;  %v6398_v27 = vld [vmem:[#allocation51_spill] sm:$0xff] }
 0x33f   :  { %2812 = vmatpush1.bf16.msra.mxu0 %v5618_v48  ;;  %2772 = vmatprep.subr.bf16.mxu1 %v5470_v18  ;;  %v6399_v18 = vld [vmem:[#allocation33_spill] sm:$0xff]  ;;  %v6411_v48 = vld [vmem:[#allocation44_spill] sm:$0xff]  ;;  %v6438_v1 = vld [vmem:[#allocation43_spill] sm:$0xff] }
 0x340   :  { %v1903_v5 = vmax.f32 %v1901_v53, 0.0  ;;  %2813 = vmatprep.subr.bf16.mxu0 %v5624_v60  ;;  %v6439_v11 = vld [vmem:[#allocation63_spill] sm:$0xff] }
 0x342   :  { %v1905_v45 = vpack.c.bf16 %v1903_v5, %v1903_v5  ;;  %2773 = vmatpush1.bf16.msra.mxu1 %v5473_v25  ;;  %v6400_v25 = vld [vmem:[#allocation52_spill] sm:$0xff] }
 0x343   :  { %2814 = vmatpush1.bf16.msra.mxu0 %v5631_v40  ;;  %2774 = vmatprep.subr.bf16.mxu1 %v5476_v54  ;;  %v6401_v54 = vld [vmem:[#allocation35_spill] sm:$0xff] }
 0x344   :  { %2790 = vmatprep.mubr.bf16.mxu1 %v1905_v45  ;;  %2815 = vmatprep.subr.bf16.mxu0 %v5637_v3 }
 0x346   :  { %2775 = vmatpush1.bf16.msra.mxu1 %v5479_v2  ;;  %v6402_v2 = vld [vmem:[#allocation53_spill] sm:$0xff] }
 0x347   :  { %2816 = vmatpush1.bf16.msra.mxu0 %v5646_v39  ;;  %2776 = vmatprep.subr.bf16.mxu1 %v5482_v28  ;;  %v6403_v28 = vld [vmem:[#allocation26_spill] sm:$0xff]  ;;  %v6424_v39 = vld [vmem:[#allocation20_spill] sm:$0xff] }
 0x348   :  { %2817 = vmatprep.subr.bf16.mxu0 %v5652_v30  ;;  %v6422_v30 = vld [vmem:[#allocation18_spill] sm:$0xff] }
 0x34a   :  { %2777 = vmatpush1.bf16.msra.mxu1 %v5485_v32  ;;  %v6404_v32 = vld [vmem:[#allocation54_spill] sm:$0xff] }
 0x34b   :  { %2818 = vmatpush1.bf16.msra.mxu0 %v5658_v16  ;;  %2778 = vmatprep.subr.bf16.mxu1 %v5488_v61  ;;  %v1900_v61 = vadd.f32 %v1898_v37, %v5516_v55  ;;  %v6435_v37 = vld [vmem:[#allocation34_spill] sm:$0xff] }
 0x34c   :  { %2819 = vmatprep.subr.bf16.mxu0 %v5664_v19  ;;  %v6423_v19 = vld [vmem:[#allocation19_spill] sm:$0xff] }
 0x34d   :  { %v1902_v26 = vmax.f32 %v1900_v61, 0.0 }
 0x34e   :  { %2779 = vmatpush1.bf16.msra.mxu1 %v5491_v52  ;;  %v6405_v52 = vld [vmem:[#allocation41_spill] sm:$0xff] }
 0x34f   :  { %2820 = vmatpush1.bf16.msra.mxu0 %v5670_v22  ;;  %2780 = vmatprep.subr.bf16.mxu1 %v5494_v63  ;;  %v6406_v63 = vld [vmem:[#allocation55_spill] sm:$0xff]  ;;  %v1904_v29 = vpack.c.bf16 %v1902_v26, %v1902_v26  ;;  %v4153_v26 = vld [vmem:[%s6003_s7 + $0x90] sm:$0xff]  }
 0x350   :  { %2821 = vmatprep.subr.bf16.mxu0 %v5676_v17  ;;  %v6425_v17 = vld [vmem:[#allocation21_spill] sm:$0xff] }
 0x352   :  { %2781 = vmatpush1.bf16.msra.mxu1 %v5497_v50  ;;  %v6407_v50 = vld [vmem:[#allocation45_spill] sm:$0xff] }
 0x353   :  { %2822 = vmatpush1.bf16.msra.mxu0 %v6397_v47  ;;  %2782 = vmatprep.subr.bf16.mxu1 %v6398_v27 }
 0x354   :  { %2823 = vmatprep.subr.bf16.mxu0 %v6399_v18 }
 0x356   :  { %2783 = vmatpush1.bf16.msra.mxu1 %v6400_v25 }
 0x357   :  { %2824 = vmatpush1.bf16.msra.mxu0 %v6401_v54  ;;  %2784 = vmatprep.subr.bf16.mxu1 %v6402_v2 }
 0x358   :  { %2825 = vmatprep.subr.bf16.mxu0 %v6403_v28 }
 0x35a   :  { %2785 = vmatpush1.bf16.msra.mxu1 %v6404_v32 }
 0x35b   :  { %2826 = vmatpush1.bf16.msra.mxu0 %v6405_v52  ;;  %2786 = vmatprep.subr.bf16.mxu1 %v6406_v63 }
 0x35c   :  { %2827 = vmatprep.subr.bf16.mxu0 %v6407_v50  ;;  %v4152_v50 = vld [vmem:[%s6003_s7 + $0xd0] sm:$0xff]  }
 0x35e   :  { %2787 = vmatpush1.bf16.msra.mxu1 %v6408_v15 }
 0x35f   :  { %2828 = vmatpush1.bf16.msra.mxu0 %v5718_v46  ;;  %2788 = vmatprep.subr.bf16.mxu1 %v6409_v20  ;;  %v6415_v46 = vld [vmem:[#allocation12_spill] sm:$0xff]  ;;  %v4154_v20 = vld [vmem:[%s6003_s7 + $0xd8] sm:$0xff]  }
 0x360   :  { %2829 = vmatprep.subr.bf16.mxu0 %v5726_v62  ;;  %v6417_v62 = vld [vmem:[#allocation61_spill] sm:$0xff] }
 0x362   :  { %2789 = vmatpush1.bf16.msra.mxu1 %v6410_v6  ;;  %v4155_v6 = vld [vmem:[%s6003_s7 + $0x98] sm:$0xff]  }
 0x363   :  { %2830 = vmatpush1.bf16.msra.mxu0 %v5734_v21  ;;  %2840 = vmatprep.subr.bf16.mxu1 %v6411_v48  ;;  %v6419_v21 = vld [vmem:[#allocation15_spill] sm:$0xff] }
 0x364   :  { %v4157_v48 = vld [vmem:[%s6003_s7 + $0xa0] sm:$0xff]  }
 0x365   :  { %2791 = vmatmul.mubr.bf16.vlgmr.msra.gmra.mrb[48].mxu1 %v1904_v29  ;;  %v4156_v29 = vld [vmem:[%s6003_s7 + $0xe0] sm:$0xff]  }
 0x366   :  { %2832 = vmatmul.mubr.bf16.vlgmr.msra.gmra.mrb[52].mxu0 %v5744_v49  ;;  %2841 = vmatpush1.bf16.msra.mxu1 %v6412_v12  ;;  %v4158_v12 = vld [vmem:[%s6003_s7 + $0xe8] sm:$0xff]  }
 0x367   :  { %2842 = vmatprep.subr.bf16.mxu1 %v6413_v44  ;;  %v4159_v44 = vld [vmem:[%s6003_s7 + $0xa8] sm:$0xff]  }
 0x36a   :  { %2843 = vmatpush1.bf16.msra.mxu1 %v6414_v43 }
 0x36b   :  { %2844 = vmatprep.subr.bf16.mxu1 %v6415_v46 }
 0x36e   :  { %2845 = vmatpush1.bf16.msra.mxu1 %v6416_v23 }
 0x36f   :  { %2846 = vmatprep.subr.bf16.mxu1 %v6417_v62 }
 0x372   :  { %2847 = vmatpush1.bf16.msra.mxu1 %v6418_v24 }
 0x373   :  { %2848 = vmatprep.subr.bf16.mxu1 %v6419_v21 }
 0x376   :  { %2849 = vmatpush1.bf16.msra.mxu1 %v6420_v13 }
 0x377   :  { %2850 = vmatprep.subr.bf16.mxu1 %v6421_v59 }
 0x378   :  { %v1940_v49 = vpop.f32.mrb[36].mxu1 }
 0x379   :  { %v1981_v38 = vpop.f32.mrb[40].mxu0  ;;  %v1942_v42 = vpop.f32.mrb[37].mxu1 }
 0x37a   :  { %v1982_v36 = vadd.f32 %v1981_v38, %v1940_v49  ;;  %v1983_v3 = vpop.f32.mrb[41].mxu0  ;;  %v1944_v10 = vpop.f32.mrb[38].mxu1  ;;  %2851 = vmatpush1.bf16.msra.mxu1 %v6422_v30  ;;  %v4162_v30 = vld [vmem:[%s6003_s7 + $0xf8] sm:$0xff]  }
 0x37b   :  { %v1984_v60 = vadd.f32 %v1983_v3, %v1942_v42  ;;  %v1985_v16 = vpop.f32.mrb[42].mxu0  ;;  %v1945_v40 = vpop.f32.mrb[39].mxu1  ;;  %2852 = vmatprep.subr.bf16.mxu1 %v6423_v19  ;;  %v4160_v3 = vld [vmem:[%s6003_s7 + $0xf0] sm:$0xff]  }
 0x37c   :  { %v1986_v22 = vpop.f32.mrb[43].mxu0  ;;  %v4161_v10 = vld [vmem:[%s6003_s7 + $0xb0] sm:$0xff]   ;;  %v4164_v16 = vld [vmem:[%s6003_s7 + $0x40] sm:$0xff]  }
 0x37e   :  { %2853 = vmatpush1.bf16.msra.mxu1 %v6424_v39 }
 0x37f   :  { %2854 = vmatprep.subr.bf16.mxu1 %v6425_v17 }
 0x382   :  { %2855 = vmatpush1.bf16.msra.mxu1 %v6426_v35 }
 0x383   :  { %2856 = vmatprep.subr.bf16.mxu1 %v6427_v51 }
 0x386   :  { %2857 = vmatpush1.bf16.msra.mxu1 %v6428_v0 }
 0x387   :  { %2858 = vmatprep.subr.bf16.mxu1 %v6429_v9 }
 0x38a   :  { %2859 = vmatpush1.bf16.msra.mxu1 %v6430_v57 }
 0x38b   :  { %2860 = vmatprep.subr.bf16.mxu1 %v6431_v33  ;;  %v2037_v33 = vld [vmem:[%s6002_s6] sm:$0x3] }
 0x38e   :  { %2861 = vmatpush1.bf16.msra.mxu1 %v6432_v8  ;;  %v6440_v8 = vld [vmem:[#allocation37_spill] sm:$0xff] }
 0x38f   :  { %2862 = vmatprep.subr.bf16.mxu1 %v6433_v4  ;;  %v2749_v4 = vrot.slane %v2037_v33, %v6440_v8 }
 0x392   :  { %2863 = vmatpush1.bf16.msra.mxu1 %v6434_v14 }
 0x393   :  { %2864 = vmatprep.subr.bf16.mxu1 %v6435_v37  ;;  %v6441_v37 = vld [vmem:[#allocation36_spill] sm:$0xff] }
 0x396   :  { %2865 = vmatpush1.bf16.msra.mxu1 %v6436_v41  ;;  %v2745_v41 = vrot.slane %v2037_v33, %v6441_v37 }
 0x397   :  { %2866 = vmatprep.subr.bf16.mxu1 %v6437_v34 }
 0x39a   :  { %2867 = vmatpush1.bf16.msra.mxu1 %v6438_v1 }
 0x39b   :  { %2868 = vmatprep.subr.bf16.mxu1 %v6439_v11 }
 0x39e   :  { %2869 = vmatpush1.bf16.msra.mxu1 %v5724_v31  ;;  %v4148_v31 = vld [vmem:[%s6003_s7 + $0xc0] sm:$0xff]  }
 0x39f   :  { %2870 = vmatprep.subr.bf16.mxu1 %v5731_v56  ;;  %v4150_v56 = vld [vmem:[%s6003_s7 + $0xc8] sm:$0xff]   ;;  %3680 = vmatprep.subr.bf16.mxu0 %v4148_v31 }
 0x3a2   :  { %2871 = vmatpush1.bf16.msra.mxu1 %v5738_v58  ;;  %v4149_v58 = vld [vmem:[%s6003_s7 + $0x80] sm:$0xff]  }
 0x3a3   :  { %3681 = vmatpush3.bf16.msra.mxu0 %v4149_v58  ;;  %v4167_v58 = vld [vmem:[%s6003_s7 + $0x8] sm:$0xff]  }
 0x3a4   :  { %3682 = vmatprep.subr.bf16.mxu0 %v4150_v56  ;;  %v4168_v56 = vld [vmem:[%s6003_s7 + $0x50] sm:$0xff]  }
 0x3b8   :  { %v2022_v53 = vpop.f32.mrb[40].mxu1 }
 0x3b9   :  { %v2029_v5 = vadd.f32 %v2022_v53, %v1982_v36  ;;  %v2297_v45 = vpop.f32.mrb[44].mxu0  ;;  %v2024_v47 = vpop.f32.mrb[41].mxu1 }
 0x3ba   :  { %v2030_v27 = vadd.f32 %v2024_v47, %v1984_v60  ;;  %v2299_v18 = vpop.f32.mrb[45].mxu0  ;;  %v2026_v25 = vpop.f32.mrb[42].mxu1  ;;  %v4163_v60 = vld [vmem:[%s6003_s7 + $0xb8] sm:$0xff]  }
 0x3bb   :  { %v2031_v54 = vadd.f32 %v2029_v5, %v5516_v55  ;;  %v2301_v2 = vpop.f32.mrb[46].mxu0  ;;  %v2027_v28 = vpop.f32.mrb[43].mxu1 }
 0x3bc   :  { %v2032_v32 = vadd.f32 %v2030_v27, %v5410_v7  ;;  %v2302_v61 = vpop.f32.mrb[47].mxu0  ;;  %v4151_v7 = vld [vmem:[%s6003_s7 + $0x88] sm:$0xff]   ;;  %v4165_v28 = vld [vmem:[%s6003_s7] sm:$0xff]  }
 0x3bd   :  { %v2033_v52 = vmax.f32 %v2031_v54, 0.0  ;;  %3683 = vmatpush3.bf16.msra.mxu0 %v4151_v7  ;;  %v4166_v61 = vld [vmem:[%s6003_s7 + $0x48] sm:$0xff]   ;;  %v4171_v7 = vld [vmem:[%s6003_s7 + $0x18] sm:$0xff]  }
 0x3be   :  { %v2034_v63 = vmax.f32 %v2032_v32, 0.0  ;;  %3684 = vmatprep.subr.bf16.mxu0 %v4152_v50  ;;  %v4173_v50 = vld [vmem:[%s6003_s7 + $0x20] sm:$0xff]  }
 0x3bf   :  { %v2035_v15 = vpack.c.bf16 %v2033_v52, %v2033_v52  ;;  %v4169_v52 = vld [vmem:[%s6003_s7 + $0x10] sm:$0xff]  }
 0x3c0   :  { %v2036_v55 = vpack.c.bf16 %v2034_v63, %v2034_v63  ;;  %v4170_v63 = vld [vmem:[%s6003_s7 + $0x58] sm:$0xff]  }
 0x3c1   :  { %3685 = vmatpush3.bf16.msra.mxu0 %v4153_v26  ;;  %v4175_v26 = vld [vmem:[%s6003_s7 + $0x28] sm:$0xff]  }
 0x3c2   :  { %2872 = vmatprep.mubr.bf16.mxu1 %v2036_v55  ;;  %3686 = vmatprep.subr.bf16.mxu0 %v4154_v20  ;;  %v4172_v55 = vld [vmem:[%s6003_s7 + $0x60] sm:$0xff]   ;;  %v4176_v20 = vld [vmem:[%s6003_s7 + $0x70] sm:$0xff]  }
 0x3c3   :  { %2873 = vmatmul.mubr.bf16.vlgmr.msra.gmra.mrb[52].mxu1 %v2035_v15  ;;  %v4174_v15 = vld [vmem:[%s6003_s7 + $0x68] sm:$0xff]  }
 0x3c5   :  { %3687 = vmatpush3.bf16.msra.mxu0 %v4155_v6  ;;  %v4177_v6 = vld [vmem:[%s6003_s7 + $0x30] sm:$0xff]  }
 0x3c6   :  { %3688 = vmatprep.subr.bf16.mxu0 %v4156_v29 }
 0x3c9   :  { %3689 = vmatpush3.bf16.msra.mxu0 %v4157_v48  ;;  %v4178_v48 = vld [vmem:[%s6003_s7 + $0x78] sm:$0xff]  }
 0x3ca   :  { %3690 = vmatprep.subr.bf16.mxu0 %v4158_v12  ;;  %v4179_v12 = vld [vmem:[%s6003_s7 + $0x38] sm:$0xff]  }
 0x3cd   :  { %3691 = vmatpush3.bf16.msra.mxu0 %v4159_v44 }
 0x3ce   :  { %3692 = vmatprep.subr.bf16.mxu0 %v4160_v3  ;;  %v3242_v3 = vld [vmem:[%s6005_s9 + $0x38] sm:$0xff] }
 0x3d1   :  { %3693 = vmatpush3.bf16.msra.mxu0 %v4161_v10 }
 0x3d2   :  { %3694 = vmatprep.subr.bf16.mxu0 %v4162_v30  ;;  %v4384_v30 = vmov 0.0  }
 0x3d3   :  { %3749 = vmatprep.mubr.msk.f32.mxu1 %vm4383_vm2, %v4384_v30 }
 0x3d5   :  { %3695 = vmatpush3.bf16.msra.mxu0 %v4163_v60 }
 0x3d6   :  { %3702 = vmatprep.subr.bf16.mxu0 %v4164_v16 }
 0x3f8   :  { %v2498_v43 = vpop.f32.mrb[44].mxu1 }
 0x3f9   :  { %v2499_v46 = vadd.f32 %v2498_v43, %v2297_v45  ;;  %v2732_v23 = vpop.f32.mrb[48].mxu0  ;;  %v2500_v62 = vpop.f32.mrb[45].mxu1 }
 0x3fa   :  { %v2501_v24 = vadd.f32 %v2500_v62, %v2299_v18  ;;  %v2734_v21 = vpop.f32.mrb[49].mxu0  ;;  %v2502_v13 = vpop.f32.mrb[46].mxu1  ;;  %v3237_v62 = vld [vmem:[%s6005_s9 + $0x10] sm:$0xff] }
 0x3fb   :  { %v5886_v59 = vadd.f32 %v2732_v23, %v2499_v46  ;;  %v2736_v49 = vpop.f32.mrb[50].mxu0  ;;  %v2503_v38 = vpop.f32.mrb[47].mxu1  ;;  %v3235_v46 = vld [vmem:[%s6005_s9] sm:$0xff]  ;;  %v3236_v23 = vld [vmem:[%s6005_s9 + $0x8] sm:$0xff]  ;;  %v3238_v13 = vld [vmem:[%s6005_s9 + $0x18] sm:$0xff] }
 0x3fc   :  { %v2740_v42 = vadd.f32 %v2734_v21, %v2501_v24  ;;  %v2737_v36 = vpop.f32.mrb[51].mxu0  ;;  %v4382_v24 = vmov 0.0|0.0   ;;  %v3753_v21 = vpack.c.bf16 %v3236_v23, %v3235_v46  ;;  %v3239_v49 = vld [vmem:[%s6005_s9 + $0x20] sm:$0xff]  ;;  %v3240_v38 = vld [vmem:[%s6005_s9 + $0x28] sm:$0xff] }
 0x3fd   :  { %v2752_v29 = vadd.f32 %v2745_v41, %v5886_v59  ;;  %3752 = vmatprep.subr.bf16.mxu1 %v4382_v24  ;;  %v3756_v59 = vpack.c.bf16 %v3238_v13, %v3237_v62  ;;  %v3241_v36 = vld [vmem:[%s6005_s9 + $0x30] sm:$0xff] }
 0x3fe   :  { %v2753_v11 = vadd.f32 %v2749_v4, %v2740_v42  ;;  %3754 = vmatpush3.bf16.msra.mxu1 %v3753_v21  ;;  %v3759_v42 = vpack.c.bf16 %v3240_v38, %v3239_v49  ;;  %v3762_v10 = vpack.c.bf16 %v3242_v3, %v3241_v36 }
 0x3ff   :  { %v2754_v44 = vmax.f32 %v2752_v29, 0.0  ;;  %3755 = vmatprep.subr.bf16.mxu1 %v4382_v24 }
 0x400   :  { %v2755_v25 = vmax.f32 %v2753_v11, 0.0 }
 0x401   :  { %v2756_v43 = vpack.c.bf16 %v2754_v44, %v2754_v44 }
 0x402   :  { %v2757_v31 = vpack.c.bf16 %v2755_v25, %v2755_v25  ;;  %3757 = vmatpush3.bf16.msra.mxu1 %v3756_v59 }
 0x403   :  { %3758 = vmatprep.subr.bf16.mxu1 %v4382_v24 }
 0x406   :  { %3760 = vmatpush3.bf16.msra.mxu1 %v3759_v42 }
 0x407   :  { %3761 = vmatprep.subr.bf16.mxu1 %v4382_v24 }
 0x40a   :  { %3763 = vmatpush3.bf16.msra.mxu1 %v3762_v10 }
 0x438   :  { %v2792_v40 = vpop.f32.mrb[48].mxu1 }
 0x439   :  { %v2833_v19 = vpop.f32.mrb[52].mxu0  ;;  %v2794_v22 = vpop.f32.mrb[49].mxu1 }
 0x43a   :  { %v2834_v39 = vadd.f32 %v2833_v19, %v2792_v40  ;;  %v2835_v17 = vpop.f32.mrb[53].mxu0  ;;  %v2796_v35 = vpop.f32.mrb[50].mxu1 }
 0x43b   :  { %v2836_v51 = vadd.f32 %v2835_v17, %v2794_v22  ;;  %v2837_v0 = vpop.f32.mrb[54].mxu0  ;;  %v2797_v9 = vpop.f32.mrb[51].mxu1 }
 0x43c   :  { %v2838_v57 = vpop.f32.mrb[55].mxu0  ;;  %v3677_v0 = vld [vmem:[%s6004_s8] ss:$0 sm:$0xff]  ;;  %s4385_s8 = smov [#allocation8]  }
 0x43d   :  { %s3341_s25 = sshll.u32 %s4385_s8, 4  ;;  %s3342_s25 = int_to_ptr.vmem [resolvable:$true] %s3341_s25 }
 0x43e   :  { %p4351_p11 = scmp.lt.s32.totalorder %s3342_s25, %s3342_s25 }
 0x496   :  { %v2874_v14 = vpop.f32.mrb[52].mxu1 }
 0x497   :  { %v2881_v34 = vadd.f32 %v2874_v14, %v2834_v39  ;;  %v2876_v1 = vpop.f32.mrb[53].mxu1 }
 0x498   :  { %v2882_v53 = vadd.f32 %v2876_v1, %v2836_v51  ;;  %v2878_v5 = vpop.f32.mrb[54].mxu1 }
 0x499   :  { %v2883_v45 = vadd.f32 %v2881_v34, %v2745_v41  ;;  %v2879_v47 = vpop.f32.mrb[55].mxu1 }
 0x49a   :  { %v2884_v27 = vadd.f32 %v2882_v53, %v2749_v4  ;;  %v3678_v4 = vld [vmem:[%s6006_s10] ss:$0 sm:$0xff]  ;;  %s4346_s10 = scalar_lea.vmem %s3342_s25, 128 }
 0x49b   :  { %v2885_v18 = vmax.f32 %v2883_v45, 0.0  ;;  %p4347_p10 = scmp.ne.s32.totalorder %s3342_s25, %s4346_s10  ;;  %p4352_p12 = scmp.lt.s32.totalorder %s4346_s10, %s4346_s10 }
 0x49c   :  { %v2886_v54 = vmax.f32 %v2884_v27, 0.0 }
 0x49d   :  { %v2887_v32 = vpack.c.bf16 %v2885_v18, %v2885_v18  ;;  %p4353_p13 = por %p4352_p12, %p4351_p11 }
 0x49e   :  { %v2888_v2 = vpack.c.bf16 %v2886_v54, %v2886_v54 }
 0x49f   :  { %p4354_p0 = pnand %p4353_p13, %p4347_p10 }
 0x4a0   :  { %3083 = vmatprep.mubr.bf16.mxu0 %v2888_v2 }
 0x4a1   :  { %3084 = vmatmul.mubr.bf16.vlgmr.msra.gmra.mrb[56].mxu0 %v2887_v32 }
 0x4a2   :  { %3703 = vmatpush3.bf16.msra.mxu0 %v4165_v28  ;;  %3219 = vmatprep.mubr.bf16.mxu0 %v2757_v31 }
 0x4a3   :  { %3704 = vmatprep.subr.bf16.mxu0 %v4166_v61 }
 0x4a6   :  { %3705 = vmatpush3.bf16.msra.mxu0 %v4167_v58 }
 0x4a7   :  { %3706 = vmatprep.subr.bf16.mxu0 %v4168_v56 }
 0x4aa   :  { %3707 = vmatpush3.bf16.msra.mxu0 %v4169_v52 }
 0x4ab   :  { %3708 = vmatprep.subr.bf16.mxu0 %v4170_v63 }
 0x4ae   :  { %3709 = vmatpush3.bf16.msra.mxu0 %v4171_v7 }
 0x4af   :  { %3710 = vmatprep.subr.bf16.mxu0 %v4172_v55 }
 0x4b2   :  { %3711 = vmatpush3.bf16.msra.mxu0 %v4173_v50 }
 0x4b3   :  { %3712 = vmatprep.subr.bf16.mxu0 %v4174_v15 }
 0x4b6   :  { %3713 = vmatpush3.bf16.msra.mxu0 %v4175_v26 }
 0x4b7   :  { %3714 = vmatprep.subr.bf16.mxu0 %v4176_v20 }
 0x4ba   :  { %3715 = vmatpush3.bf16.msra.mxu0 %v4177_v6 }
 0x4bb   :  { %3716 = vmatprep.subr.bf16.mxu0 %v4178_v48 }
 0x4be   :  { %3717 = vmatpush3.bf16.msra.mxu0 %v4179_v12 }
 0x4c1   :  { %3220 = vmatmul.mubr.bf16.vlgmr.msra.gmra.mrb[60].mxu0 %v2756_v43 }
 0x574   :  { %v3696_v60 = vpop.f32.mrb[56].mxu0 }
 0x575   :  { %v3697_v16 = vpop.f32.mrb[57].mxu0 }
 0x576   :  { %v3698_v40 = vadd.f32 %v3697_v16, %v3696_v60  ;;  %v3699_v19 = vpop.f32.mrb[58].mxu0 }
 0x577   :  { %v3700_v22 = vpop.f32.mrb[59].mxu0 }
 0x594   :  { %v3718_v39 = vpop.f32.mrb[60].mxu0 }
 0x595   :  { %v3719_v17 = vpop.f32.mrb[61].mxu0 }
 0x596   :  { %v3720_v35 = vadd.f32 %v3719_v17, %v3718_v39  ;;  %v3721_v51 = vpop.f32.mrb[62].mxu0 }
 0x597   :  { %v3722_v9 = vpop.f32.mrb[63].mxu0 }
 0x598   :  { %v3222_v57 = vadd.f32 %v3720_v35, %v3698_v40 }
 0x59a   :  { %v3233_v33 = vadd.f32 %v3677_v0, %v3222_v57 }
 0x59c   :  { %v3234_v8 = vmax.f32 %v3233_v33, 0.0 }
 0x59e   :  { %3750 = vmatmul.mubr.msk.f32.vlgmr.msra.gmra.mrb[56].mxu1 %vm3250_vm3, %v3234_v8 }
 0x671   :  { %v3320_v14 = vpop.f32.mrb[56].mxu1 }
 0x672   :  { %v3321_v37 = vadd.f32 %v3678_v4, %v3320_v14  ;;  %v3751_v41 = vpop.f32.mrb[57].mxu1 }
 0x674   :  { %3324 = vmax.xlane.f32.xlu0 %v3321_v37 }
 0x701   :  { %v3325_v34 = vpop.xlane.xlu0 %3324 }
 0x702   :  { %v3326_v1 = vsub.f32 %v3321_v37, %v3325_v34 }
 0x704   :  { %v3327_v11 = vmul.f32 1.442695, %v3326_v1 }
 0x706   :  { %4180 = vpow2.f32 %v3327_v11 }
 0x710   :  { %v4181_v53 = vpop.eup %4180 }
 0x711   :  { %3329 = vadd.xlane.f32.xlu0 %v4181_v53 }
 0x79e   :  { %v3330_v5 = vpop.xlane.xlu0 %3329 }
 0x79f   :  { %4182 = vlog2.f32 %v3330_v5 }
 0x7a9   :  { %v4183_v45 = vpop.eup %4182 }
 0x7aa   :  { %v3332_v47 = vmul.f32 0.6931472, %v4183_v45 }
 0x7ac   :  { %v3333_v27 = vsub.f32 %v3326_v1, %v3332_v47 }
 0x7ae   :  { %3334 = vst [vmem:[#allocation8] sm:$0xff] %v3333_v27 }
 0x7af   :  { %4357 = shalt.err (!%p4354_p0)
}
 0x7b0   :  { %s4358_s30 = scalar_lea.hbm %s6007_s11, 128 }
 0x7b1   :  { %p4359_p1 = scmp.ne.s32.totalorder %s6007_s11, %s4358_s30  ;;  %p4362_p2 = scmp.lt.u32.totalorder %s4358_s30, %s6007_s11 }
 0x7b3   :  { %p4364_p3 = pnand %p4362_p2, %p4359_p1 }
 0x7b5   :  { %4367 = shalt.err (!%p4364_p3)
}
 0x7b6   :  { %3344 = dma.vmem_to_hbm [thread:$0]  %s3342_s25, 128, %s6007_s11, [#allocation4]  }
 0x7b7   :  { %4372 = dma.done.wait [#allocation4], 128  }
 0x7b8   :  { %4373 = vsyncadd [#allocation4], 4294967168 }
 0x7b9   :  { %3348 = vsyncpa [#allocation3], 1 }
 0x7ba   :  { %3349 = vsyncpa [#allocation6], 1 }
 0x7bb   :  { %3350 = vsyncpa [#allocation4], 1 }

</bundles_post_ra>
